<compile_context>
chip_gen: v7x
topology: tpu7x:2x2x1
jax: 0.10.0
libtpu: 0.0.40
codegen_flags: <defaults>
</compile_context>

<pallas_src>
import functools

import jax
import jax.numpy as jnp
from jax.experimental import pallas as pl
from jax.experimental.pallas import tpu as pltpu

# Module hyper-parameters (from bi_RNN.py globals)
INPUT_SIZE = 30
HIDDEN_SIZE = 100
OUTPUT_SIZE = 10
SEQ_LEN = 8   # small synthetic sequence length
BATCH = 1     # implied by _init_hidden() -> zeros(2, 1, H)

# Padded / layout constants
HP = 128            # hidden padded to one vreg lane width
IP = 32             # per-direction input padded to a sublane multiple
OP = 128            # fc output padded to lane width (wrapper slices back to O)
D2 = 2 * HP         # [fwd | bwd] hidden concat width (256)
GW = 3 * D2         # gate slab width [r_f|r_b | z_f|z_b | n_f|n_b] (768)

# Row offsets inside the packed weight slab (sublane-aligned where it matters)
W_IH_ROW = 0                     # rows 0:64    W_ih^T (fwd rows 0:32, bwd rows 32:64)
W_HH_ROW = 2 * IP                # rows 64:320  W_hh^T block-diagonal (fwd 64:192, bwd 192:320)
BIAS_XG_ROW = W_HH_ROW + D2      # 320: b_ih(all gates) + b_hh(r,z) folded
BIAS_HHN_ROW = BIAS_XG_ROW + 1   # 321: b_hh n-gate, cols 0:256 ([fwd | bwd])
BIAS_FC_ROW = BIAS_XG_ROW + 2    # 322: fc bias in cols 0:OUTPUT_SIZE
WSLAB_ROWS = 328                 # padded to a multiple of 8


def birnn_kernel(x_ref, wslab_ref, wfc_ref, out_ref):
    T = x_ref.shape[0]

    # Hoisted, static slices of the packed slab.
    w_ih = wslab_ref[W_IH_ROW:W_IH_ROW + 2 * IP, :]               # (64, 768)
    w_hh = wslab_ref[W_HH_ROW:W_HH_ROW + D2, :]                   # (256, 768) shared RHS
    xg_bias = wslab_ref[BIAS_XG_ROW:BIAS_XG_ROW + 1, :]           # (1, 768)
    bhh_n = wslab_ref[BIAS_HHN_ROW:BIAS_HHN_ROW + 1, 0:D2]        # (1, 256)
    b_fc = wslab_ref[BIAS_FC_ROW:BIAS_FC_ROW + 1, 0:OP]           # (1, 128)

    # Fused input projection for both directions: (T, 64) @ (64, 768).
    # Cols 32:64 of x hold the time-reversed sequence, so xg row s already
    # carries forward-gate x(t=s) and backward-gate x(t=T-1-s) side by side.
    xg = jnp.dot(x_ref[...], w_ih, preferred_element_type=jnp.float32) + xg_bias

    def sigm(v):
        # sigmoid(x) = 0.5 * tanh(0.5 * x) + 0.5 : one EUP op instead of exp+recip.
        return 0.5 * jnp.tanh(0.5 * v) + 0.5

    # Merged fwd/bwd recurrence with h = [h_f | h_b] (1, 256).  The recurrence
    # matmul uses the SAME block-diagonal RHS every step -> MXU weight residency.
    h = jnp.zeros((1, D2), jnp.float32)
    fwd_rows = [None] * T
    bwd_rows = [None] * T
    for s in range(T):
        hg = jnp.dot(h, w_hh, preferred_element_type=jnp.float32)     # (1, 768)
        xr = xg[s:s + 1, :]
        r = sigm(xr[:, 0:D2] + hg[:, 0:D2])
        z = sigm(xr[:, D2:2 * D2] + hg[:, D2:2 * D2])
        n = jnp.tanh(xr[:, 2 * D2:3 * D2] + r * (hg[:, 2 * D2:3 * D2] + bhh_n))
        h = n + z * (h - n)           # == (1 - z) * n + z * h_prev
        # NOTE: padded lanes (100:128 per direction) stay exactly 0 only because
        # the initial hidden state is zero (z=0.5 there multiplies a zero h_prev).
        fwd_rows[s] = h[:, 0:HP]
        bwd_rows[T - 1 - s] = h[:, HP:D2]

    # Assemble the (T, 256) GRU output entirely in vregs (2 f32 vregs) -- no
    # VMEM scratch stores and no store->load hazard before the FC matmul.
    gru_out = jnp.concatenate(
        [jnp.concatenate(fwd_rows, axis=0), jnp.concatenate(bwd_rows, axis=0)],
        axis=1)                                                       # (T, 256)
    out_ref[...] = (
        jnp.dot(gru_out, wfc_ref[...], preferred_element_type=jnp.float32) + b_fc
    ).astype(out_ref.dtype)


# ----------------------------- packing (one-time) -----------------------------
def _pack_gate_cols(w_t, H, d):
    """(K, 3H) in PyTorch gate order [r,z,n] -> (K, 768); gate g of direction d
    lands at columns [g*256 + d*128, g*256 + d*128 + H)."""
    K = w_t.shape[0]
    out = jnp.zeros((K, GW), jnp.float32)
    for g in range(3):
        out = out.at[:, g * D2 + d * HP:g * D2 + d * HP + H].set(
            w_t[:, g * H:(g + 1) * H].astype(jnp.float32))
    return out


def _pack_gate_bias(b, H, d):
    out = jnp.zeros((GW,), jnp.float32)
    for g in range(3):
        out = out.at[g * D2 + d * HP:g * D2 + d * HP + H].set(
            b[g * H:(g + 1) * H].astype(jnp.float32))
    return out


def pack_birnn_params(params):
    """One-time weight prep (hoisted out of the per-call path): coalesce the 11
    parameters into two padded slabs shared by every forward call."""
    H = params["w_hh_f"].shape[1]
    I = params["w_ih_f"].shape[1]
    O = params["w_fc"].shape[0]
    assert H <= HP and I <= IP and O <= OP

    wslab = jnp.zeros((WSLAB_ROWS, GW), jnp.float32)
    # Input-to-hidden weights (transposed): fwd rows 0:I, bwd rows IP:IP+I.
    wslab = wslab.at[0:I, :].set(_pack_gate_cols(params["w_ih_f"].T, H, 0))
    wslab = wslab.at[IP:IP + I, :].set(_pack_gate_cols(params["w_ih_b"].T, H, 1))
    # Hidden-to-hidden weights, block-diagonal so ONE shared RHS serves both
    # directions: fwd rows feed the *_f gate columns, bwd rows the *_b columns.
    wslab = wslab.at[W_HH_ROW:W_HH_ROW + H, :].set(
        _pack_gate_cols(params["w_hh_f"].T, H, 0))
    wslab = wslab.at[W_HH_ROW + HP:W_HH_ROW + HP + H, :].set(
        _pack_gate_cols(params["w_hh_b"].T, H, 1))

    xg_bias = jnp.zeros((GW,), jnp.float32)
    bhh_n = jnp.zeros((D2,), jnp.float32)
    for d, (bih_k, bhh_k) in enumerate((("b_ih_f", "b_hh_f"), ("b_ih_b", "b_hh_b"))):
        bih_p = _pack_gate_bias(params[bih_k], H, d)
        bhh_p = _pack_gate_bias(params[bhh_k], H, d)
        # Fold b_hh for the r,z gates into the x-gate bias; the n-gate b_hh must
        # stay separate (it is multiplied by r inside the cell).
        xg_bias = xg_bias + bih_p
        xg_bias = xg_bias.at[0:2 * D2].add(bhh_p[0:2 * D2])
        bhh_n = bhh_n.at[d * HP:d * HP + H].set(
            params[bhh_k][2 * H:3 * H].astype(jnp.float32))
    wslab = wslab.at[BIAS_XG_ROW, :].set(xg_bias)
    wslab = wslab.at[BIAS_HHN_ROW, 0:D2].set(bhh_n)
    wslab = wslab.at[BIAS_FC_ROW, 0:O].set(params["b_fc"].astype(jnp.float32))

    wfc_t = params["w_fc"].T.astype(jnp.float32)                   # (2H, O)
    wfc = jnp.zeros((D2, OP), jnp.float32)
    wfc = wfc.at[0:H, 0:O].set(wfc_t[0:H])                         # forward half
    wfc = wfc.at[HP:HP + H, 0:O].set(wfc_t[H:2 * H])               # backward half
    return wslab, wfc, O


# --------------------------------- forward ------------------------------------
@functools.partial(jax.jit, static_argnums=(3,))
def birnn_forward(input_seq, wslab, wfc, output_size):
    """input_seq: (T, 1, I) float32 -> (T, 1, output_size) float32."""
    T, B, I = input_seq.shape
    assert B == 1, "module hard-codes batch=1 via _init_hidden"
    x = input_seq.reshape(T, I).astype(jnp.float32)
    # cols 0:I      -> x(t)      (forward direction)
    # cols IP:IP+I  -> x(T-1-t)  (backward direction, time-reversed here so both
    #                             chains index the same xg row inside the kernel)
    x2 = jnp.zeros((T, 2 * IP), jnp.float32)
    x2 = x2.at[:, 0:I].set(x)
    x2 = x2.at[:, IP:IP + I].set(x[::-1])

    out = pl.pallas_call(
        birnn_kernel,
        out_shape=jax.ShapeDtypeStruct((T, OP), jnp.float32),
        in_specs=[pl.BlockSpec(memory_space=pltpu.MemorySpace.VMEM)] * 3,
        out_specs=pl.BlockSpec(memory_space=pltpu.MemorySpace.VMEM),
    )(x2, wslab, wfc)
    return out[:, 0:output_size].reshape(T, B, output_size)


# ---------------- pure-JAX reference (for correctness check only) -------------
def _gru_cell_ref(x_t, h, w_ih, w_hh, b_ih, b_hh, H):
    gi = x_t @ w_ih.T + b_ih
    gh = h @ w_hh.T + b_hh
    r = jax.nn.sigmoid(gi[:, :H] + gh[:, :H])
    z = jax.nn.sigmoid(gi[:, H:2 * H] + gh[:, H:2 * H])
    n = jnp.tanh(gi[:, 2 * H:] + r * gh[:, 2 * H:])
    return (1.0 - z) * n + z * h


def birnn_reference(input_seq, params):
    T, B, I = input_seq.shape
    H = params["w_hh_f"].shape[1]
    x = input_seq.reshape(T, I)
    h_f = jnp.zeros((1, H), jnp.float32)
    fwd = []
    for t in range(T):
        h_f = _gru_cell_ref(x[t:t + 1], h_f, params["w_ih_f"], params["w_hh_f"],
                            params["b_ih_f"], params["b_hh_f"], H)
        fwd.append(h_f)
    h_b = jnp.zeros((1, H), jnp.float32)
    bwd = [None] * T
    for t in range(T - 1, -1, -1):
        h_b = _gru_cell_ref(x[t:t + 1], h_b, params["w_ih_b"], params["w_hh_b"],
                            params["b_ih_b"], params["b_hh_b"], H)
        bwd[t] = h_b
    gru_out = jnp.concatenate(
        [jnp.concatenate(fwd, 0), jnp.concatenate(bwd, 0)], axis=1)
    out = gru_out @ params["w_fc"].T + params["b_fc"]
    return out.reshape(T, B, -1)


def init_params(key, input_size, hidden_size, output_size):
    """Deterministic init mirroring PyTorch shapes: GRU uses U(-k, k), k=1/sqrt(H)."""
    ks = jax.random.split(key, 11)
    kH = 1.0 / jnp.sqrt(hidden_size)
    kF = 1.0 / jnp.sqrt(2 * hidden_size)
    u = lambda k, shape, lim: jax.random.uniform(k, shape, jnp.float32, -lim, lim)
    return {
        "w_ih_f": u(ks[0], (3 * hidden_size, input_size), kH),
        "w_hh_f": u(ks[1], (3 * hidden_size, hidden_size), kH),
        "b_ih_f": u(ks[2], (3 * hidden_size,), kH),
        "b_hh_f": u(ks[3], (3 * hidden_size,), kH),
        "w_ih_b": u(ks[4], (3 * hidden_size, input_size), kH),
        "w_hh_b": u(ks[5], (3 * hidden_size, hidden_size), kH),
        "b_ih_b": u(ks[6], (3 * hidden_size,), kH),
        "b_hh_b": u(ks[7], (3 * hidden_size,), kH),
        "w_fc": u(ks[8], (output_size, 2 * hidden_size), kF),
        "b_fc": u(ks[9], (output_size,), kF),
    }


if __name__ == "__main__":
    key = jax.random.PRNGKey(0)
    k_param, k_x = jax.random.split(key)

    params = init_params(k_param, INPUT_SIZE, HIDDEN_SIZE, OUTPUT_SIZE)
    input_seq = jax.random.normal(k_x, (SEQ_LEN, BATCH, INPUT_SIZE), jnp.float32)

    # Pack once (hoisted out of the per-call hot path) and reuse every call.
    wslab, wfc, out_size = pack_birnn_params(params)
    wslab, wfc = jax.block_until_ready((wslab, wfc))

    out = birnn_forward(input_seq, wslab, wfc, out_size)
    out = jax.block_until_ready(out)

    ref = jax.block_until_ready(birnn_reference(input_seq, params))
    assert out.shape == (SEQ_LEN, BATCH, OUTPUT_SIZE)
    assert jnp.allclose(out, ref, rtol=1e-4, atol=1e-4), "kernel mismatch vs reference"

    print("KERNEL_OK")
</pallas_src>

<mosaic_0001>
module attributes {stable_mosaic.version = 11 : i64} {
  func.func @birnn_kernel(%arg0: memref<8x64xf32, #tpu.memory_space<vmem>>, %arg1: memref<328x768xf32, #tpu.memory_space<vmem>>, %arg2: memref<256x128xf32, #tpu.memory_space<vmem>>, %arg3: memref<8x128xf32, #tpu.memory_space<vmem>>) attributes {dimension_semantics = [], scalar_prefetch = 0 : i64, scratch_operands = 0 : i64, tpu.core_type = #tpu.core_type<tc>} {
    %c0 = arith.constant 0 : index
    %c0_0 = arith.constant 0 : index
    %0 = vector.load %arg1[%c0, %c0_0] : memref<328x768xf32, #tpu.memory_space<vmem>>, vector<64x768xf32>
    %c64 = arith.constant 64 : index
    %c0_1 = arith.constant 0 : index
    %1 = vector.load %arg1[%c64, %c0_1] : memref<328x768xf32, #tpu.memory_space<vmem>>, vector<256x768xf32>
    %c320 = arith.constant 320 : index
    %c0_2 = arith.constant 0 : index
    %2 = vector.load %arg1[%c320, %c0_2] : memref<328x768xf32, #tpu.memory_space<vmem>>, vector<1x768xf32>
    %c321 = arith.constant 321 : index
    %c0_3 = arith.constant 0 : index
    %3 = vector.load %arg1[%c321, %c0_3] : memref<328x768xf32, #tpu.memory_space<vmem>>, vector<1x256xf32>
    %c322 = arith.constant 322 : index
    %c0_4 = arith.constant 0 : index
    %4 = vector.load %arg1[%c322, %c0_4] : memref<328x768xf32, #tpu.memory_space<vmem>>, vector<1x128xf32>
    %c0_5 = arith.constant 0 : index
    %c0_6 = arith.constant 0 : index
    %5 = vector.load %arg0[%c0_5, %c0_6] : memref<8x64xf32, #tpu.memory_space<vmem>>, vector<8x64xf32>
    %cst = arith.constant dense<0.000000e+00> : vector<8x768xf32>
    %6 = tpu.matmul %5, %0, %cst {dimension_numbers = #tpu.dot_dimension_numbers<[1], [0], [0], [1], [0, 0, 1, 1], [], []>} : vector<8x64xf32>, vector<64x768xf32>, vector<8x768xf32> -> vector<8x768xf32>
    %7 = vector.broadcast %2 : vector<1x768xf32> to vector<8x768xf32>
    %8 = arith.addf %6, %7 : vector<8x768xf32>
    %cst_7 = arith.constant 0.000000e+00 : f32
    %9 = vector.broadcast %cst_7 : f32 to vector<1x256xf32>
    %cst_8 = arith.constant dense<0.000000e+00> : vector<1x768xf32>
    %10 = tpu.matmul %9, %1, %cst_8 {dimension_numbers = #tpu.dot_dimension_numbers<[1], [0], [0], [1], [0, 0, 1, 1], [], []>} : vector<1x256xf32>, vector<256x768xf32>, vector<1x768xf32> -> vector<1x768xf32>
    %11 = vector.extract_strided_slice %8 {offsets = [0, 0], sizes = [1, 768], strides = [1, 1]} : vector<8x768xf32> to vector<1x768xf32>
    %12 = vector.extract_strided_slice %11 {offsets = [0, 0], sizes = [1, 256], strides = [1, 1]} : vector<1x768xf32> to vector<1x256xf32>
    %13 = vector.extract_strided_slice %10 {offsets = [0, 0], sizes = [1, 256], strides = [1, 1]} : vector<1x768xf32> to vector<1x256xf32>
    %14 = arith.addf %12, %13 : vector<1x256xf32>
    %cst_9 = arith.constant 5.000000e-01 : f32
    %15 = vector.broadcast %cst_9 : f32 to vector<1x256xf32>
    %16 = arith.mulf %15, %14 : vector<1x256xf32>
    %17 = math.tanh %16 : vector<1x256xf32>
    %cst_10 = arith.constant 5.000000e-01 : f32
    %18 = vector.broadcast %cst_10 : f32 to vector<1x256xf32>
    %19 = arith.mulf %18, %17 : vector<1x256xf32>
    %cst_11 = arith.constant 5.000000e-01 : f32
    %20 = vector.broadcast %cst_11 : f32 to vector<1x256xf32>
    %21 = arith.addf %19, %20 : vector<1x256xf32>
    %22 = vector.extract_strided_slice %11 {offsets = [0, 256], sizes = [1, 256], strides = [1, 1]} : vector<1x768xf32> to vector<1x256xf32>
    %23 = vector.extract_strided_slice %10 {offsets = [0, 256], sizes = [1, 256], strides = [1, 1]} : vector<1x768xf32> to vector<1x256xf32>
    %24 = arith.addf %22, %23 : vector<1x256xf32>
    %cst_12 = arith.constant 5.000000e-01 : f32
    %25 = vector.broadcast %cst_12 : f32 to vector<1x256xf32>
    %26 = arith.mulf %25, %24 : vector<1x256xf32>
    %27 = math.tanh %26 : vector<1x256xf32>
    %cst_13 = arith.constant 5.000000e-01 : f32
    %28 = vector.broadcast %cst_13 : f32 to vector<1x256xf32>
    %29 = arith.mulf %28, %27 : vector<1x256xf32>
    %cst_14 = arith.constant 5.000000e-01 : f32
    %30 = vector.broadcast %cst_14 : f32 to vector<1x256xf32>
    %31 = arith.addf %29, %30 : vector<1x256xf32>
    %32 = vector.extract_strided_slice %11 {offsets = [0, 512], sizes = [1, 256], strides = [1, 1]} : vector<1x768xf32> to vector<1x256xf32>
    %33 = vector.extract_strided_slice %10 {offsets = [0, 512], sizes = [1, 256], strides = [1, 1]} : vector<1x768xf32> to vector<1x256xf32>
    %34 = arith.addf %33, %3 : vector<1x256xf32>
    %35 = arith.mulf %21, %34 : vector<1x256xf32>
    %36 = arith.addf %32, %35 : vector<1x256xf32>
    %37 = math.tanh %36 : vector<1x256xf32>
    %38 = arith.subf %9, %37 : vector<1x256xf32>
    %39 = arith.mulf %31, %38 : vector<1x256xf32>
    %40 = arith.addf %37, %39 : vector<1x256xf32>
    %41 = vector.extract_strided_slice %40 {offsets = [0, 0], sizes = [1, 128], strides = [1, 1]} : vector<1x256xf32> to vector<1x128xf32>
    %42 = vector.extract_strided_slice %40 {offsets = [0, 128], sizes = [1, 128], strides = [1, 1]} : vector<1x256xf32> to vector<1x128xf32>
    %cst_15 = arith.constant dense<0.000000e+00> : vector<1x768xf32>
    %43 = tpu.matmul %40, %1, %cst_15 {dimension_numbers = #tpu.dot_dimension_numbers<[1], [0], [0], [1], [0, 0, 1, 1], [], []>} : vector<1x256xf32>, vector<256x768xf32>, vector<1x768xf32> -> vector<1x768xf32>
    %44 = vector.extract_strided_slice %8 {offsets = [1, 0], sizes = [1, 768], strides = [1, 1]} : vector<8x768xf32> to vector<1x768xf32>
    %45 = vector.extract_strided_slice %44 {offsets = [0, 0], sizes = [1, 256], strides = [1, 1]} : vector<1x768xf32> to vector<1x256xf32>
    %46 = vector.extract_strided_slice %43 {offsets = [0, 0], sizes = [1, 256], strides = [1, 1]} : vector<1x768xf32> to vector<1x256xf32>
    %47 = arith.addf %45, %46 : vector<1x256xf32>
    %cst_16 = arith.constant 5.000000e-01 : f32
    %48 = vector.broadcast %cst_16 : f32 to vector<1x256xf32>
    %49 = arith.mulf %48, %47 : vector<1x256xf32>
    %50 = math.tanh %49 : vector<1x256xf32>
    %cst_17 = arith.constant 5.000000e-01 : f32
    %51 = vector.broadcast %cst_17 : f32 to vector<1x256xf32>
    %52 = arith.mulf %51, %50 : vector<1x256xf32>
    %cst_18 = arith.constant 5.000000e-01 : f32
    %53 = vector.broadcast %cst_18 : f32 to vector<1x256xf32>
    %54 = arith.addf %52, %53 : vector<1x256xf32>
    %55 = vector.extract_strided_slice %44 {offsets = [0, 256], sizes = [1, 256], strides = [1, 1]} : vector<1x768xf32> to vector<1x256xf32>
    %56 = vector.extract_strided_slice %43 {offsets = [0, 256], sizes = [1, 256], strides = [1, 1]} : vector<1x768xf32> to vector<1x256xf32>
    %57 = arith.addf %55, %56 : vector<1x256xf32>
    %cst_19 = arith.constant 5.000000e-01 : f32
    %58 = vector.broadcast %cst_19 : f32 to vector<1x256xf32>
    %59 = arith.mulf %58, %57 : vector<1x256xf32>
    %60 = math.tanh %59 : vector<1x256xf32>
    %cst_20 = arith.constant 5.000000e-01 : f32
    %61 = vector.broadcast %cst_20 : f32 to vector<1x256xf32>
    %62 = arith.mulf %61, %60 : vector<1x256xf32>
    %cst_21 = arith.constant 5.000000e-01 : f32
    %63 = vector.broadcast %cst_21 : f32 to vector<1x256xf32>
    %64 = arith.addf %62, %63 : vector<1x256xf32>
    %65 = vector.extract_strided_slice %44 {offsets = [0, 512], sizes = [1, 256], strides = [1, 1]} : vector<1x768xf32> to vector<1x256xf32>
    %66 = vector.extract_strided_slice %43 {offsets = [0, 512], sizes = [1, 256], strides = [1, 1]} : vector<1x768xf32> to vector<1x256xf32>
    %67 = arith.addf %66, %3 : vector<1x256xf32>
    %68 = arith.mulf %54, %67 : vector<1x256xf32>
    %69 = arith.addf %65, %68 : vector<1x256xf32>
    %70 = math.tanh %69 : vector<1x256xf32>
    %71 = arith.subf %40, %70 : vector<1x256xf32>
    %72 = arith.mulf %64, %71 : vector<1x256xf32>
    %73 = arith.addf %70, %72 : vector<1x256xf32>
    %74 = vector.extract_strided_slice %73 {offsets = [0, 0], sizes = [1, 128], strides = [1, 1]} : vector<1x256xf32> to vector<1x128xf32>
    %75 = vector.extract_strided_slice %73 {offsets = [0, 128], sizes = [1, 128], strides = [1, 1]} : vector<1x256xf32> to vector<1x128xf32>
    %cst_22 = arith.constant dense<0.000000e+00> : vector<1x768xf32>
    %76 = tpu.matmul %73, %1, %cst_22 {dimension_numbers = #tpu.dot_dimension_numbers<[1], [0], [0], [1], [0, 0, 1, 1], [], []>} : vector<1x256xf32>, vector<256x768xf32>, vector<1x768xf32> -> vector<1x768xf32>
    %77 = vector.extract_strided_slice %8 {offsets = [2, 0], sizes = [1, 768], strides = [1, 1]} : vector<8x768xf32> to vector<1x768xf32>
    %78 = vector.extract_strided_slice %77 {offsets = [0, 0], sizes = [1, 256], strides = [1, 1]} : vector<1x768xf32> to vector<1x256xf32>
    %79 = vector.extract_strided_slice %76 {offsets = [0, 0], sizes = [1, 256], strides = [1, 1]} : vector<1x768xf32> to vector<1x256xf32>
    %80 = arith.addf %78, %79 : vector<1x256xf32>
    %cst_23 = arith.constant 5.000000e-01 : f32
    %81 = vector.broadcast %cst_23 : f32 to vector<1x256xf32>
    %82 = arith.mulf %81, %80 : vector<1x256xf32>
    %83 = math.tanh %82 : vector<1x256xf32>
    %cst_24 = arith.constant 5.000000e-01 : f32
    %84 = vector.broadcast %cst_24 : f32 to vector<1x256xf32>
    %85 = arith.mulf %84, %83 : vector<1x256xf32>
    %cst_25 = arith.constant 5.000000e-01 : f32
    %86 = vector.broadcast %cst_25 : f32 to vector<1x256xf32>
    %87 = arith.addf %85, %86 : vector<1x256xf32>
    %88 = vector.extract_strided_slice %77 {offsets = [0, 256], sizes = [1, 256], strides = [1, 1]} : vector<1x768xf32> to vector<1x256xf32>
    %89 = vector.extract_strided_slice %76 {offsets = [0, 256], sizes = [1, 256], strides = [1, 1]} : vector<1x768xf32> to vector<1x256xf32>
    %90 = arith.addf %88, %89 : vector<1x256xf32>
    %cst_26 = arith.constant 5.000000e-01 : f32
    %91 = vector.broadcast %cst_26 : f32 to vector<1x256xf32>
    %92 = arith.mulf %91, %90 : vector<1x256xf32>
    %93 = math.tanh %92 : vector<1x256xf32>
    %cst_27 = arith.constant 5.000000e-01 : f32
    %94 = vector.broadcast %cst_27 : f32 to vector<1x256xf32>
    %95 = arith.mulf %94, %93 : vector<1x256xf32>
    %cst_28 = arith.constant 5.000000e-01 : f32
    %96 = vector.broadcast %cst_28 : f32 to vector<1x256xf32>
    %97 = arith.addf %95, %96 : vector<1x256xf32>
    %98 = vector.extract_strided_slice %77 {offsets = [0, 512], sizes = [1, 256], strides = [1, 1]} : vector<1x768xf32> to vector<1x256xf32>
    %99 = vector.extract_strided_slice %76 {offsets = [0, 512], sizes = [1, 256], strides = [1, 1]} : vector<1x768xf32> to vector<1x256xf32>
    %100 = arith.addf %99, %3 : vector<1x256xf32>
    %101 = arith.mulf %87, %100 : vector<1x256xf32>
    %102 = arith.addf %98, %101 : vector<1x256xf32>
    %103 = math.tanh %102 : vector<1x256xf32>
    %104 = arith.subf %73, %103 : vector<1x256xf32>
    %105 = arith.mulf %97, %104 : vector<1x256xf32>
    %106 = arith.addf %103, %105 : vector<1x256xf32>
    %107 = vector.extract_strided_slice %106 {offsets = [0, 0], sizes = [1, 128], strides = [1, 1]} : vector<1x256xf32> to vector<1x128xf32>
    %108 = vector.extract_strided_slice %106 {offsets = [0, 128], sizes = [1, 128], strides = [1, 1]} : vector<1x256xf32> to vector<1x128xf32>
    %cst_29 = arith.constant dense<0.000000e+00> : vector<1x768xf32>
    %109 = tpu.matmul %106, %1, %cst_29 {dimension_numbers = #tpu.dot_dimension_numbers<[1], [0], [0], [1], [0, 0, 1, 1], [], []>} : vector<1x256xf32>, vector<256x768xf32>, vector<1x768xf32> -> vector<1x768xf32>
    %110 = vector.extract_strided_slice %8 {offsets = [3, 0], sizes = [1, 768], strides = [1, 1]} : vector<8x768xf32> to vector<1x768xf32>
    %111 = vector.extract_strided_slice %110 {offsets = [0, 0], sizes = [1, 256], strides = [1, 1]} : vector<1x768xf32> to vector<1x256xf32>
    %112 = vector.extract_strided_slice %109 {offsets = [0, 0], sizes = [1, 256], strides = [1, 1]} : vector<1x768xf32> to vector<1x256xf32>
    %113 = arith.addf %111, %112 : vector<1x256xf32>
    %cst_30 = arith.constant 5.000000e-01 : f32
    %114 = vector.broadcast %cst_30 : f32 to vector<1x256xf32>
    %115 = arith.mulf %114, %113 : vector<1x256xf32>
    %116 = math.tanh %115 : vector<1x256xf32>
    %cst_31 = arith.constant 5.000000e-01 : f32
    %117 = vector.broadcast %cst_31 : f32 to vector<1x256xf32>
    %118 = arith.mulf %117, %116 : vector<1x256xf32>
    %cst_32 = arith.constant 5.000000e-01 : f32
    %119 = vector.broadcast %cst_32 : f32 to vector<1x256xf32>
    %120 = arith.addf %118, %119 : vector<1x256xf32>
    %121 = vector.extract_strided_slice %110 {offsets = [0, 256], sizes = [1, 256], strides = [1, 1]} : vector<1x768xf32> to vector<1x256xf32>
    %122 = vector.extract_strided_slice %109 {offsets = [0, 256], sizes = [1, 256], strides = [1, 1]} : vector<1x768xf32> to vector<1x256xf32>
    %123 = arith.addf %121, %122 : vector<1x256xf32>
    %cst_33 = arith.constant 5.000000e-01 : f32
    %124 = vector.broadcast %cst_33 : f32 to vector<1x256xf32>
    %125 = arith.mulf %124, %123 : vector<1x256xf32>
    %126 = math.tanh %125 : vector<1x256xf32>
    %cst_34 = arith.constant 5.000000e-01 : f32
    %127 = vector.broadcast %cst_34 : f32 to vector<1x256xf32>
    %128 = arith.mulf %127, %126 : vector<1x256xf32>
    %cst_35 = arith.constant 5.000000e-01 : f32
    %129 = vector.broadcast %cst_35 : f32 to vector<1x256xf32>
    %130 = arith.addf %128, %129 : vector<1x256xf32>
    %131 = vector.extract_strided_slice %110 {offsets = [0, 512], sizes = [1, 256], strides = [1, 1]} : vector<1x768xf32> to vector<1x256xf32>
    %132 = vector.extract_strided_slice %109 {offsets = [0, 512], sizes = [1, 256], strides = [1, 1]} : vector<1x768xf32> to vector<1x256xf32>
    %133 = arith.addf %132, %3 : vector<1x256xf32>
    %134 = arith.mulf %120, %133 : vector<1x256xf32>
    %135 = arith.addf %131, %134 : vector<1x256xf32>
    %136 = math.tanh %135 : vector<1x256xf32>
    %137 = arith.subf %106, %136 : vector<1x256xf32>
    %138 = arith.mulf %130, %137 : vector<1x256xf32>
    %139 = arith.addf %136, %138 : vector<1x256xf32>
    %140 = vector.extract_strided_slice %139 {offsets = [0, 0], sizes = [1, 128], strides = [1, 1]} : vector<1x256xf32> to vector<1x128xf32>
    %141 = vector.extract_strided_slice %139 {offsets = [0, 128], sizes = [1, 128], strides = [1, 1]} : vector<1x256xf32> to vector<1x128xf32>
    %cst_36 = arith.constant dense<0.000000e+00> : vector<1x768xf32>
    %142 = tpu.matmul %139, %1, %cst_36 {dimension_numbers = #tpu.dot_dimension_numbers<[1], [0], [0], [1], [0, 0, 1, 1], [], []>} : vector<1x256xf32>, vector<256x768xf32>, vector<1x768xf32> -> vector<1x768xf32>
    %143 = vector.extract_strided_slice %8 {offsets = [4, 0], sizes = [1, 768], strides = [1, 1]} : vector<8x768xf32> to vector<1x768xf32>
    %144 = vector.extract_strided_slice %143 {offsets = [0, 0], sizes = [1, 256], strides = [1, 1]} : vector<1x768xf32> to vector<1x256xf32>
    %145 = vector.extract_strided_slice %142 {offsets = [0, 0], sizes = [1, 256], strides = [1, 1]} : vector<1x768xf32> to vector<1x256xf32>
    %146 = arith.addf %144, %145 : vector<1x256xf32>
    %cst_37 = arith.constant 5.000000e-01 : f32
    %147 = vector.broadcast %cst_37 : f32 to vector<1x256xf32>
    %148 = arith.mulf %147, %146 : vector<1x256xf32>
    %149 = math.tanh %148 : vector<1x256xf32>
    %cst_38 = arith.constant 5.000000e-01 : f32
    %150 = vector.broadcast %cst_38 : f32 to vector<1x256xf32>
    %151 = arith.mulf %150, %149 : vector<1x256xf32>
    %cst_39 = arith.constant 5.000000e-01 : f32
    %152 = vector.broadcast %cst_39 : f32 to vector<1x256xf32>
    %153 = arith.addf %151, %152 : vector<1x256xf32>
    %154 = vector.extract_strided_slice %143 {offsets = [0, 256], sizes = [1, 256], strides = [1, 1]} : vector<1x768xf32> to vector<1x256xf32>
    %155 = vector.extract_strided_slice %142 {offsets = [0, 256], sizes = [1, 256], strides = [1, 1]} : vector<1x768xf32> to vector<1x256xf32>
    %156 = arith.addf %154, %155 : vector<1x256xf32>
    %cst_40 = arith.constant 5.000000e-01 : f32
    %157 = vector.broadcast %cst_40 : f32 to vector<1x256xf32>
    %158 = arith.mulf %157, %156 : vector<1x256xf32>
    %159 = math.tanh %158 : vector<1x256xf32>
    %cst_41 = arith.constant 5.000000e-01 : f32
    %160 = vector.broadcast %cst_41 : f32 to vector<1x256xf32>
    %161 = arith.mulf %160, %159 : vector<1x256xf32>
    %cst_42 = arith.constant 5.000000e-01 : f32
    %162 = vector.broadcast %cst_42 : f32 to vector<1x256xf32>
    %163 = arith.addf %161, %162 : vector<1x256xf32>
    %164 = vector.extract_strided_slice %143 {offsets = [0, 512], sizes = [1, 256], strides = [1, 1]} : vector<1x768xf32> to vector<1x256xf32>
    %165 = vector.extract_strided_slice %142 {offsets = [0, 512], sizes = [1, 256], strides = [1, 1]} : vector<1x768xf32> to vector<1x256xf32>
    %166 = arith.addf %165, %3 : vector<1x256xf32>
    %167 = arith.mulf %153, %166 : vector<1x256xf32>
    %168 = arith.addf %164, %167 : vector<1x256xf32>
    %169 = math.tanh %168 : vector<1x256xf32>
    %170 = arith.subf %139, %169 : vector<1x256xf32>
    %171 = arith.mulf %163, %170 : vector<1x256xf32>
    %172 = arith.addf %169, %171 : vector<1x256xf32>
    %173 = vector.extract_strided_slice %172 {offsets = [0, 0], sizes = [1, 128], strides = [1, 1]} : vector<1x256xf32> to vector<1x128xf32>
    %174 = vector.extract_strided_slice %172 {offsets = [0, 128], sizes = [1, 128], strides = [1, 1]} : vector<1x256xf32> to vector<1x128xf32>
    %cst_43 = arith.constant dense<0.000000e+00> : vector<1x768xf32>
    %175 = tpu.matmul %172, %1, %cst_43 {dimension_numbers = #tpu.dot_dimension_numbers<[1], [0], [0], [1], [0, 0, 1, 1], [], []>} : vector<1x256xf32>, vector<256x768xf32>, vector<1x768xf32> -> vector<1x768xf32>
    %176 = vector.extract_strided_slice %8 {offsets = [5, 0], sizes = [1, 768], strides = [1, 1]} : vector<8x768xf32> to vector<1x768xf32>
    %177 = vector.extract_strided_slice %176 {offsets = [0, 0], sizes = [1, 256], strides = [1, 1]} : vector<1x768xf32> to vector<1x256xf32>
    %178 = vector.extract_strided_slice %175 {offsets = [0, 0], sizes = [1, 256], strides = [1, 1]} : vector<1x768xf32> to vector<1x256xf32>
    %179 = arith.addf %177, %178 : vector<1x256xf32>
    %cst_44 = arith.constant 5.000000e-01 : f32
    %180 = vector.broadcast %cst_44 : f32 to vector<1x256xf32>
    %181 = arith.mulf %180, %179 : vector<1x256xf32>
    %182 = math.tanh %181 : vector<1x256xf32>
    %cst_45 = arith.constant 5.000000e-01 : f32
    %183 = vector.broadcast %cst_45 : f32 to vector<1x256xf32>
    %184 = arith.mulf %183, %182 : vector<1x256xf32>
    %cst_46 = arith.constant 5.000000e-01 : f32
    %185 = vector.broadcast %cst_46 : f32 to vector<1x256xf32>
    %186 = arith.addf %184, %185 : vector<1x256xf32>
    %187 = vector.extract_strided_slice %176 {offsets = [0, 256], sizes = [1, 256], strides = [1, 1]} : vector<1x768xf32> to vector<1x256xf32>
    %188 = vector.extract_strided_slice %175 {offsets = [0, 256], sizes = [1, 256], strides = [1, 1]} : vector<1x768xf32> to vector<1x256xf32>
    %189 = arith.addf %187, %188 : vector<1x256xf32>
    %cst_47 = arith.constant 5.000000e-01 : f32
    %190 = vector.broadcast %cst_47 : f32 to vector<1x256xf32>
    %191 = arith.mulf %190, %189 : vector<1x256xf32>
    %192 = math.tanh %191 : vector<1x256xf32>
    %cst_48 = arith.constant 5.000000e-01 : f32
    %193 = vector.broadcast %cst_48 : f32 to vector<1x256xf32>
    %194 = arith.mulf %193, %192 : vector<1x256xf32>
    %cst_49 = arith.constant 5.000000e-01 : f32
    %195 = vector.broadcast %cst_49 : f32 to vector<1x256xf32>
    %196 = arith.addf %194, %195 : vector<1x256xf32>
    %197 = vector.extract_strided_slice %176 {offsets = [0, 512], sizes = [1, 256], strides = [1, 1]} : vector<1x768xf32> to vector<1x256xf32>
    %198 = vector.extract_strided_slice %175 {offsets = [0, 512], sizes = [1, 256], strides = [1, 1]} : vector<1x768xf32> to vector<1x256xf32>
    %199 = arith.addf %198, %3 : vector<1x256xf32>
    %200 = arith.mulf %186, %199 : vector<1x256xf32>
    %201 = arith.addf %197, %200 : vector<1x256xf32>
    %202 = math.tanh %201 : vector<1x256xf32>
    %203 = arith.subf %172, %202 : vector<1x256xf32>
    %204 = arith.mulf %196, %203 : vector<1x256xf32>
    %205 = arith.addf %202, %204 : vector<1x256xf32>
    %206 = vector.extract_strided_slice %205 {offsets = [0, 0], sizes = [1, 128], strides = [1, 1]} : vector<1x256xf32> to vector<1x128xf32>
    %207 = vector.extract_strided_slice %205 {offsets = [0, 128], sizes = [1, 128], strides = [1, 1]} : vector<1x256xf32> to vector<1x128xf32>
    %cst_50 = arith.constant dense<0.000000e+00> : vector<1x768xf32>
    %208 = tpu.matmul %205, %1, %cst_50 {dimension_numbers = #tpu.dot_dimension_numbers<[1], [0], [0], [1], [0, 0, 1, 1], [], []>} : vector<1x256xf32>, vector<256x768xf32>, vector<1x768xf32> -> vector<1x768xf32>
    %209 = vector.extract_strided_slice %8 {offsets = [6, 0], sizes = [1, 768], strides = [1, 1]} : vector<8x768xf32> to vector<1x768xf32>
    %210 = vector.extract_strided_slice %209 {offsets = [0, 0], sizes = [1, 256], strides = [1, 1]} : vector<1x768xf32> to vector<1x256xf32>
    %211 = vector.extract_strided_slice %208 {offsets = [0, 0], sizes = [1, 256], strides = [1, 1]} : vector<1x768xf32> to vector<1x256xf32>
    %212 = arith.addf %210, %211 : vector<1x256xf32>
    %cst_51 = arith.constant 5.000000e-01 : f32
    %213 = vector.broadcast %cst_51 : f32 to vector<1x256xf32>
    %214 = arith.mulf %213, %212 : vector<1x256xf32>
    %215 = math.tanh %214 : vector<1x256xf32>
    %cst_52 = arith.constant 5.000000e-01 : f32
    %216 = vector.broadcast %cst_52 : f32 to vector<1x256xf32>
    %217 = arith.mulf %216, %215 : vector<1x256xf32>
    %cst_53 = arith.constant 5.000000e-01 : f32
    %218 = vector.broadcast %cst_53 : f32 to vector<1x256xf32>
    %219 = arith.addf %217, %218 : vector<1x256xf32>
    %220 = vector.extract_strided_slice %209 {offsets = [0, 256], sizes = [1, 256], strides = [1, 1]} : vector<1x768xf32> to vector<1x256xf32>
    %221 = vector.extract_strided_slice %208 {offsets = [0, 256], sizes = [1, 256], strides = [1, 1]} : vector<1x768xf32> to vector<1x256xf32>
    %222 = arith.addf %220, %221 : vector<1x256xf32>
    %cst_54 = arith.constant 5.000000e-01 : f32
    %223 = vector.broadcast %cst_54 : f32 to vector<1x256xf32>
    %224 = arith.mulf %223, %222 : vector<1x256xf32>
    %225 = math.tanh %224 : vector<1x256xf32>
    %cst_55 = arith.constant 5.000000e-01 : f32
    %226 = vector.broadcast %cst_55 : f32 to vector<1x256xf32>
    %227 = arith.mulf %226, %225 : vector<1x256xf32>
    %cst_56 = arith.constant 5.000000e-01 : f32
    %228 = vector.broadcast %cst_56 : f32 to vector<1x256xf32>
    %229 = arith.addf %227, %228 : vector<1x256xf32>
    %230 = vector.extract_strided_slice %209 {offsets = [0, 512], sizes = [1, 256], strides = [1, 1]} : vector<1x768xf32> to vector<1x256xf32>
    %231 = vector.extract_strided_slice %208 {offsets = [0, 512], sizes = [1, 256], strides = [1, 1]} : vector<1x768xf32> to vector<1x256xf32>
    %232 = arith.addf %231, %3 : vector<1x256xf32>
    %233 = arith.mulf %219, %232 : vector<1x256xf32>
    %234 = arith.addf %230, %233 : vector<1x256xf32>
    %235 = math.tanh %234 : vector<1x256xf32>
    %236 = arith.subf %205, %235 : vector<1x256xf32>
    %237 = arith.mulf %229, %236 : vector<1x256xf32>
    %238 = arith.addf %235, %237 : vector<1x256xf32>
    %239 = vector.extract_strided_slice %238 {offsets = [0, 0], sizes = [1, 128], strides = [1, 1]} : vector<1x256xf32> to vector<1x128xf32>
    %240 = vector.extract_strided_slice %238 {offsets = [0, 128], sizes = [1, 128], strides = [1, 1]} : vector<1x256xf32> to vector<1x128xf32>
    %cst_57 = arith.constant dense<0.000000e+00> : vector<1x768xf32>
    %241 = tpu.matmul %238, %1, %cst_57 {dimension_numbers = #tpu.dot_dimension_numbers<[1], [0], [0], [1], [0, 0, 1, 1], [], []>} : vector<1x256xf32>, vector<256x768xf32>, vector<1x768xf32> -> vector<1x768xf32>
    %242 = vector.extract_strided_slice %8 {offsets = [7, 0], sizes = [1, 768], strides = [1, 1]} : vector<8x768xf32> to vector<1x768xf32>
    %243 = vector.extract_strided_slice %242 {offsets = [0, 0], sizes = [1, 256], strides = [1, 1]} : vector<1x768xf32> to vector<1x256xf32>
    %244 = vector.extract_strided_slice %241 {offsets = [0, 0], sizes = [1, 256], strides = [1, 1]} : vector<1x768xf32> to vector<1x256xf32>
    %245 = arith.addf %243, %244 : vector<1x256xf32>
    %cst_58 = arith.constant 5.000000e-01 : f32
    %246 = vector.broadcast %cst_58 : f32 to vector<1x256xf32>
    %247 = arith.mulf %246, %245 : vector<1x256xf32>
    %248 = math.tanh %247 : vector<1x256xf32>
    %cst_59 = arith.constant 5.000000e-01 : f32
    %249 = vector.broadcast %cst_59 : f32 to vector<1x256xf32>
    %250 = arith.mulf %249, %248 : vector<1x256xf32>
    %cst_60 = arith.constant 5.000000e-01 : f32
    %251 = vector.broadcast %cst_60 : f32 to vector<1x256xf32>
    %252 = arith.addf %250, %251 : vector<1x256xf32>
    %253 = vector.extract_strided_slice %242 {offsets = [0, 256], sizes = [1, 256], strides = [1, 1]} : vector<1x768xf32> to vector<1x256xf32>
    %254 = vector.extract_strided_slice %241 {offsets = [0, 256], sizes = [1, 256], strides = [1, 1]} : vector<1x768xf32> to vector<1x256xf32>
    %255 = arith.addf %253, %254 : vector<1x256xf32>
    %cst_61 = arith.constant 5.000000e-01 : f32
    %256 = vector.broadcast %cst_61 : f32 to vector<1x256xf32>
    %257 = arith.mulf %256, %255 : vector<1x256xf32>
    %258 = math.tanh %257 : vector<1x256xf32>
    %cst_62 = arith.constant 5.000000e-01 : f32
    %259 = vector.broadcast %cst_62 : f32 to vector<1x256xf32>
    %260 = arith.mulf %259, %258 : vector<1x256xf32>
    %cst_63 = arith.constant 5.000000e-01 : f32
    %261 = vector.broadcast %cst_63 : f32 to vector<1x256xf32>
    %262 = arith.addf %260, %261 : vector<1x256xf32>
    %263 = vector.extract_strided_slice %242 {offsets = [0, 512], sizes = [1, 256], strides = [1, 1]} : vector<1x768xf32> to vector<1x256xf32>
    %264 = vector.extract_strided_slice %241 {offsets = [0, 512], sizes = [1, 256], strides = [1, 1]} : vector<1x768xf32> to vector<1x256xf32>
    %265 = arith.addf %264, %3 : vector<1x256xf32>
    %266 = arith.mulf %252, %265 : vector<1x256xf32>
    %267 = arith.addf %263, %266 : vector<1x256xf32>
    %268 = math.tanh %267 : vector<1x256xf32>
    %269 = arith.subf %238, %268 : vector<1x256xf32>
    %270 = arith.mulf %262, %269 : vector<1x256xf32>
    %271 = arith.addf %268, %270 : vector<1x256xf32>
    %272 = vector.extract_strided_slice %271 {offsets = [0, 0], sizes = [1, 128], strides = [1, 1]} : vector<1x256xf32> to vector<1x128xf32>
    %273 = vector.extract_strided_slice %271 {offsets = [0, 128], sizes = [1, 128], strides = [1, 1]} : vector<1x256xf32> to vector<1x128xf32>
    %274 = tpu.concatenate %41, %74, %107, %140, %173, %206, %239, %272 in 0 : vector<1x128xf32>, vector<1x128xf32>, vector<1x128xf32>, vector<1x128xf32>, vector<1x128xf32>, vector<1x128xf32>, vector<1x128xf32>, vector<1x128xf32> -> vector<8x128xf32>
    %275 = tpu.concatenate %273, %240, %207, %174, %141, %108, %75, %42 in 0 : vector<1x128xf32>, vector<1x128xf32>, vector<1x128xf32>, vector<1x128xf32>, vector<1x128xf32>, vector<1x128xf32>, vector<1x128xf32>, vector<1x128xf32> -> vector<8x128xf32>
    %276 = tpu.concatenate %274, %275 in 1 : vector<8x128xf32>, vector<8x128xf32> -> vector<8x256xf32>
    %c0_64 = arith.constant 0 : index
    %c0_65 = arith.constant 0 : index
    %277 = vector.load %arg2[%c0_64, %c0_65] : memref<256x128xf32, #tpu.memory_space<vmem>>, vector<256x128xf32>
    %cst_66 = arith.constant dense<0.000000e+00> : vector<8x128xf32>
    %278 = tpu.matmul %276, %277, %cst_66 {dimension_numbers = #tpu.dot_dimension_numbers<[1], [0], [0], [1], [0, 0, 1, 1], [], []>} : vector<8x256xf32>, vector<256x128xf32>, vector<8x128xf32> -> vector<8x128xf32>
    %279 = vector.broadcast %4 : vector<1x128xf32> to vector<8x128xf32>
    %280 = arith.addf %278, %279 : vector<8x128xf32>
    %c0_67 = arith.constant 0 : index
    %c0_68 = arith.constant 0 : index
    %281 = vector.load %arg3[%c0_67, %c0_68] : memref<8x128xf32, #tpu.memory_space<vmem>>, vector<8x128xf32>
    tpu.vector_store %arg3[%c0_67, %c0_68], %280 {strides = array<i32>} : memref<8x128xf32, #tpu.memory_space<vmem>>, vector<8x128xf32>,
    return
  }
}

</mosaic_0001>

<bundles_post_ra>
// kernel: birnn_forward.1
= control target key start
LH: loop header
LB: loop body
LE: loop exit
PB: predicated region body
PF: predicated region fallthrough
CT: control target
= control target key end

     0   :  { %8 = vsyncpa [#allocation3], 0  ;;  %s5983_s0 = inlined_call_operand.vmem [shape: f32[8,64], index: 0, kind: input, shape index: {}]   ;;  %s5984_s1 = inlined_call_operand.hbm [shape: f32[328,768], index: 1, kind: input, shape index: {}]   ;;  %s5985_s2 = inlined_call_operand.hbm [shape: f32[256,128], index: 2, kind: input, shape index: {}]   ;;  %s5986_s3 = inlined_call_operand.hbm [shape: f32[8,128], index: 3, kind: output, shape index: {}]  }
   0x1   :  { %9 = vsyncpa [#allocation6], 0 }
   0x2   :  { %10 = vsyncpa [#allocation4], 0  ;;  %s4760_s12 = smov [#allocation2]   ;;  %s4688_s16 = scalar_lea.hbm %s5984_s1, 31488 }
   0x3   :  { %s18_s13 = sshll.u32 %s4760_s12, 4  ;;  %p4689_p0 = scmp.ne.s32.totalorder %s5984_s1, %s4688_s16  ;;  %s19_s13 = int_to_ptr.vmem [resolvable:$true] %s18_s13 }
   0x4   :  { %p4692_p1 = scmp.lt.u32.totalorder %s4688_s16, %s5984_s1 }
   0x6   :  { %p4694_p2 = pnand %p4692_p1, %p4689_p0 }
   0x8   :  { %4697 = shalt.err (!%p4694_p2)
}
   0x9   :  { %s4698_s21 = scalar_lea.vmem %s19_s13, 31488  ;;  %p4703_p4 = scmp.lt.s32.totalorder %s19_s13, %s19_s13 }
   0xa   :  { %p4699_p3 = scmp.ne.s32.totalorder %s19_s13, %s4698_s21  ;;  %p4704_p5 = scmp.lt.s32.totalorder %s4698_s21, %s4698_s21 }
   0xc   :  { %p4705_p6 = por %p4704_p5, %p4703_p4 }
   0xe   :  { %p4706_p7 = pnand %p4705_p6, %p4699_p3 }
  0x10   :  { %4709 = shalt.err (!%p4706_p7)
}
  0x11   :  { %s4761_s22 = smov 768   ;;  %s4762_s23 = smov 48  }
  0x12   :  { %24 = dma.hbm_to_vmem [thread:$0]  %s5984_s1, 31488, %s19_s13, [#allocation3], %s4761_s22, %s4761_s22, %s4762_s23  }
  0x13   :  { %s4763_s26 = smov [#allocation5]   ;;  %s4710_s30 = scalar_lea.hbm %s5985_s2, 4096 }
  0x14   :  { %s30_s27 = sshll.u32 %s4763_s26, 4  ;;  %p4711_p8 = scmp.ne.s32.totalorder %s5985_s2, %s4710_s30  ;;  %s31_s27 = int_to_ptr.vmem [resolvable:$true] %s30_s27 }
  0x15   :  { %p4714_p9 = scmp.lt.u32.totalorder %s4710_s30, %s5985_s2 }
  0x17   :  { %p4716_p10 = pnand %p4714_p9, %p4711_p8 }
  0x19   :  { %4719 = shalt.err (!%p4716_p10)
}
  0x1a   :  { %s4720_s8 = scalar_lea.vmem %s31_s27, 4096  ;;  %p4725_p12 = scmp.lt.s32.totalorder %s31_s27, %s31_s27 }
  0x1b   :  { %p4721_p11 = scmp.ne.s32.totalorder %s31_s27, %s4720_s8  ;;  %p4726_p13 = scmp.lt.s32.totalorder %s4720_s8, %s4720_s8 }
  0x1d   :  { %p4727_p0 = por %p4726_p13, %p4725_p12 }
  0x1f   :  { %p4728_p1 = pnand %p4727_p0, %p4721_p11 }
  0x21   :  { %4731 = shalt.err (!%p4728_p1)
}
  0x22   :  { %s4764_s1 = smov 128   ;;  %s4765_s9 = smov 8  }
  0x23   :  { %36 = dma.hbm_to_vmem [thread:$0]  %s5985_s2, 4096, %s31_s27, [#allocation6], %s4764_s1, %s4764_s1, %s4765_s9  }
  0x24   :  { %4754 = dma.done.wait [#allocation3], 31488  }
  0x25   :  { %4755 = vsyncadd [#allocation3], 4294935808 }
  0x26   :  { %4756 = dma.done.wait [#allocation6], 4096  }
  0x27   :  { %4757 = vsyncadd [#allocation6], 4294963200  ;;  %v5987_v0 = vmov 0.0   ;;  %v44_v1 = vld [vmem:[#allocation2 + $0x8] sm:$0xff]  ;;  %v50_v2 = vld [vmem:[#allocation2 + $0x38] sm:$0xff]  ;;  %vm322_vm0 = vcmask 523264  }
  0x28   :  { %461 = vmatprep.mubr.f32.mxu1 %v5987_v0  ;;  %390 = vmatprep.mubr.f32.mxu0 %v5987_v0  ;;  %v46_v3 = vld [vmem:[#allocation2 + $0x18] sm:$0xff]  ;;  %v2968_v4 = vpack.c.bf16 %v50_v2, %v44_v1  ;;  %v52_v5 = vld [vmem:[#allocation2 + $0x48] sm:$0xff]  ;;  %v43_v6 = vld [vmem:[#allocation2] sm:$0xff]  ;;  %vm2772_vm1 = vcmask 1040384   ;;  %vm2774_vm2 = vcmask 1041408   ;;  %vm2776_vm3 = vcmask 1042432  }
  0x29   :  { %v49_v7 = vld [vmem:[#allocation2 + $0x30] sm:$0xff]  ;;  %v2984_v8 = vpack.c.bf16 %v52_v5, %v46_v3  ;;  %v51_v11 = vld [vmem:[#allocation2 + $0x40] sm:$0xff]  ;;  %v56_v12 = vld [vmem:[#allocation2 + $0x68] sm:$0xff]  ;;  %vm2778_vm4 = vcmask 1043456   ;;  %vm2780_vm5 = vcmask 1044480   ;;  %vm2782_vm6 = vcmask 1045504  }
  0x2a   :  { %v2970_v9 = vpack.c.bf16 %v49_v7, %v43_v6  ;;  %v45_v10 = vld [vmem:[#allocation2 + $0x10] sm:$0xff]  ;;  %2969 = vmatprep.subr.bf16.mxu0 %v2968_v4  ;;  %v62_v14 = vld [vmem:[#allocation2 + $0x98] sm:$0xff]  ;;  %v64_v16 = vld [vmem:[#allocation2 + $0xa8] sm:$0xff]  ;;  %vm2784_vm7 = vcmask 1046528  }
  0x2b   :  { %v2986_v13 = vpack.c.bf16 %v51_v11, %v45_v10  ;;  %v58_v15 = vld [vmem:[#allocation2 + $0x78] sm:$0xff]  ;;  %2985 = vmatprep.subr.bf16.mxu1 %v2984_v8  ;;  %v2972_v17 = vpack.c.bf16 %v62_v14, %v56_v12  ;;  %v55_v19 = vld [vmem:[#allocation2 + $0x60] sm:$0xff]  ;;  %v61_v20 = vld [vmem:[#allocation2 + $0x90] sm:$0xff] }
  0x2c   :  { %2971 = vmatpush1.bf16.msra.mxu0 %v2970_v9  ;;  %v2988_v18 = vpack.c.bf16 %v64_v16, %v58_v15  ;;  %v57_v21 = vld [vmem:[#allocation2 + $0x70] sm:$0xff]  ;;  %v2974_v22 = vpack.c.bf16 %v61_v20, %v55_v19  ;;  %v63_v23 = vld [vmem:[#allocation2 + $0xa0] sm:$0xff]  ;;  %v68_v24 = vld [vmem:[#allocation2 + $0xc8] sm:$0xff] }
  0x2d   :  { %2987 = vmatpush1.bf16.msra.mxu1 %v2986_v13  ;;  %v74_v25 = vld [vmem:[#allocation2 + $0xf8] sm:$0xff]  ;;  %2973 = vmatprep.subr.bf16.mxu0 %v2972_v17  ;;  %v2990_v26 = vpack.c.bf16 %v63_v23, %v57_v21  ;;  %v76_v29 = vld [vmem:[#allocation2 + $0x108] sm:$0xff]  ;;  %v67_v30 = vld [vmem:[#allocation2 + $0xc0] sm:$0xff] }
  0x2e   :  { %2989 = vmatprep.subr.bf16.mxu1 %v2988_v18  ;;  %v2976_v27 = vpack.c.bf16 %v74_v25, %v68_v24  ;;  %v70_v28 = vld [vmem:[#allocation2 + $0xd8] sm:$0xff]  ;;  %v73_v32 = vld [vmem:[#allocation2 + $0xf0] sm:$0xff]  ;;  %v75_v34 = vld [vmem:[#allocation2 + $0x100] sm:$0xff] }
  0x2f   :  { %v2992_v31 = vpack.c.bf16 %v76_v29, %v70_v28  ;;  %v69_v33 = vld [vmem:[#allocation2 + $0xd0] sm:$0xff]  ;;  %v2978_v35 = vpack.c.bf16 %v73_v32, %v67_v30  ;;  %v80_v36 = vld [vmem:[#allocation2 + $0x128] sm:$0xff]  ;;  %v86_v37 = vld [vmem:[#allocation2 + $0x158] sm:$0xff] }
  0x30   :  { %2975 = vmatpush1.bf16.msra.mxu0 %v2974_v22  ;;  %v82_v38 = vld [vmem:[#allocation2 + $0x138] sm:$0xff]  ;;  %v2994_v39 = vpack.c.bf16 %v75_v34, %v69_v33  ;;  %v2980_v40 = vpack.c.bf16 %v86_v37, %v80_v36  ;;  %v88_v41 = vld [vmem:[#allocation2 + $0x168] sm:$0xff]  ;;  %v79_v42 = vld [vmem:[#allocation2 + $0x120] sm:$0xff] }
  0x31   :  { %2991 = vmatpush1.bf16.msra.mxu1 %v2990_v26  ;;  %2977 = vmatprep.subr.bf16.mxu0 %v2976_v27  ;;  %v85_v43 = vld [vmem:[#allocation2 + $0x150] sm:$0xff]  ;;  %v2996_v44 = vpack.c.bf16 %v88_v41, %v82_v38  ;;  %v87_v46 = vld [vmem:[#allocation2 + $0x160] sm:$0xff]  ;;  %v48_v47 = vld [vmem:[#allocation2 + $0x28] sm:$0xff] }
  0x32   :  { %2993 = vmatprep.subr.bf16.mxu1 %v2992_v31  ;;  %v81_v45 = vld [vmem:[#allocation2 + $0x130] sm:$0xff]  ;;  %v54_v48 = vld [vmem:[#allocation2 + $0x58] sm:$0xff]  ;;  %v92_v49 = vld [vmem:[#allocation2 + $0x188] sm:$0xff]  ;;  %v2982_v50 = vpack.c.bf16 %v85_v43, %v79_v42 }
  0x33   :  { %v98_v51 = vld [vmem:[#allocation2 + $0x1b8] sm:$0xff]  ;;  %v2998_v52 = vpack.c.bf16 %v87_v46, %v81_v45  ;;  %v3000_v53 = vpack.c.bf16 %v54_v48, %v48_v47  ;;  %v47_v54 = vld [vmem:[#allocation2 + $0x20] sm:$0xff]  ;;  %v53_v55 = vld [vmem:[#allocation2 + $0x50] sm:$0xff] }
  0x34   :  { %2979 = vmatpush1.bf16.msra.mxu0 %v2978_v35  ;;  %v91_v56 = vld [vmem:[#allocation2 + $0x180] sm:$0xff]  ;;  %v4814_v57 = vpack.c.bf16 %v98_v51, %v92_v49  ;;  %v97_v58 = vld [vmem:[#allocation2 + $0x1b0] sm:$0xff]  ;;  %v60_v59 = vld [vmem:[#allocation2 + $0x88] sm:$0xff]  ;;  %v3002_v1 = vpack.c.bf16 %v53_v55, %v47_v54 }
  0x35   :  { %2995 = vmatpush1.bf16.msra.mxu1 %v2994_v39  ;;  %2981 = vmatprep.subr.bf16.mxu0 %v2980_v40  ;;  %v66_v60 = vld [vmem:[#allocation2 + $0xb8] sm:$0xff]  ;;  %v104_v61 = vld [vmem:[#allocation2 + $0x1e8] sm:$0xff]  ;;  %v4819_v63 = vld [vmem:[%s5983_s0] sm:$0xff]  ;;  %v4821_v2 = vpack.c.bf16 %v97_v58, %v91_v56  ;;  %s4767_s0 = smov [#allocation7]  }
  0x36   :  { %2997 = vmatprep.subr.bf16.mxu1 %v2996_v44  ;;  %6151 = vst [vmem:[#allocation11_spill] sm:$0xff] %v4814_v57  ;;  %v110_v62 = vld [vmem:[#allocation2 + $0x218] sm:$0xff]  ;;  %v3004_v3 = vpack.c.bf16 %v66_v60, %v60_v59  ;;  %v59_v4 = vld [vmem:[#allocation2 + $0x80] sm:$0xff]  ;;  %v65_v5 = vld [vmem:[#allocation2 + $0xb0] sm:$0xff]  ;;  %s2920_s13 = sshll.u32 %s4767_s0, 4  ;;  %s2921_s13 = int_to_ptr.vmem [resolvable:$true] %s2920_s13 }
  0x37   :  { %v103_v6 = vld [vmem:[#allocation2 + $0x1e0] sm:$0xff]  ;;  %v4824_v7 = vpack.c.bf16 %v110_v62, %v104_v61  ;;  %v109_v8 = vld [vmem:[#allocation2 + $0x210] sm:$0xff]  ;;  %v72_v9 = vld [vmem:[#allocation2 + $0xe8] sm:$0xff]  ;;  %v3006_v13 = vpack.c.bf16 %v65_v5, %v59_v4  ;;  %s4732_s14 = scalar_lea.vmem %s2921_s13, 128  ;;  %p4737_p3 = scmp.lt.s32.totalorder %s2921_s13, %s2921_s13 }
  0x38   :  { %2983 = vmatpush1.bf16.msra.mxu0 %v2982_v50  ;;  %v78_v10 = vld [vmem:[#allocation2 + $0x118] sm:$0xff]  ;;  %v116_v11 = vld [vmem:[#allocation2 + $0x248] sm:$0xff]  ;;  %v4831_v14 = vpack.c.bf16 %v109_v8, %v103_v6  ;;  %v71_v16 = vld [vmem:[#allocation2 + $0xe0] sm:$0xff]  ;;  %p4733_p2 = scmp.ne.s32.totalorder %s2921_s13, %s4732_s14  ;;  %p4738_p4 = scmp.lt.s32.totalorder %s4732_s14, %s4732_s14 }
  0x39   :  { %2999 = vmatpush1.bf16.msra.mxu1 %v2998_v52  ;;  %3001 = vmatprep.subr.bf16.mxu0 %v3000_v53  ;;  %v122_v12 = vld [vmem:[#allocation2 + $0x278] sm:$0xff]  ;;  %v3008_v15 = vpack.c.bf16 %v78_v10, %v72_v9  ;;  %v77_v17 = vld [vmem:[#allocation2 + $0x110] sm:$0xff]  ;;  %v115_v18 = vld [vmem:[#allocation2 + $0x240] sm:$0xff] }
  0x3a   :  { %3017 = vmatprep.subr.bf16.mxu1 %v4814_v57  ;;  %v4834_v19 = vpack.c.bf16 %v122_v12, %v116_v11  ;;  %v121_v20 = vld [vmem:[#allocation2 + $0x270] sm:$0xff]  ;;  %v84_v21 = vld [vmem:[#allocation2 + $0x148] sm:$0xff]  ;;  %v90_v22 = vld [vmem:[#allocation2 + $0x178] sm:$0xff]  ;;  %v3010_v25 = vpack.c.bf16 %v77_v17, %v71_v16  ;;  %p4739_p5 = por %p4738_p4, %p4737_p3 }
  0x3b   :  { %2930 = vmatmul.mubr.msk.f32.vlgmr.msra.gmra.mrb[0].mxu0 %vm322_vm0, %v4819_v63  ;;  %v128_v23 = vld [vmem:[#allocation2 + $0x2a8] sm:$0xff]  ;;  %v134_v24 = vld [vmem:[#allocation2 + $0x2d8] sm:$0xff]  ;;  %v4839_v26 = vpack.c.bf16 %v121_v20, %v115_v18  ;;  %v3012_v27 = vpack.c.bf16 %v90_v22, %v84_v21  ;;  %v83_v28 = vld [vmem:[#allocation2 + $0x140] sm:$0xff] }
  0x3c   :  { %2931 = vmatmul.mubr.msk.f32.vlgmr.msra.gmra.mrb[0].mxu1 %vm322_vm0, %v4819_v63  ;;  %3003 = vmatpush1.bf16.msra.mxu0 %v3002_v1  ;;  %v89_v29 = vld [vmem:[#allocation2 + $0x170] sm:$0xff]  ;;  %v127_v30 = vld [vmem:[#allocation2 + $0x2a0] sm:$0xff]  ;;  %v4842_v31 = vpack.c.bf16 %v134_v24, %v128_v23  ;;  %v94_v33 = vld [vmem:[#allocation2 + $0x198] sm:$0xff]  ;;  %p4740_p6 = pnand %p4739_p5, %p4733_p2 }
  0x3d   :  { %3019 = vmatpush1.bf16.msra.mxu1 %v4821_v2  ;;  %3005 = vmatprep.subr.bf16.mxu0 %v3004_v3  ;;  %v133_v32 = vld [vmem:[#allocation2 + $0x2d0] sm:$0xff]  ;;  %v100_v34 = vld [vmem:[#allocation2 + $0x1c8] sm:$0xff]  ;;  %v146_v36 = vld [vmem:[#allocation2 + $0x338] sm:$0xff]  ;;  %v3014_v37 = vpack.c.bf16 %v89_v29, %v83_v28 }
  0x3e   :  { %3021 = vmatprep.subr.bf16.mxu1 %v4824_v7  ;;  %532 = vmatprep.mubr.f32.mxu0 %v5987_v0  ;;  %v140_v35 = vld [vmem:[#allocation2 + $0x308] sm:$0xff]  ;;  %v4845_v38 = vpack.c.bf16 %v133_v32, %v127_v30  ;;  %v4847_v39 = vpack.c.bf16 %v100_v34, %v94_v33  ;;  %v139_v40 = vld [vmem:[#allocation2 + $0x300] sm:$0xff]  ;;  %v93_v41 = vld [vmem:[#allocation2 + $0x190] sm:$0xff] }
  0x3f   :  { %603 = vmatprep.mubr.f32.mxu1 %v5987_v0  ;;  %v99_v42 = vld [vmem:[#allocation2 + $0x1c0] sm:$0xff]  ;;  %v4850_v43 = vpack.c.bf16 %v146_v36, %v140_v35  ;;  %v145_v44 = vld [vmem:[#allocation2 + $0x330] sm:$0xff]  ;;  %v106_v45 = vld [vmem:[#allocation2 + $0x1f8] sm:$0xff] }
  0x40   :  { %3007 = vmatpush1.bf16.msra.mxu0 %v3006_v13  ;;  %6152 = vst [vmem:[#allocation12_spill] sm:$0xff] %v4847_v39  ;;  %v112_v46 = vld [vmem:[#allocation2 + $0x228] sm:$0xff]  ;;  %v158_v48 = vld [vmem:[#allocation2 + $0x398] sm:$0xff]  ;;  %v4852_v49 = vpack.c.bf16 %v99_v42, %v93_v41  ;;  %v4856_v50 = vpack.c.bf16 %v145_v44, %v139_v40  ;;  %v151_v52 = vld [vmem:[#allocation2 + $0x360] sm:$0xff] }
  0x41   :  { %3023 = vmatpush1.bf16.msra.mxu1 %v4831_v14  ;;  %3009 = vmatprep.subr.bf16.mxu0 %v3008_v15  ;;  %v152_v47 = vld [vmem:[#allocation2 + $0x368] sm:$0xff]  ;;  %v4858_v51 = vpack.c.bf16 %v112_v46, %v106_v45  ;;  %v105_v53 = vld [vmem:[#allocation2 + $0x1f0] sm:$0xff]  ;;  %v111_v54 = vld [vmem:[#allocation2 + $0x220] sm:$0xff] }
  0x42   :  { %3025 = vmatprep.subr.bf16.mxu1 %v4834_v19  ;;  %6153 = vst [vmem:[#allocation13_spill] sm:$0xff] %v4852_v49  ;;  %v4861_v55 = vpack.c.bf16 %v158_v48, %v152_v47  ;;  %v157_v56 = vld [vmem:[#allocation2 + $0x390] sm:$0xff]  ;;  %v118_v58 = vld [vmem:[#allocation2 + $0x258] sm:$0xff]  ;;  %v124_v59 = vld [vmem:[#allocation2 + $0x288] sm:$0xff]  ;;  %v4866_v62 = vpack.c.bf16 %v111_v54, %v105_v53 }
  0x43   :  { %6154 = vst [vmem:[#allocation14_spill] sm:$0xff] %v4858_v51  ;;  %v164_v60 = vld [vmem:[#allocation2 + $0x3c8] sm:$0xff]  ;;  %v170_v61 = vld [vmem:[#allocation2 + $0x3f8] sm:$0xff]  ;;  %v4871_v1 = vpack.c.bf16 %v157_v56, %v151_v52  ;;  %v4873_v3 = vpack.c.bf16 %v124_v59, %v118_v58  ;;  %v163_v4 = vld [vmem:[#allocation2 + $0x3c0] sm:$0xff] }
  0x44   :  { %3011 = vmatpush1.bf16.msra.mxu0 %v3010_v25  ;;  %6155 = vst [vmem:[#allocation15_spill] sm:$0xff] %v4866_v62  ;;  %v117_v5 = vld [vmem:[#allocation2 + $0x250] sm:$0xff]  ;;  %v123_v6 = vld [vmem:[#allocation2 + $0x280] sm:$0xff]  ;;  %v130_v9 = vld [vmem:[#allocation2 + $0x2b8] sm:$0xff] }
  0x45   :  { %3027 = vmatpush1.bf16.msra.mxu1 %v4839_v26  ;;  %3013 = vmatprep.subr.bf16.mxu0 %v3012_v27  ;;  %6156 = vst [vmem:[#allocation16_spill] sm:$0xff] %v4873_v3  ;;  %v169_v8 = vld [vmem:[#allocation2 + $0x3f0] sm:$0xff]  ;;  %v136_v10 = vld [vmem:[#allocation2 + $0x2e8] sm:$0xff]  ;;  %v182_v12 = vld [vmem:[#allocation2 + $0x458] sm:$0xff]  ;;  %v4879_v13 = vpack.c.bf16 %v123_v6, %v117_v5 }
  0x46   :  { %3029 = vmatprep.subr.bf16.mxu1 %v4842_v31  ;;  %v176_v11 = vld [vmem:[#allocation2 + $0x428] sm:$0xff]  ;;  %v4883_v15 = vpack.c.bf16 %v169_v8, %v163_v4  ;;  %v4885_v16 = vpack.c.bf16 %v136_v10, %v130_v9  ;;  %v175_v17 = vld [vmem:[#allocation2 + $0x420] sm:$0xff]  ;;  %v129_v18 = vld [vmem:[#allocation2 + $0x2b0] sm:$0xff] }
  0x47   :  { %6157 = vst [vmem:[#allocation17_spill] sm:$0xff] %v4879_v13  ;;  %v135_v20 = vld [vmem:[#allocation2 + $0x2e0] sm:$0xff]  ;;  %v4888_v21 = vpack.c.bf16 %v182_v12, %v176_v11  ;;  %v181_v22 = vld [vmem:[#allocation2 + $0x450] sm:$0xff]  ;;  %v142_v23 = vld [vmem:[#allocation2 + $0x318] sm:$0xff] }
  0x48   :  { %3015 = vmatpush1.bf16.msra.mxu0 %v3014_v37  ;;  %6158 = vst [vmem:[#allocation18_spill] sm:$0xff] %v4885_v16  ;;  %v148_v24 = vld [vmem:[#allocation2 + $0x348] sm:$0xff]  ;;  %v194_v27 = vld [vmem:[#allocation2 + $0x4b8] sm:$0xff]  ;;  %v4891_v28 = vpack.c.bf16 %v135_v20, %v129_v18  ;;  %v4895_v29 = vpack.c.bf16 %v181_v22, %v175_v17  ;;  %v187_v32 = vld [vmem:[#allocation2 + $0x480] sm:$0xff] }
  0x49   :  { %3031 = vmatpush1.bf16.msra.mxu1 %v4845_v38  ;;  %3081 = vmatprep.subr.bf16.mxu0 %v4847_v39  ;;  %v188_v25 = vld [vmem:[#allocation2 + $0x488] sm:$0xff]  ;;  %v4897_v30 = vpack.c.bf16 %v148_v24, %v142_v23  ;;  %v141_v33 = vld [vmem:[#allocation2 + $0x310] sm:$0xff]  ;;  %v147_v34 = vld [vmem:[#allocation2 + $0x340] sm:$0xff] }
  0x4a   :  { %3033 = vmatprep.subr.bf16.mxu1 %v4850_v43  ;;  %6159 = vst [vmem:[#allocation19_spill] sm:$0xff] %v4891_v28  ;;  %v4900_v35 = vpack.c.bf16 %v194_v27, %v188_v25  ;;  %v193_v36 = vld [vmem:[#allocation2 + $0x4b0] sm:$0xff]  ;;  %v154_v37 = vld [vmem:[#allocation2 + $0x378] sm:$0xff]  ;;  %v160_v40 = vld [vmem:[#allocation2 + $0x3a8] sm:$0xff]  ;;  %v4903_v44 = vpack.c.bf16 %v147_v34, %v141_v33 }
  0x4b   :  { %2932 = vmatmul.mubr.msk.f32.vlgmr.msra.gmra.mrb[2].mxu0 %vm322_vm0, %v4819_v63  ;;  %v4876_v63 = vpack.c.bf16 %v170_v61, %v164_v60  ;;  %6160 = vst [vmem:[#allocation20_spill] sm:$0xff] %v4897_v30  ;;  %v200_v41 = vld [vmem:[#allocation2 + $0x4e8] sm:$0xff]  ;;  %v206_v42 = vld [vmem:[#allocation2 + $0x518] sm:$0xff]  ;;  %v4907_v45 = vpack.c.bf16 %v193_v36, %v187_v32  ;;  %v4909_v46 = vpack.c.bf16 %v160_v40, %v154_v37  ;;  %v199_v47 = vld [vmem:[#allocation2 + $0x4e0] sm:$0xff] }
  0x4c   :  { %3083 = vmatpush1.bf16.msra.mxu0 %v4852_v49  ;;  %674 = vmatprep.mubr.f32.mxu0 %v5987_v0  ;;  %6161 = vst [vmem:[#allocation21_spill] sm:$0xff] %v4903_v44  ;;  %v153_v48 = vld [vmem:[#allocation2 + $0x370] sm:$0xff]  ;;  %v159_v52 = vld [vmem:[#allocation2 + $0x3a0] sm:$0xff]  ;;  %v4912_v53 = vpack.c.bf16 %v206_v42, %v200_v41  ;;  %v166_v56 = vld [vmem:[#allocation2 + $0x3d8] sm:$0xff] }
  0x4d   :  { %3035 = vmatpush1.bf16.msra.mxu1 %v4856_v50  ;;  %3085 = vmatprep.subr.bf16.mxu0 %v4858_v51  ;;  %6162 = vst [vmem:[#allocation22_spill] sm:$0xff] %v4909_v46  ;;  %v205_v54 = vld [vmem:[#allocation2 + $0x510] sm:$0xff]  ;;  %v172_v58 = vld [vmem:[#allocation2 + $0x408] sm:$0xff]  ;;  %v218_v60 = vld [vmem:[#allocation2 + $0x578] sm:$0xff]  ;;  %v4915_v61 = vpack.c.bf16 %v159_v52, %v153_v48 }
  0x4e   :  { %3037 = vmatprep.subr.bf16.mxu1 %v4861_v55  ;;  %v212_v59 = vld [vmem:[#allocation2 + $0x548] sm:$0xff]  ;;  %v4919_v4 = vpack.c.bf16 %v205_v54, %v199_v47  ;;  %v4921_v5 = vpack.c.bf16 %v172_v58, %v166_v56  ;;  %v211_v6 = vld [vmem:[#allocation2 + $0x540] sm:$0xff]  ;;  %v165_v8 = vld [vmem:[#allocation2 + $0x3d0] sm:$0xff] }
  0x4f   :  { %6163 = vst [vmem:[#allocation23_spill] sm:$0xff] %v4915_v61  ;;  %v171_v9 = vld [vmem:[#allocation2 + $0x400] sm:$0xff]  ;;  %v4924_v10 = vpack.c.bf16 %v218_v60, %v212_v59  ;;  %v217_v11 = vld [vmem:[#allocation2 + $0x570] sm:$0xff]  ;;  %v178_v12 = vld [vmem:[#allocation2 + $0x438] sm:$0xff] }
  0x50   :  { %3087 = vmatpush1.bf16.msra.mxu0 %v4866_v62  ;;  %6164 = vst [vmem:[#allocation24_spill] sm:$0xff] %v4919_v4  ;;  %6165 = vst [vmem:[#allocation25_spill] sm:$0xff] %v4921_v5  ;;  %v184_v17 = vld [vmem:[#allocation2 + $0x468] sm:$0xff]  ;;  %v230_v20 = vld [vmem:[#allocation2 + $0x5d8] sm:$0xff]  ;;  %v4927_v22 = vpack.c.bf16 %v171_v9, %v165_v8  ;;  %v4931_v23 = vpack.c.bf16 %v217_v11, %v211_v6 }
  0x51   :  { %3039 = vmatpush1.bf16.msra.mxu1 %v4871_v1  ;;  %3089 = vmatprep.subr.bf16.mxu0 %v4873_v3  ;;  %6166 = vst [vmem:[#allocation26_spill] sm:$0xff] %v4924_v10  ;;  %v224_v18 = vld [vmem:[#allocation2 + $0x5a8] sm:$0xff]  ;;  %v4933_v24 = vpack.c.bf16 %v184_v17, %v178_v12  ;;  %v223_v25 = vld [vmem:[#allocation2 + $0x5a0] sm:$0xff]  ;;  %v177_v27 = vld [vmem:[#allocation2 + $0x430] sm:$0xff] }
  0x52   :  { %3041 = vmatprep.subr.bf16.mxu1 %v4876_v63  ;;  %6167 = vst [vmem:[#allocation27_spill] sm:$0xff] %v4927_v22  ;;  %6168 = vst [vmem:[#allocation28_spill] sm:$0xff] %v4931_v23  ;;  %v183_v32 = vld [vmem:[#allocation2 + $0x460] sm:$0xff]  ;;  %v4936_v33 = vpack.c.bf16 %v230_v20, %v224_v18  ;;  %v229_v34 = vld [vmem:[#allocation2 + $0x5d0] sm:$0xff] }
  0x53   :  { %6169 = vst [vmem:[#allocation29_spill] sm:$0xff] %v4933_v24  ;;  %v190_v36 = vld [vmem:[#allocation2 + $0x498] sm:$0xff]  ;;  %v196_v37 = vld [vmem:[#allocation2 + $0x4c8] sm:$0xff]  ;;  %v4939_v42 = vpack.c.bf16 %v183_v32, %v177_v27  ;;  %v4943_v47 = vpack.c.bf16 %v229_v34, %v223_v25  ;;  %v235_v52 = vld [vmem:[#allocation2 + $0x600] sm:$0xff] }
  0x54   :  { %3091 = vmatpush1.bf16.msra.mxu0 %v4879_v13  ;;  %6170 = vst [vmem:[#allocation30_spill] sm:$0xff] %v4936_v33  ;;  %v236_v40 = vld [vmem:[#allocation2 + $0x608] sm:$0xff]  ;;  %v242_v41 = vld [vmem:[#allocation2 + $0x638] sm:$0xff]  ;;  %v4945_v48 = vpack.c.bf16 %v196_v37, %v190_v36  ;;  %v189_v54 = vld [vmem:[#allocation2 + $0x490] sm:$0xff] }
  0x55   :  { %3043 = vmatpush1.bf16.msra.mxu1 %v4883_v15  ;;  %3093 = vmatprep.subr.bf16.mxu0 %v4885_v16  ;;  %6171 = vst [vmem:[#allocation31_spill] sm:$0xff] %v4939_v42  ;;  %6172 = vst [vmem:[#allocation32_spill] sm:$0xff] %v4943_v47  ;;  %v195_v56 = vld [vmem:[#allocation2 + $0x4c0] sm:$0xff]  ;;  %v4948_v58 = vpack.c.bf16 %v242_v41, %v236_v40  ;;  %v241_v59 = vld [vmem:[#allocation2 + $0x630] sm:$0xff] }
  0x56   :  { %3045 = vmatprep.subr.bf16.mxu1 %v4888_v21  ;;  %6173 = vst [vmem:[#allocation33_spill] sm:$0xff] %v4945_v48  ;;  %v202_v60 = vld [vmem:[#allocation2 + $0x4f8] sm:$0xff]  ;;  %v208_v6 = vld [vmem:[#allocation2 + $0x528] sm:$0xff]  ;;  %v4951_v11 = vpack.c.bf16 %v195_v56, %v189_v54  ;;  %v4955_v12 = vpack.c.bf16 %v241_v59, %v235_v52  ;;  %v247_v18 = vld [vmem:[#allocation2 + $0x660] sm:$0xff] }
  0x57   :  { %6174 = vst [vmem:[#allocation34_spill] sm:$0xff] %v4948_v58  ;;  %v248_v8 = vld [vmem:[#allocation2 + $0x668] sm:$0xff]  ;;  %v254_v9 = vld [vmem:[#allocation2 + $0x698] sm:$0xff]  ;;  %v4957_v17 = vpack.c.bf16 %v208_v6, %v202_v60  ;;  %v201_v20 = vld [vmem:[#allocation2 + $0x4f0] sm:$0xff] }
  0x58   :  { %3095 = vmatpush1.bf16.msra.mxu0 %v4891_v28  ;;  %6175 = vst [vmem:[#allocation35_spill] sm:$0xff] %v4951_v11  ;;  %6176 = vst [vmem:[#allocation36_spill] sm:$0xff] %v4955_v12  ;;  %v207_v25 = vld [vmem:[#allocation2 + $0x520] sm:$0xff]  ;;  %v4960_v27 = vpack.c.bf16 %v254_v9, %v248_v8  ;;  %v253_v32 = vld [vmem:[#allocation2 + $0x690] sm:$0xff] }
  0x59   :  { %3047 = vmatpush1.bf16.msra.mxu1 %v4895_v29  ;;  %3097 = vmatprep.subr.bf16.mxu0 %v4897_v30  ;;  %6177 = vst [vmem:[#allocation37_spill] sm:$0xff] %v4957_v17  ;;  %v214_v34 = vld [vmem:[#allocation2 + $0x558] sm:$0xff]  ;;  %v220_v36 = vld [vmem:[#allocation2 + $0x588] sm:$0xff]  ;;  %v4963_v41 = vpack.c.bf16 %v207_v25, %v201_v20  ;;  %v4967_v52 = vpack.c.bf16 %v253_v32, %v247_v18  ;;  %v259_v56 = vld [vmem:[#allocation2 + $0x6c0] sm:$0xff] }
  0x5a   :  { %3049 = vmatprep.subr.bf16.mxu1 %v4900_v35  ;;  %6178 = vst [vmem:[#allocation38_spill] sm:$0xff] %v4960_v27  ;;  %v260_v37 = vld [vmem:[#allocation2 + $0x6c8] sm:$0xff]  ;;  %v266_v40 = vld [vmem:[#allocation2 + $0x6f8] sm:$0xff]  ;;  %v4969_v54 = vpack.c.bf16 %v220_v36, %v214_v34  ;;  %v213_v59 = vld [vmem:[#allocation2 + $0x550] sm:$0xff] }
  0x5b   :  { %6179 = vst [vmem:[#allocation39_spill] sm:$0xff] %v4963_v41  ;;  %6180 = vst [vmem:[#allocation40_spill] sm:$0xff] %v4967_v52  ;;  %v219_v60 = vld [vmem:[#allocation2 + $0x580] sm:$0xff]  ;;  %v4972_v6 = vpack.c.bf16 %v266_v40, %v260_v37  ;;  %v265_v8 = vld [vmem:[#allocation2 + $0x6f0] sm:$0xff] }
  0x5c   :  { %3099 = vmatpush1.bf16.msra.mxu0 %v4903_v44  ;;  %6181 = vst [vmem:[#allocation41_spill] sm:$0xff] %v4969_v54  ;;  %v226_v9 = vld [vmem:[#allocation2 + $0x5b8] sm:$0xff]  ;;  %v232_v0 = vld [vmem:[#allocation2 + $0x5e8] sm:$0xff]  ;;  %v4979_v18 = vpack.c.bf16 %v265_v8, %v259_v56  ;;  %v271_v34 = vld [vmem:[#allocation2 + $0x720] sm:$0xff] }
  0x5d   :  { %3051 = vmatpush1.bf16.msra.mxu1 %v4907_v45  ;;  %3101 = vmatprep.subr.bf16.mxu0 %v4909_v46  ;;  %6182 = vst [vmem:[#allocation42_spill] sm:$0xff] %v4972_v6  ;;  %v272_v20 = vld [vmem:[#allocation2 + $0x728] sm:$0xff]  ;;  %v278_v25 = vld [vmem:[#allocation2 + $0x758] sm:$0xff]  ;;  %v4981_v32 = vpack.c.bf16 %v232_v0, %v226_v9  ;;  %v225_v36 = vld [vmem:[#allocation2 + $0x5b0] sm:$0xff] }
  0x5e   :  { %3053 = vmatprep.subr.bf16.mxu1 %v4912_v53  ;;  %6184 = vst [vmem:[#allocation44_spill] sm:$0xff] %v4979_v18  ;;  %v231_v37 = vld [vmem:[#allocation2 + $0x5e0] sm:$0xff]  ;;  %v4984_v40 = vpack.c.bf16 %v278_v25, %v272_v20  ;;  %v237_v8 = vld [vmem:[#allocation2 + $0x610] sm:$0xff]  ;;  %v274_v44 = vld [vmem:[#allocation2 + $0x738] sm:$0xff] }
  0x5f   :  { %6185 = vst [vmem:[#allocation45_spill] sm:$0xff] %v4981_v32  ;;  %v243_v9 = vld [vmem:[#allocation2 + $0x640] sm:$0xff]  ;;  %v125_v46 = vld [vmem:[#allocation2 + $0x290] sm:$0xff] }
  0x60   :  { %3103 = vmatpush1.bf16.msra.mxu0 %v4915_v61  ;;  %6186 = vst [vmem:[#allocation46_spill] sm:$0xff] %v4984_v40  ;;  %v95_v20 = vld [vmem:[#allocation2 + $0x1a0] sm:$0xff]  ;;  %v6195_v61 = vmov 0.0  }
  0x61   :  { %3055 = vmatpush1.bf16.msra.mxu1 %v4919_v4  ;;  %3105 = vmatprep.subr.bf16.mxu0 %v4921_v5  ;;  %v262_v5 = vld [vmem:[#allocation2 + $0x6d8] sm:$0xff] }
  0x62   :  { %3057 = vmatprep.subr.bf16.mxu1 %v4924_v10 }
  0x64   :  { %3107 = vmatpush1.bf16.msra.mxu0 %v4927_v22  ;;  %v4999_v22 = vpack.c.bf16 %v243_v9, %v237_v8  ;;  %v120_v8 = vld [vmem:[#allocation2 + $0x268] sm:$0xff]  ;;  %v126_v9 = vld [vmem:[#allocation2 + $0x298] sm:$0xff] }
  0x65   :  { %3059 = vmatpush1.bf16.msra.mxu1 %v4931_v23  ;;  %3109 = vmatprep.subr.bf16.mxu0 %v4933_v24  ;;  %v250_v24 = vld [vmem:[#allocation2 + $0x678] sm:$0xff] }
  0x66   :  { %3061 = vmatprep.subr.bf16.mxu1 %v4936_v33  ;;  %6191 = vst [vmem:[#allocation51_spill] sm:$0xff] %v4999_v22 }
  0x68   :  { %3111 = vmatpush1.bf16.msra.mxu0 %v4939_v42  ;;  %v4987_v42 = vpack.c.bf16 %v231_v37, %v225_v36  ;;  %v108_v36 = vld [vmem:[#allocation2 + $0x208] sm:$0xff]  ;;  %v114_v37 = vld [vmem:[#allocation2 + $0x238] sm:$0xff] }
  0x69   :  { %3063 = vmatpush1.bf16.msra.mxu1 %v4943_v47  ;;  %3113 = vmatprep.subr.bf16.mxu0 %v4945_v48  ;;  %v238_v48 = vld [vmem:[#allocation2 + $0x618] sm:$0xff] }
  0x6a   :  { %3065 = vmatprep.subr.bf16.mxu1 %v4948_v58  ;;  %6187 = vst [vmem:[#allocation47_spill] sm:$0xff] %v4987_v42 }
  0x6c   :  { %3115 = vmatpush1.bf16.msra.mxu0 %v4951_v11  ;;  %v4975_v11 = vpack.c.bf16 %v219_v60, %v213_v59  ;;  %v96_v59 = vld [vmem:[#allocation2 + $0x1a8] sm:$0xff]  ;;  %v102_v60 = vld [vmem:[#allocation2 + $0x1d8] sm:$0xff] }
  0x6d   :  { %3067 = vmatpush1.bf16.msra.mxu1 %v4955_v12  ;;  %3117 = vmatprep.subr.bf16.mxu0 %v4957_v17  ;;  %v277_v17 = vld [vmem:[#allocation2 + $0x750] sm:$0xff]  ;;  %v4996_v25 = vpack.c.bf16 %v102_v60, %v96_v59  ;;  %v107_v59 = vld [vmem:[#allocation2 + $0x200] sm:$0xff]  ;;  %v5008_v60 = vpack.c.bf16 %v114_v37, %v108_v36 }
  0x6e   :  { %3069 = vmatprep.subr.bf16.mxu1 %v4960_v27  ;;  %6183 = vst [vmem:[#allocation43_spill] sm:$0xff] %v4975_v11  ;;  %v4991_v0 = vpack.c.bf16 %v277_v17, %v271_v34  ;;  %v255_v34 = vld [vmem:[#allocation2 + $0x6a0] sm:$0xff] }
  0x6f   :  { %6190 = vst [vmem:[#allocation50_spill] sm:$0xff] %v4996_v25  ;;  %6194 = vst [vmem:[#allocation54_spill] sm:$0xff] %v5008_v60  ;;  %v267_v36 = vld [vmem:[#allocation2 + $0x700] sm:$0xff] }
  0x70   :  { %3119 = vmatpush1.bf16.msra.mxu0 %v4963_v41  ;;  %v244_v41 = vld [vmem:[#allocation2 + $0x648] sm:$0xff]  ;;  %6188 = vst [vmem:[#allocation48_spill] sm:$0xff] %v4991_v0  ;;  %v119_v37 = vld [vmem:[#allocation2 + $0x260] sm:$0xff] }
  0x71   :  { %3071 = vmatpush1.bf16.msra.mxu1 %v4967_v52  ;;  %3121 = vmatprep.subr.bf16.mxu0 %v4969_v54  ;;  %v4993_v56 = vpack.c.bf16 %v244_v41, %v238_v48  ;;  %v101_v54 = vld [vmem:[#allocation2 + $0x1d0] sm:$0xff] }
  0x72   :  { %3073 = vmatprep.subr.bf16.mxu1 %v4972_v6  ;;  %v5003_v48 = vpack.c.bf16 %v101_v54, %v95_v20  ;;  %v249_v41 = vld [vmem:[#allocation2 + $0x670] sm:$0xff] }
  0x73   :  { %6189 = vst [vmem:[#allocation49_spill] sm:$0xff] %v4993_v56  ;;  %v5012_v54 = vpack.c.bf16 %v255_v34, %v249_v41  ;;  %v261_v20 = vld [vmem:[#allocation2 + $0x6d0] sm:$0xff]  ;;  %v132_v41 = vld [vmem:[#allocation2 + $0x2c8] sm:$0xff]  ;;  %v138_v34 = vld [vmem:[#allocation2 + $0x2f8] sm:$0xff] }
  0x74   :  { %3123 = vmatpush1.bf16.msra.mxu0 %v4975_v11  ;;  %v256_v11 = vld [vmem:[#allocation2 + $0x6a8] sm:$0xff]  ;;  %6192 = vst [vmem:[#allocation52_spill] sm:$0xff] %v5003_v48 }
  0x75   :  { %3075 = vmatpush1.bf16.msra.mxu1 %v4979_v18  ;;  %3125 = vmatprep.subr.bf16.mxu0 %v4981_v32  ;;  %v5005_v17 = vpack.c.bf16 %v256_v11, %v250_v24  ;;  %v113_v32 = vld [vmem:[#allocation2 + $0x230] sm:$0xff]  ;;  %6196 = vst [vmem:[#allocation55_spill] sm:$0xff] %v5012_v54 }
  0x76   :  { %3077 = vmatprep.subr.bf16.mxu1 %v4984_v40  ;;  %v5016_v24 = vpack.c.bf16 %v113_v32, %v107_v59  ;;  %v5025_v32 = vpack.c.bf16 %v267_v36, %v261_v20  ;;  %v273_v59 = vld [vmem:[#allocation2 + $0x730] sm:$0xff] }
  0x77   :  { %6193 = vst [vmem:[#allocation53_spill] sm:$0xff] %v5005_v17  ;;  %v149_v36 = vld [vmem:[#allocation2 + $0x350] sm:$0xff] }
  0x78   :  { %3127 = vmatpush1.bf16.msra.mxu0 %v4987_v42  ;;  %v268_v42 = vld [vmem:[#allocation2 + $0x708] sm:$0xff]  ;;  %6198 = vst [vmem:[#allocation57_spill] sm:$0xff] %v5025_v32 }
  0x79   :  { %3079 = vmatpush1.bf16.msra.mxu1 %v4991_v0  ;;  %3129 = vmatprep.subr.bf16.mxu0 %v4993_v56  ;;  %v5018_v11 = vpack.c.bf16 %v268_v42, %v262_v5  ;;  %v5021_v56 = vpack.c.bf16 %v126_v9, %v120_v8  ;;  %v5029_v5 = vpack.c.bf16 %v125_v46, %v119_v37  ;;  %v279_v8 = vld [vmem:[#allocation2 + $0x760] sm:$0xff]  ;;  %v156_v37 = vld [vmem:[#allocation2 + $0x388] sm:$0xff] }
  0x7a   :  { %3145 = vmatprep.subr.bf16.mxu1 %v4996_v25  ;;  %v5034_v9 = vpack.c.bf16 %v138_v34, %v132_v41  ;;  %v5037_v20 = vpack.c.bf16 %v279_v8, %v273_v59  ;;  %v162_v41 = vld [vmem:[#allocation2 + $0x3b8] sm:$0xff]  ;;  %v161_v59 = vld [vmem:[#allocation2 + $0x3b0] sm:$0xff] }
  0x7b   :  { %6197 = vst [vmem:[#allocation56_spill] sm:$0xff] %v5018_v11 }
  0x7c   :  { %604 = vmatmul.mubr.f32.vlgmr.msra.gmra.mrb[2].mxu1 %v6195_v61  ;;  %3131 = vmatpush1.bf16.msra.mxu0 %v4999_v22  ;;  %v280_v22 = vld [vmem:[#allocation2 + $0x768] sm:$0xff]  ;;  %6200 = vst [vmem:[#allocation59_spill] sm:$0xff] %v5037_v20 }
  0x7d   :  { %3147 = vmatpush1.bf16.msra.mxu1 %v5003_v48  ;;  %3133 = vmatprep.subr.bf16.mxu0 %v5005_v17  ;;  %v5031_v42 = vpack.c.bf16 %v280_v22, %v274_v44  ;;  %v137_v48 = vld [vmem:[#allocation2 + $0x2f0] sm:$0xff]  ;;  %v144_v17 = vld [vmem:[#allocation2 + $0x328] sm:$0xff]  ;;  %v143_v22 = vld [vmem:[#allocation2 + $0x320] sm:$0xff] }
  0x7e   :  { %3149 = vmatprep.subr.bf16.mxu1 %v5008_v60  ;;  %745 = vmatprep.mubr.f32.mxu1 %v6195_v61  ;;  %v131_v60 = vld [vmem:[#allocation2 + $0x2c0] sm:$0xff]  ;;  %v5048_v34 = vpack.c.bf16 %v149_v36, %v143_v22 }
  0x7f   :  { %6199 = vst [vmem:[#allocation58_spill] sm:$0xff] %v5031_v42  ;;  %v5041_v44 = vpack.c.bf16 %v137_v48, %v131_v60  ;;  %v5052_v48 = vpack.c.bf16 %v162_v41, %v156_v37  ;;  %v155_v60 = vld [vmem:[#allocation2 + $0x380] sm:$0xff]  ;;  %v173_v37 = vld [vmem:[#allocation2 + $0x410] sm:$0xff]  ;;  %v180_v41 = vld [vmem:[#allocation2 + $0x448] sm:$0xff] }
  0x80   :  { %3135 = vmatpush1.bf16.msra.mxu0 %v5012_v54  ;;  %v150_v54 = vld [vmem:[#allocation2 + $0x358] sm:$0xff]  ;;  %6203 = vst [vmem:[#allocation62_spill] sm:$0xff] %v5048_v34  ;;  %v5057_v8 = vpack.c.bf16 %v161_v59, %v155_v60  ;;  %v167_v36 = vld [vmem:[#allocation2 + $0x3e0] sm:$0xff] }
  0x81   :  { %3151 = vmatpush1.bf16.msra.mxu1 %v5016_v24  ;;  %3137 = vmatprep.subr.bf16.mxu0 %v5018_v11  ;;  %6201 = vst [vmem:[#allocation60_spill] sm:$0xff] %v5041_v44  ;;  %v5044_v46 = vpack.c.bf16 %v150_v54, %v144_v17  ;;  %6204 = vst [vmem:[#allocation63_spill] sm:$0xff] %v5052_v48  ;;  %v168_v17 = vld [vmem:[#allocation2 + $0x3e8] sm:$0xff]  ;;  %v174_v54 = vld [vmem:[#allocation2 + $0x418] sm:$0xff] }
  0x82   :  { %3153 = vmatprep.subr.bf16.mxu1 %v5021_v56  ;;  %6205 = vst [vmem:[#allocation64_spill] sm:$0xff] %v5057_v8  ;;  %v5061_v22 = vpack.c.bf16 %v174_v54, %v168_v17  ;;  %v179_v59 = vld [vmem:[#allocation2 + $0x440] sm:$0xff]  ;;  %v192_v17 = vld [vmem:[#allocation2 + $0x4a8] sm:$0xff]  ;;  %v198_v54 = vld [vmem:[#allocation2 + $0x4d8] sm:$0xff] }
  0x83   :  { %6202 = vst [vmem:[#allocation61_spill] sm:$0xff] %v5044_v46 }
  0x84   :  { %3139 = vmatpush1.bf16.msra.mxu0 %v5025_v32  ;;  %6206 = vst [vmem:[#allocation65_spill] sm:$0xff] %v5061_v22 }
  0x85   :  { %3155 = vmatpush1.bf16.msra.mxu1 %v5029_v5  ;;  %3141 = vmatprep.subr.bf16.mxu0 %v5031_v42 }
  0x86   :  { %3157 = vmatprep.subr.bf16.mxu1 %v5034_v9 }
  0x88   :  { %3143 = vmatpush1.bf16.msra.mxu0 %v5037_v20 }
  0x89   :  { %3159 = vmatpush1.bf16.msra.mxu1 %v5041_v44  ;;  %3209 = vmatprep.subr.bf16.mxu0 %v4814_v57  ;;  %v5065_v44 = vpack.c.bf16 %v173_v37, %v167_v36  ;;  %v5077_v36 = vpack.c.bf16 %v198_v54, %v192_v17  ;;  %v191_v37 = vld [vmem:[#allocation2 + $0x4a0] sm:$0xff]  ;;  %v216_v17 = vld [vmem:[#allocation2 + $0x568] sm:$0xff]  ;;  %v222_v54 = vld [vmem:[#allocation2 + $0x598] sm:$0xff] }
  0x8a   :  { %3161 = vmatprep.subr.bf16.mxu1 %v5044_v46  ;;  %v186_v46 = vld [vmem:[#allocation2 + $0x478] sm:$0xff] }
  0x8b   :  { %675 = vmatmul.mubr.f32.vlgmr.msra.gmra.mrb[4].mxu0 %v6195_v61  ;;  %6207 = vst [vmem:[#allocation66_spill] sm:$0xff] %v5065_v44  ;;  %v5069_v60 = vpack.c.bf16 %v186_v46, %v180_v41  ;;  %6210 = vst [vmem:[#allocation69_spill] sm:$0xff] %v5077_v36  ;;  %v204_v46 = vld [vmem:[#allocation2 + $0x508] sm:$0xff]  ;;  %v210_v41 = vld [vmem:[#allocation2 + $0x538] sm:$0xff] }
  0x8c   :  { %3211 = vmatpush1.bf16.msra.mxu0 %v4821_v2 }
  0x8d   :  { %3163 = vmatpush1.bf16.msra.mxu1 %v5048_v34  ;;  %3213 = vmatprep.subr.bf16.mxu0 %v4824_v7  ;;  %6208 = vst [vmem:[#allocation67_spill] sm:$0xff] %v5069_v60 }
  0x8e   :  { %3165 = vmatprep.subr.bf16.mxu1 %v5052_v48  ;;  %v185_v48 = vld [vmem:[#allocation2 + $0x470] sm:$0xff] }
  0x8f   :  { %v5073_v34 = vpack.c.bf16 %v185_v48, %v179_v59  ;;  %v5085_v48 = vpack.c.bf16 %v210_v41, %v204_v46  ;;  %v203_v59 = vld [vmem:[#allocation2 + $0x500] sm:$0xff]  ;;  %v228_v46 = vld [vmem:[#allocation2 + $0x5c8] sm:$0xff]  ;;  %v234_v41 = vld [vmem:[#allocation2 + $0x5f8] sm:$0xff] }
  0x90   :  { %3215 = vmatpush1.bf16.msra.mxu0 %v4831_v14 }
  0x91   :  { %3167 = vmatpush1.bf16.msra.mxu1 %v5057_v8  ;;  %3217 = vmatprep.subr.bf16.mxu0 %v4834_v19  ;;  %6209 = vst [vmem:[#allocation68_spill] sm:$0xff] %v5073_v34  ;;  %6212 = vst [vmem:[#allocation71_spill] sm:$0xff] %v5085_v48 }
  0x92   :  { %3169 = vmatprep.subr.bf16.mxu1 %v5061_v22  ;;  %v197_v22 = vld [vmem:[#allocation2 + $0x4d0] sm:$0xff] }
  0x93   :  { %v5081_v8 = vpack.c.bf16 %v197_v22, %v191_v37  ;;  %v5093_v22 = vpack.c.bf16 %v222_v54, %v216_v17  ;;  %v215_v37 = vld [vmem:[#allocation2 + $0x560] sm:$0xff]  ;;  %v240_v17 = vld [vmem:[#allocation2 + $0x628] sm:$0xff]  ;;  %v246_v54 = vld [vmem:[#allocation2 + $0x658] sm:$0xff] }
  0x94   :  { %3219 = vmatpush1.bf16.msra.mxu0 %v4839_v26 }
  0x95   :  { %3171 = vmatpush1.bf16.msra.mxu1 %v5065_v44  ;;  %3221 = vmatprep.subr.bf16.mxu0 %v4842_v31  ;;  %6211 = vst [vmem:[#allocation70_spill] sm:$0xff] %v5081_v8  ;;  %6214 = vst [vmem:[#allocation73_spill] sm:$0xff] %v5093_v22 }
  0x96   :  { %3173 = vmatprep.subr.bf16.mxu1 %v5069_v60  ;;  %v209_v60 = vld [vmem:[#allocation2 + $0x530] sm:$0xff] }
  0x97   :  { %v5089_v44 = vpack.c.bf16 %v209_v60, %v203_v59  ;;  %v5101_v60 = vpack.c.bf16 %v234_v41, %v228_v46  ;;  %v227_v59 = vld [vmem:[#allocation2 + $0x5c0] sm:$0xff]  ;;  %v252_v46 = vld [vmem:[#allocation2 + $0x688] sm:$0xff]  ;;  %v258_v41 = vld [vmem:[#allocation2 + $0x6b8] sm:$0xff] }
  0x98   :  { %3223 = vmatpush1.bf16.msra.mxu0 %v4845_v38 }
  0x99   :  { %3175 = vmatpush1.bf16.msra.mxu1 %v5073_v34  ;;  %3225 = vmatprep.subr.bf16.mxu0 %v4850_v43  ;;  %6213 = vst [vmem:[#allocation72_spill] sm:$0xff] %v5089_v44  ;;  %6216 = vst [vmem:[#allocation75_spill] sm:$0xff] %v5101_v60 }
  0x9a   :  { %3177 = vmatprep.subr.bf16.mxu1 %v5077_v36  ;;  %v221_v36 = vld [vmem:[#allocation2 + $0x590] sm:$0xff] }
  0x9b   :  { %v5097_v34 = vpack.c.bf16 %v221_v36, %v215_v37  ;;  %v5109_v36 = vpack.c.bf16 %v246_v54, %v240_v17  ;;  %v239_v37 = vld [vmem:[#allocation2 + $0x620] sm:$0xff]  ;;  %v264_v17 = vld [vmem:[#allocation2 + $0x6e8] sm:$0xff]  ;;  %v270_v54 = vld [vmem:[#allocation2 + $0x718] sm:$0xff] }
  0x9c   :  { %3227 = vmatpush1.bf16.msra.mxu0 %v4856_v50 }
  0x9d   :  { %3179 = vmatpush1.bf16.msra.mxu1 %v5081_v8  ;;  %3229 = vmatprep.subr.bf16.mxu0 %v4861_v55  ;;  %6215 = vst [vmem:[#allocation74_spill] sm:$0xff] %v5097_v34  ;;  %6218 = vst [vmem:[#allocation77_spill] sm:$0xff] %v5109_v36 }
  0x9e   :  { %3181 = vmatprep.subr.bf16.mxu1 %v5085_v48  ;;  %v233_v48 = vld [vmem:[#allocation2 + $0x5f0] sm:$0xff] }
  0x9f   :  { %v5105_v8 = vpack.c.bf16 %v233_v48, %v227_v59  ;;  %v5117_v48 = vpack.c.bf16 %v258_v41, %v252_v46  ;;  %v251_v59 = vld [vmem:[#allocation2 + $0x680] sm:$0xff]  ;;  %v276_v46 = vld [vmem:[#allocation2 + $0x748] sm:$0xff]  ;;  %v282_v41 = vld [vmem:[#allocation2 + $0x778] sm:$0xff] }
  0xa0   :  { %3231 = vmatpush1.bf16.msra.mxu0 %v4871_v1 }
  0xa1   :  { %3183 = vmatpush1.bf16.msra.mxu1 %v5089_v44  ;;  %3233 = vmatprep.subr.bf16.mxu0 %v4876_v63  ;;  %6217 = vst [vmem:[#allocation76_spill] sm:$0xff] %v5105_v8  ;;  %6220 = vst [vmem:[#allocation79_spill] sm:$0xff] %v5117_v48 }
  0xa2   :  { %3185 = vmatprep.subr.bf16.mxu1 %v5093_v22  ;;  %v245_v22 = vld [vmem:[#allocation2 + $0x650] sm:$0xff] }
  0xa3   :  { %v5113_v44 = vpack.c.bf16 %v245_v22, %v239_v37  ;;  %v5125_v22 = vpack.c.bf16 %v270_v54, %v264_v17  ;;  %v263_v37 = vld [vmem:[#allocation2 + $0x6e0] sm:$0xff]  ;;  %v6229_v54 = vld [vmem:[#allocation25_spill] sm:$0xff] }
  0xa4   :  { %3235 = vmatpush1.bf16.msra.mxu0 %v4883_v15 }
  0xa5   :  { %3187 = vmatpush1.bf16.msra.mxu1 %v5097_v34  ;;  %3237 = vmatprep.subr.bf16.mxu0 %v4888_v21  ;;  %6219 = vst [vmem:[#allocation78_spill] sm:$0xff] %v5113_v44  ;;  %6222 = vst [vmem:[#allocation81_spill] sm:$0xff] %v5125_v22 }
  0xa6   :  { %3189 = vmatprep.subr.bf16.mxu1 %v5101_v60  ;;  %v257_v60 = vld [vmem:[#allocation2 + $0x6b0] sm:$0xff] }
  0xa7   :  { %v5121_v34 = vpack.c.bf16 %v257_v60, %v251_v59  ;;  %v5133_v60 = vpack.c.bf16 %v282_v41, %v276_v46  ;;  %v275_v59 = vld [vmem:[#allocation2 + $0x740] sm:$0xff]  ;;  %v6231_v46 = vld [vmem:[#allocation29_spill] sm:$0xff]  ;;  %v6232_v41 = vld [vmem:[#allocation31_spill] sm:$0xff] }
  0xa8   :  { %3239 = vmatpush1.bf16.msra.mxu0 %v4895_v29 }
  0xa9   :  { %3191 = vmatpush1.bf16.msra.mxu1 %v5105_v8  ;;  %3241 = vmatprep.subr.bf16.mxu0 %v4900_v35  ;;  %6221 = vst [vmem:[#allocation80_spill] sm:$0xff] %v5121_v34  ;;  %6224 = vst [vmem:[#allocation83_spill] sm:$0xff] %v5133_v60 }
  0xaa   :  { %3193 = vmatprep.subr.bf16.mxu1 %v5109_v36  ;;  %v269_v36 = vld [vmem:[#allocation2 + $0x710] sm:$0xff] }
  0xab   :  { %v5129_v8 = vpack.c.bf16 %v269_v36, %v263_v37  ;;  %v6227_v36 = vld [vmem:[#allocation22_spill] sm:$0xff]  ;;  %v6230_v37 = vld [vmem:[#allocation27_spill] sm:$0xff] }
  0xac   :  { %3243 = vmatpush1.bf16.msra.mxu0 %v4907_v45 }
  0xad   :  { %3195 = vmatpush1.bf16.msra.mxu1 %v5113_v44  ;;  %3245 = vmatprep.subr.bf16.mxu0 %v4912_v53  ;;  %6223 = vst [vmem:[#allocation82_spill] sm:$0xff] %v5129_v8 }
  0xae   :  { %3197 = vmatprep.subr.bf16.mxu1 %v5117_v48  ;;  %v281_v48 = vld [vmem:[#allocation2 + $0x770] sm:$0xff] }
  0xaf   :  { %v5137_v17 = vpack.c.bf16 %v281_v48, %v275_v59  ;;  %v6228_v48 = vld [vmem:[#allocation23_spill] sm:$0xff]  ;;  %v6233_v59 = vld [vmem:[#allocation33_spill] sm:$0xff] }
  0xb0   :  { %3247 = vmatpush1.bf16.msra.mxu0 %v4919_v4 }
  0xb1   :  { %3199 = vmatpush1.bf16.msra.mxu1 %v5121_v34  ;;  %3249 = vmatprep.subr.bf16.mxu0 %v4924_v10  ;;  %6225 = vst [vmem:[#allocation84_spill] sm:$0xff] %v5137_v17 }
  0xb2   :  { %3201 = vmatprep.subr.bf16.mxu1 %v5125_v22 }
  0xb4   :  { %3251 = vmatpush1.bf16.msra.mxu0 %v4931_v23 }
  0xb5   :  { %3203 = vmatpush1.bf16.msra.mxu1 %v5129_v8  ;;  %3253 = vmatprep.subr.bf16.mxu0 %v4936_v33 }
  0xb6   :  { %3205 = vmatprep.subr.bf16.mxu1 %v5133_v60 }
  0xb8   :  { %3255 = vmatpush1.bf16.msra.mxu0 %v4943_v47 }
  0xb9   :  { %3207 = vmatpush1.bf16.msra.mxu1 %v5137_v17  ;;  %3257 = vmatprep.subr.bf16.mxu0 %v4948_v58 }
  0xba   :  { %3273 = vmatprep.subr.bf16.mxu1 %v4847_v39 }
  0xbc   :  { %746 = vmatmul.mubr.f32.vlgmr.msra.gmra.mrb[4].mxu1 %v6195_v61  ;;  %3259 = vmatpush1.bf16.msra.mxu0 %v4955_v12  ;;  %v6226_v61 = vld [vmem:[#allocation21_spill] sm:$0xff] }
  0xbd   :  { %3275 = vmatpush1.bf16.msra.mxu1 %v4852_v49  ;;  %3261 = vmatprep.subr.bf16.mxu0 %v4960_v27 }
  0xbe   :  { %3277 = vmatprep.subr.bf16.mxu1 %v4858_v51 }
  0xc0   :  { %3263 = vmatpush1.bf16.msra.mxu0 %v4967_v52 }
  0xc1   :  { %3279 = vmatpush1.bf16.msra.mxu1 %v4866_v62  ;;  %3265 = vmatprep.subr.bf16.mxu0 %v4972_v6 }
  0xc2   :  { %3281 = vmatprep.subr.bf16.mxu1 %v4873_v3 }
  0xc4   :  { %3267 = vmatpush1.bf16.msra.mxu0 %v4979_v18 }
  0xc5   :  { %3283 = vmatpush1.bf16.msra.mxu1 %v4879_v13  ;;  %3269 = vmatprep.subr.bf16.mxu0 %v4984_v40  ;;  %v284_v13 = vld [vmem:[#allocation2 + $0x780] ss:$8 sm:$0xf] }
  0xc6   :  { %3285 = vmatprep.subr.bf16.mxu1 %v4885_v16  ;;  %v6235_v16 = vld [vmem:[#allocation37_spill] sm:$0xff] }
  0xc8   :  { %3271 = vmatpush1.bf16.msra.mxu0 %v4991_v0 }
  0xc9   :  { %3287 = vmatpush1.bf16.msra.mxu1 %v4891_v28  ;;  %3337 = vmatprep.subr.bf16.mxu0 %v4996_v25  ;;  %v6234_v28 = vld [vmem:[#allocation35_spill] sm:$0xff] }
  0xca   :  { %3289 = vmatprep.subr.bf16.mxu1 %v4897_v30  ;;  %v6236_v30 = vld [vmem:[#allocation39_spill] sm:$0xff] }
  0xcd   :  { %3291 = vmatpush1.bf16.msra.mxu1 %v6226_v61  ;;  %v6237_v61 = vld [vmem:[#allocation41_spill] sm:$0xff] }
  0xce   :  { %3293 = vmatprep.subr.bf16.mxu1 %v6227_v36  ;;  %v6238_v36 = vld [vmem:[#allocation43_spill] sm:$0xff] }
  0xd1   :  { %3295 = vmatpush1.bf16.msra.mxu1 %v6228_v48  ;;  %v6239_v48 = vld [vmem:[#allocation45_spill] sm:$0xff] }
  0xd2   :  { %3297 = vmatprep.subr.bf16.mxu1 %v6229_v54  ;;  %v6240_v54 = vld [vmem:[#allocation47_spill] sm:$0xff] }
  0xd5   :  { %3299 = vmatpush1.bf16.msra.mxu1 %v6230_v37  ;;  %v6241_v37 = vld [vmem:[#allocation49_spill] sm:$0xff] }
  0xd6   :  { %3301 = vmatprep.subr.bf16.mxu1 %v6231_v46  ;;  %v6242_v46 = vld [vmem:[#allocation51_spill] sm:$0xff] }
  0xd9   :  { %3303 = vmatpush1.bf16.msra.mxu1 %v6232_v41  ;;  %v6243_v41 = vld [vmem:[#allocation53_spill] sm:$0xff] }
  0xda   :  { %3305 = vmatprep.subr.bf16.mxu1 %v6233_v59  ;;  %v6244_v59 = vld [vmem:[#allocation55_spill] sm:$0xff] }
  0xdd   :  { %3307 = vmatpush1.bf16.msra.mxu1 %v6234_v28  ;;  %v292_v28 = vlaneseq }
  0xde   :  { %3309 = vmatprep.subr.bf16.mxu1 %v6235_v16 }
  0xe1   :  { %3311 = vmatpush1.bf16.msra.mxu1 %v6236_v30 }
  0xe2   :  { %3313 = vmatprep.subr.bf16.mxu1 %v6237_v61 }
  0xe5   :  { %3315 = vmatpush1.bf16.msra.mxu1 %v6238_v36 }
  0xe6   :  { %3317 = vmatprep.subr.bf16.mxu1 %v6239_v48 }
  0xe9   :  { %3319 = vmatpush1.bf16.msra.mxu1 %v6240_v54 }
  0xea   :  { %3321 = vmatprep.subr.bf16.mxu1 %v6241_v37 }
  0xed   :  { %3323 = vmatpush1.bf16.msra.mxu1 %v6242_v46 }
  0xee   :  { %3325 = vmatprep.subr.bf16.mxu1 %v6243_v41 }
  0xf1   :  { %3327 = vmatpush1.bf16.msra.mxu1 %v6244_v59 }
  0xf2   :  { %3329 = vmatprep.subr.bf16.mxu1 %v5018_v11  ;;  %v293_v11 = vshrl.u32 %v292_v28, 7 }
  0xf4   :  { %v294_v3 = vsub.s32 0, %v293_v11  ;;  %v302_v40 = vsub.s32 2, %v293_v11  ;;  %v306_v18 = vsub.s32 3, %v293_v11 }
  0xf5   :  { %3331 = vmatpush1.bf16.msra.mxu1 %v5025_v32  ;;  %v285_v32 = vld [vmem:[#allocation2 + $0x780] ss:$8 sm:$0x30] }
  0xf6   :  { %3333 = vmatprep.subr.bf16.mxu1 %v5031_v42  ;;  %v298_v42 = vsub.s32 1, %v293_v11  ;;  %v286_v62 = vor.u32 %v285_v32, %v284_v13 }
  0xf8   :  { %v299_v51 = vrot.slane %v286_v62, %v298_v42  ;;  %v303_v28 = vrot.slane %v286_v62, %v302_v40  ;;  %v307_v60 = vrot.slane %v286_v62, %v306_v18 }
  0xf9   :  { %3335 = vmatpush1.bf16.msra.mxu1 %v5037_v20  ;;  %v295_v20 = vrot.slane %v286_v62, %v294_v3 }
  0xfa   :  { %3401 = vmatprep.subr.bf16.mxu1 %v4814_v57 }
 0x10e   :  { %v392_v48 = vpop.f32.mrb[0].mxu0 }
 0x10f   :  { %v463_v54 = vpop.f32.mrb[0].mxu1  ;;  %v394_v36 = vpop.f32.mrb[1].mxu0  ;;  %v5186_v57 = vadd.f32 %v392_v48, %v295_v20  ;;  %v288_v20 = vld [vmem:[#allocation2 + $0x781] ss:$8 sm:$0x3]  ;;  %v310_v48 = vsub.s32 4, %v293_v11 }
 0x110   :  { %v465_v37 = vpop.f32.mrb[1].mxu1  ;;  %v5188_v49 = vadd.f32 %v394_v36, %v299_v51  ;;  %v5192_v8 = vadd.f32 %v463_v54, %v303_v28 }
 0x111   :  { %6245 = vst [vmem:[#allocation85_spill] sm:$0xff] %v5186_v57  ;;  %v5194_v13 = vadd.f32 %v465_v37, %v307_v60  ;;  %v311_v54 = vrot.slane %v286_v62, %v310_v48 }
 0x112   :  { %6246 = vst [vmem:[#allocation86_spill] sm:$0xff] %v5188_v49  ;;  %6247 = vst [vmem:[#allocation87_spill] sm:$0xff] %v5192_v8 }
 0x11e   :  { %v534_v61 = vpop.f32.mrb[2].mxu0 }
 0x11f   :  { %v536_v46 = vpop.f32.mrb[3].mxu0 }
 0x14f   :  { %v605_v30 = vpop.f32.mrb[2].mxu1 }
 0x150   :  { %v607_v41 = vpop.f32.mrb[3].mxu1  ;;  %v752_v25 = vadd.f32 %v605_v30, %v5186_v57 }
 0x151   :  { %v753_v0 = vadd.f32 %v607_v41, %v5188_v49 }
 0x152   :  { %v754_v39 = vmul.f32 0.5, %v752_v25  ;;  %v314_v25 = vsub.s32 5, %v293_v11 }
 0x153   :  { %v755_v17 = vmul.f32 0.5, %v753_v0  ;;  %v5198_v0 = vrot.slane %v288_v20, %v294_v3  ;;  %v5204_v3 = vadd.f32 %v534_v61, %v311_v54 }
 0x154   :  { %4592 = vtanh.f32 %v754_v39  ;;  %v315_v60 = vrot.slane %v286_v62, %v314_v25 }
 0x155   :  { %4594 = vtanh.f32 %v755_v17  ;;  %v5200_v17 = vrot.slane %v288_v20, %v298_v42 }
 0x15e   :  { %v676_v16 = vpop.f32.mrb[4].mxu0  ;;  %v4593_v51 = vpop.eup %4592 }
 0x15f   :  { %v678_v59 = vpop.f32.mrb[5].mxu0  ;;  %v762_v32 = vadd.f32 %v676_v16, %v5192_v8  ;;  %v4595_v36 = vpop.eup %4594  ;;  %v758_v41 = vmul.f32 0.5, %v4593_v51 }
 0x160   :  { %v763_v30 = vadd.f32 %v678_v59, %v5194_v13  ;;  %v759_v18 = vmul.f32 0.5, %v4595_v36 }
 0x161   :  { %v764_v39 = vmul.f32 0.5, %v762_v32  ;;  %v760_v16 = vadd.f32 0.5, %v758_v41  ;;  %v5206_v32 = vadd.f32 %v536_v46, %v315_v60 }
 0x162   :  { %v765_v40 = vmul.f32 0.5, %v763_v30  ;;  %v761_v59 = vadd.f32 0.5, %v759_v18 }
 0x163   :  { %4596 = vtanh.f32 %v764_v39 }
 0x164   :  { %4598 = vtanh.f32 %v765_v40 }
 0x16d   :  { %v4597_v30 = vpop.eup %4596 }
 0x16e   :  { %v4599_v36 = vpop.eup %4598  ;;  %v768_v48 = vmul.f32 0.5, %v4597_v30  ;;  %v6258_v30 = vld [vmem:[#allocation66_spill] sm:$0xff] }
 0x16f   :  { %v769_v25 = vmul.f32 0.5, %v4599_v36  ;;  %v6259_v36 = vld [vmem:[#allocation67_spill] sm:$0xff] }
 0x170   :  { %v770_v18 = vadd.f32 0.5, %v768_v48  ;;  %v6260_v48 = vld [vmem:[#allocation68_spill] sm:$0xff] }
 0x171   :  { %v771_v61 = vadd.f32 0.5, %v769_v25  ;;  %v6261_v25 = vld [vmem:[#allocation69_spill] sm:$0xff] }
 0x18f   :  { %v747_v37 = vpop.f32.mrb[4].mxu1 }
 0x190   :  { %v783_v28 = vadd.f32 %v5198_v0, %v747_v37  ;;  %v749_v8 = vpop.f32.mrb[5].mxu1 }
 0x191   :  { %v784_v11 = vadd.f32 %v5200_v17, %v749_v8 }
 0x192   :  { %v785_v51 = vmul.f32 %v783_v28, %v760_v16  ;;  %v6250_v16 = vld [vmem:[#allocation52_spill] sm:$0xff]  ;;  %v6251_v28 = vld [vmem:[#allocation54_spill] sm:$0xff] }
 0x193   :  { %v786_v42 = vmul.f32 %v784_v11, %v761_v59  ;;  %v6252_v59 = vld [vmem:[#allocation60_spill] sm:$0xff]  ;;  %v6253_v11 = vld [vmem:[#allocation61_spill] sm:$0xff] }
 0x194   :  { %v787_v20 = vadd.f32 %v785_v51, %v5204_v3  ;;  %v6254_v51 = vld [vmem:[#allocation62_spill] sm:$0xff] }
 0x195   :  { %v788_v62 = vadd.f32 %v786_v42, %v5206_v32  ;;  %v6255_v42 = vld [vmem:[#allocation63_spill] sm:$0xff] }
 0x196   :  { %4600 = vtanh.f32 %v787_v20  ;;  %v6256_v20 = vld [vmem:[#allocation64_spill] sm:$0xff] }
 0x197   :  { %4602 = vtanh.f32 %v788_v62  ;;  %v6257_v62 = vld [vmem:[#allocation65_spill] sm:$0xff] }
 0x1a0   :  { %v4601_v41 = vpop.eup %4600 }
 0x1a1   :  { %v4603_v39 = vpop.eup %4602  ;;  %v791_v8 = vsub.f32 0.0, %v4601_v41 }
 0x1a2   :  { %v792_v40 = vsub.f32 0.0, %v4603_v39 }
 0x1a3   :  { %v793_v54 = vmul.f32 %v791_v8, %v770_v18  ;;  %v6264_v18 = vld [vmem:[#allocation72_spill] sm:$0xff]  ;;  %v6265_v8 = vld [vmem:[#allocation73_spill] sm:$0xff] }
 0x1a4   :  { %v794_v46 = vmul.f32 %v792_v40, %v771_v61  ;;  %v6266_v61 = vld [vmem:[#allocation74_spill] sm:$0xff]  ;;  %v6267_v40 = vld [vmem:[#allocation75_spill] sm:$0xff] }
 0x1a5   :  { %v5210_v60 = vadd.f32 %v4601_v41, %v793_v54  ;;  %v6262_v41 = vld [vmem:[#allocation70_spill] sm:$0xff]  ;;  %v6268_v54 = vld [vmem:[#allocation76_spill] sm:$0xff] }
 0x1a6   :  { %v5212_v37 = vadd.f32 %v4603_v39, %v794_v46  ;;  %v6263_v39 = vld [vmem:[#allocation71_spill] sm:$0xff]  ;;  %v6269_v46 = vld [vmem:[#allocation77_spill] sm:$0xff] }
 0x1a7   :  { %6248 = vst [vmem:[#allocation88_spill] sm:$0xff] %v5210_v60 }
 0x1a8   :  { %6249 = vst [vmem:[#allocation89_spill] sm:$0xff] %v5212_v37  ;;  %861 = vmatprep.mubr.f32.mxu0 %v5212_v37  ;;  %932 = vmatprep.mubr.f32.mxu1 %v5212_v37 }
 0x1a9   :  { %862 = vmatmul.mubr.f32.vlgmr.msra.gmra.mrb[6].mxu0 %v5210_v60  ;;  %933 = vmatmul.mubr.f32.vlgmr.msra.gmra.mrb[6].mxu1 %v5210_v60 }
 0x1aa   :  { %3339 = vmatpush1.bf16.msra.mxu0 %v6250_v16  ;;  %1003 = vmatprep.mubr.f32.mxu0 %v5212_v37 }
 0x1ab   :  { %3341 = vmatprep.subr.bf16.mxu0 %v6251_v28  ;;  %3403 = vmatpush1.bf16.msra.mxu1 %v4821_v2 }
 0x1ac   :  { %3405 = vmatprep.subr.bf16.mxu1 %v4824_v7 }
 0x1ae   :  { %3343 = vmatpush1.bf16.msra.mxu0 %v5016_v24 }
 0x1af   :  { %3345 = vmatprep.subr.bf16.mxu0 %v5021_v56  ;;  %3407 = vmatpush1.bf16.msra.mxu1 %v4831_v14 }
 0x1b0   :  { %3409 = vmatprep.subr.bf16.mxu1 %v4834_v19 }
 0x1b2   :  { %3347 = vmatpush1.bf16.msra.mxu0 %v5029_v5 }
 0x1b3   :  { %3349 = vmatprep.subr.bf16.mxu0 %v5034_v9  ;;  %3411 = vmatpush1.bf16.msra.mxu1 %v4839_v26 }
 0x1b4   :  { %3413 = vmatprep.subr.bf16.mxu1 %v4842_v31 }
 0x1b6   :  { %3351 = vmatpush1.bf16.msra.mxu0 %v6252_v59 }
 0x1b7   :  { %3353 = vmatprep.subr.bf16.mxu0 %v6253_v11  ;;  %3415 = vmatpush1.bf16.msra.mxu1 %v4845_v38 }
 0x1b8   :  { %3417 = vmatprep.subr.bf16.mxu1 %v4850_v43 }
 0x1ba   :  { %3355 = vmatpush1.bf16.msra.mxu0 %v6254_v51 }
 0x1bb   :  { %3357 = vmatprep.subr.bf16.mxu0 %v6255_v42  ;;  %3419 = vmatpush1.bf16.msra.mxu1 %v4856_v50 }
 0x1bc   :  { %3421 = vmatprep.subr.bf16.mxu1 %v4861_v55 }
 0x1be   :  { %3359 = vmatpush1.bf16.msra.mxu0 %v6256_v20 }
 0x1bf   :  { %3361 = vmatprep.subr.bf16.mxu0 %v6257_v62  ;;  %3423 = vmatpush1.bf16.msra.mxu1 %v4871_v1 }
 0x1c0   :  { %3425 = vmatprep.subr.bf16.mxu1 %v4876_v63 }
 0x1c2   :  { %3363 = vmatpush1.bf16.msra.mxu0 %v6258_v30 }
 0x1c3   :  { %3365 = vmatprep.subr.bf16.mxu0 %v6259_v36  ;;  %3427 = vmatpush1.bf16.msra.mxu1 %v4883_v15 }
 0x1c4   :  { %3429 = vmatprep.subr.bf16.mxu1 %v4888_v21 }
 0x1c6   :  { %3367 = vmatpush1.bf16.msra.mxu0 %v6260_v48 }
 0x1c7   :  { %3369 = vmatprep.subr.bf16.mxu0 %v6261_v25  ;;  %3431 = vmatpush1.bf16.msra.mxu1 %v4895_v29 }
 0x1c8   :  { %3433 = vmatprep.subr.bf16.mxu1 %v4900_v35 }
 0x1ca   :  { %3371 = vmatpush1.bf16.msra.mxu0 %v6262_v41 }
 0x1cb   :  { %3373 = vmatprep.subr.bf16.mxu0 %v6263_v39  ;;  %3435 = vmatpush1.bf16.msra.mxu1 %v4907_v45 }
 0x1cc   :  { %3437 = vmatprep.subr.bf16.mxu1 %v4912_v53 }
 0x1ce   :  { %3375 = vmatpush1.bf16.msra.mxu0 %v6264_v18 }
 0x1cf   :  { %3377 = vmatprep.subr.bf16.mxu0 %v6265_v8  ;;  %3439 = vmatpush1.bf16.msra.mxu1 %v4919_v4  ;;  %v6270_v4 = vld [vmem:[#allocation79_spill] sm:$0xff] }
 0x1d0   :  { %3441 = vmatprep.subr.bf16.mxu1 %v4924_v10 }
 0x1d2   :  { %3379 = vmatpush1.bf16.msra.mxu0 %v6266_v61  ;;  %v6311_v61 = vld [vmem:[#allocation87_spill] sm:$0xff] }
 0x1d3   :  { %3381 = vmatprep.subr.bf16.mxu0 %v6267_v40  ;;  %3443 = vmatpush1.bf16.msra.mxu1 %v4931_v23 }
 0x1d4   :  { %3445 = vmatprep.subr.bf16.mxu1 %v4936_v33 }
 0x1d6   :  { %3383 = vmatpush1.bf16.msra.mxu0 %v6268_v54 }
 0x1d7   :  { %3385 = vmatprep.subr.bf16.mxu0 %v6269_v46  ;;  %3447 = vmatpush1.bf16.msra.mxu1 %v4943_v47  ;;  %v6271_v46 = vld [vmem:[#allocation82_spill] sm:$0xff]  ;;  %v6272_v47 = vld [vmem:[#allocation83_spill] sm:$0xff] }
 0x1d8   :  { %3449 = vmatprep.subr.bf16.mxu1 %v4948_v58  ;;  %v6273_v58 = vld [vmem:[#allocation44_spill] sm:$0xff] }
 0x1da   :  { %3387 = vmatpush1.bf16.msra.mxu0 %v5113_v44  ;;  %v6274_v44 = vld [vmem:[#allocation46_spill] sm:$0xff] }
 0x1db   :  { %3389 = vmatprep.subr.bf16.mxu0 %v6270_v4  ;;  %3451 = vmatpush1.bf16.msra.mxu1 %v4955_v12  ;;  %v6275_v4 = vld [vmem:[#allocation84_spill] sm:$0xff] }
 0x1dc   :  { %3453 = vmatprep.subr.bf16.mxu1 %v4960_v27  ;;  %v6276_v12 = vld [vmem:[#allocation12_spill] sm:$0xff] }
 0x1dd   :  { %v6277_v27 = vld [vmem:[#allocation48_spill] sm:$0xff] }
 0x1de   :  { %3391 = vmatpush1.bf16.msra.mxu0 %v5121_v34  ;;  %v6278_v34 = vld [vmem:[#allocation50_spill] sm:$0xff] }
 0x1df   :  { %3393 = vmatprep.subr.bf16.mxu0 %v5125_v22  ;;  %3455 = vmatpush1.bf16.msra.mxu1 %v4967_v52  ;;  %v6279_v52 = vld [vmem:[#allocation13_spill] sm:$0xff]  ;;  %v6289_v22 = vld [vmem:[#allocation23_spill] sm:$0xff] }
 0x1e0   :  { %3457 = vmatprep.subr.bf16.mxu1 %v4972_v6  ;;  %v6280_v6 = vld [vmem:[#allocation14_spill] sm:$0xff] }
 0x1e2   :  { %3395 = vmatpush1.bf16.msra.mxu0 %v6271_v46  ;;  %v6281_v46 = vld [vmem:[#allocation15_spill] sm:$0xff] }
 0x1e3   :  { %3397 = vmatprep.subr.bf16.mxu0 %v6272_v47  ;;  %3459 = vmatpush1.bf16.msra.mxu1 %v6273_v58  ;;  %v6282_v47 = vld [vmem:[#allocation16_spill] sm:$0xff]  ;;  %v6283_v58 = vld [vmem:[#allocation17_spill] sm:$0xff] }
 0x1e4   :  { %3461 = vmatprep.subr.bf16.mxu1 %v6274_v44  ;;  %v6284_v44 = vld [vmem:[#allocation18_spill] sm:$0xff] }
 0x1e6   :  { %3399 = vmatpush1.bf16.msra.mxu0 %v6275_v4  ;;  %v6285_v4 = vld [vmem:[#allocation19_spill] sm:$0xff] }
 0x1e7   :  { %3465 = vmatprep.subr.bf16.mxu0 %v6276_v12  ;;  %3463 = vmatpush1.bf16.msra.mxu1 %v6277_v27  ;;  %v6286_v12 = vld [vmem:[#allocation20_spill] sm:$0xff]  ;;  %v6287_v27 = vld [vmem:[#allocation21_spill] sm:$0xff] }
 0x1e8   :  { %3529 = vmatprep.subr.bf16.mxu1 %v6278_v34  ;;  %v6288_v34 = vld [vmem:[#allocation22_spill] sm:$0xff] }
 0x1e9   :  { %1004 = vmatmul.mubr.f32.vlgmr.msra.gmra.mrb[8].mxu0 %v5210_v60 }
 0x1ea   :  { %3467 = vmatpush1.bf16.msra.mxu0 %v6279_v52  ;;  %v6290_v52 = vld [vmem:[#allocation25_spill] sm:$0xff] }
 0x1eb   :  { %3469 = vmatprep.subr.bf16.mxu0 %v6280_v6  ;;  %v6291_v6 = vld [vmem:[#allocation27_spill] sm:$0xff] }
 0x1ee   :  { %3471 = vmatpush1.bf16.msra.mxu0 %v6281_v46  ;;  %v6292_v46 = vld [vmem:[#allocation29_spill] sm:$0xff] }
 0x1ef   :  { %3473 = vmatprep.subr.bf16.mxu0 %v6282_v47  ;;  %v6293_v47 = vld [vmem:[#allocation31_spill] sm:$0xff] }
 0x1f2   :  { %3475 = vmatpush1.bf16.msra.mxu0 %v6283_v58  ;;  %v6294_v58 = vld [vmem:[#allocation33_spill] sm:$0xff] }
 0x1f3   :  { %3477 = vmatprep.subr.bf16.mxu0 %v6284_v44  ;;  %v6295_v44 = vld [vmem:[#allocation35_spill] sm:$0xff] }
 0x1f6   :  { %3479 = vmatpush1.bf16.msra.mxu0 %v6285_v4  ;;  %v6296_v4 = vld [vmem:[#allocation37_spill] sm:$0xff] }
 0x1f7   :  { %3481 = vmatprep.subr.bf16.mxu0 %v6286_v12  ;;  %v6297_v12 = vld [vmem:[#allocation39_spill] sm:$0xff] }
 0x1fa   :  { %3483 = vmatpush1.bf16.msra.mxu0 %v6287_v27  ;;  %v6298_v27 = vld [vmem:[#allocation41_spill] sm:$0xff] }
 0x1fb   :  { %3485 = vmatprep.subr.bf16.mxu0 %v6288_v34  ;;  %v6299_v34 = vld [vmem:[#allocation43_spill] sm:$0xff] }
 0x1fe   :  { %3487 = vmatpush1.bf16.msra.mxu0 %v6289_v22  ;;  %v6300_v22 = vld [vmem:[#allocation45_spill] sm:$0xff] }
 0x1ff   :  { %3489 = vmatprep.subr.bf16.mxu0 %v6290_v52  ;;  %v6301_v52 = vld [vmem:[#allocation47_spill] sm:$0xff] }
 0x202   :  { %3491 = vmatpush1.bf16.msra.mxu0 %v6291_v6  ;;  %v6302_v6 = vld [vmem:[#allocation49_spill] sm:$0xff] }
 0x203   :  { %3493 = vmatprep.subr.bf16.mxu0 %v6292_v46  ;;  %v6303_v46 = vld [vmem:[#allocation51_spill] sm:$0xff] }
 0x206   :  { %3495 = vmatpush1.bf16.msra.mxu0 %v6293_v47  ;;  %v6304_v47 = vld [vmem:[#allocation53_spill] sm:$0xff] }
 0x207   :  { %3497 = vmatprep.subr.bf16.mxu0 %v6294_v58  ;;  %v6305_v58 = vld [vmem:[#allocation55_spill] sm:$0xff] }
 0x20a   :  { %3499 = vmatpush1.bf16.msra.mxu0 %v6295_v44  ;;  %v6306_v44 = vld [vmem:[#allocation56_spill] sm:$0xff] }
 0x20b   :  { %3501 = vmatprep.subr.bf16.mxu0 %v6296_v4  ;;  %v6307_v4 = vld [vmem:[#allocation57_spill] sm:$0xff] }
 0x20e   :  { %3503 = vmatpush1.bf16.msra.mxu0 %v6297_v12  ;;  %v6308_v12 = vld [vmem:[#allocation58_spill] sm:$0xff] }
 0x20f   :  { %3505 = vmatprep.subr.bf16.mxu0 %v6298_v27  ;;  %v6309_v27 = vld [vmem:[#allocation59_spill] sm:$0xff] }
 0x212   :  { %3507 = vmatpush1.bf16.msra.mxu0 %v6299_v34  ;;  %v6310_v34 = vld [vmem:[#allocation11_spill] sm:$0xff] }
 0x213   :  { %3509 = vmatprep.subr.bf16.mxu0 %v6300_v22 }
 0x216   :  { %3511 = vmatpush1.bf16.msra.mxu0 %v6301_v52 }
 0x217   :  { %3513 = vmatprep.subr.bf16.mxu0 %v6302_v6 }
 0x21a   :  { %3515 = vmatpush1.bf16.msra.mxu0 %v6303_v46 }
 0x21b   :  { %3517 = vmatprep.subr.bf16.mxu0 %v6304_v47 }
 0x21e   :  { %3519 = vmatpush1.bf16.msra.mxu0 %v6305_v58 }
 0x21f   :  { %3521 = vmatprep.subr.bf16.mxu0 %v6306_v44 }
 0x222   :  { %3523 = vmatpush1.bf16.msra.mxu0 %v6307_v4 }
 0x223   :  { %3525 = vmatprep.subr.bf16.mxu0 %v6308_v12 }
 0x226   :  { %3527 = vmatpush1.bf16.msra.mxu0 %v6309_v27 }
 0x227   :  { %3593 = vmatprep.subr.bf16.mxu0 %v6310_v34 }
 0x27c   :  { %v863_v22 = vpop.f32.mrb[6].mxu0  ;;  %v934_v52 = vpop.f32.mrb[6].mxu1 }
 0x27d   :  { %v865_v54 = vpop.f32.mrb[7].mxu0  ;;  %v936_v6 = vpop.f32.mrb[7].mxu1  ;;  %v1012_v33 = vrot.slane %v863_v22, 7  ;;  %v1028_v4 = vrot.slane %v934_v52, 7 }
 0x27e   :  { %v1013_v46 = vrot.slane %v865_v54, 7  ;;  %v1029_v40 = vrot.slane %v936_v6, 7 }
 0x27f   :  { %v1016_v47 = vadd.f32 %v1012_v33, %v5186_v57  ;;  %v1032_v34 = vadd.f32 %v1028_v4, %v6311_v61 }
 0x280   :  { %v1017_v58 = vadd.f32 %v1013_v46, %v5188_v49  ;;  %v1033_v8 = vadd.f32 %v1029_v40, %v5194_v13 }
 0x281   :  { %v1018_v23 = vmul.f32 0.5, %v1016_v47  ;;  %v1034_v47 = vmul.f32 0.5, %v1032_v34 }
 0x282   :  { %v1019_v44 = vmul.f32 0.5, %v1017_v58 }
 0x283   :  { %4604 = vtanh.f32 %v1018_v23 }
 0x284   :  { %4606 = vtanh.f32 %v1019_v44  ;;  %v1035_v44 = vmul.f32 0.5, %v1033_v8 }
 0x285   :  { %4608 = vtanh.f32 %v1034_v47 }
 0x286   :  { %4610 = vtanh.f32 %v1035_v44 }
 0x28d   :  { %v4605_v12 = vpop.eup %4604 }
 0x28e   :  { %v4607_v27 = vpop.eup %4606  ;;  %v1022_v10 = vmul.f32 0.5, %v4605_v12 }
 0x28f   :  { %v1023_v22 = vmul.f32 0.5, %v4607_v27  ;;  %v4609_v27 = vpop.eup %4608 }
 0x290   :  { %v1024_v58 = vadd.f32 0.5, %v1022_v10  ;;  %v1038_v34 = vmul.f32 0.5, %v4609_v27  ;;  %v6314_v27 = vld [vmem:[#allocation72_spill] sm:$0xff] }
 0x291   :  { %v1025_v52 = vadd.f32 0.5, %v1023_v22 }
 0x2bc   :  { %v1005_v18 = vpop.f32.mrb[8].mxu0 }
 0x2bd   :  { %v1042_v54 = vadd.f32 %v1005_v18, %v5198_v0  ;;  %v1007_v33 = vpop.f32.mrb[9].mxu0  ;;  %v4611_v18 = vpop.eup %4610 }
 0x2be   :  { %v1043_v46 = vadd.f32 %v1007_v33, %v5200_v17 }
 0x2bf   :  { %v1046_v23 = vrot.slane %v1042_v54, 7  ;;  %v1039_v54 = vmul.f32 0.5, %v4611_v18  ;;  %v6315_v18 = vld [vmem:[#allocation73_spill] sm:$0xff] }
 0x2c0   :  { %v1047_v49 = vrot.slane %v1043_v46, 7  ;;  %v1040_v46 = vadd.f32 0.5, %v1038_v34  ;;  %v6318_v34 = vld [vmem:[#allocation74_spill] sm:$0xff] }
 0x2c1   :  { %v1050_v6 = vmul.f32 %v1046_v23, %v1024_v58  ;;  %v1041_v58 = vadd.f32 0.5, %v1039_v54  ;;  %v6320_v54 = vld [vmem:[#allocation28_spill] sm:$0xff] }
 0x2c2   :  { %v1051_v57 = vmul.f32 %v1047_v49, %v1025_v52 }
 0x2c3   :  { %v1052_v4 = vadd.f32 %v1050_v6, %v5204_v3 }
 0x2c4   :  { %v1053_v12 = vadd.f32 %v1051_v57, %v5206_v32 }
 0x2c5   :  { %4612 = vtanh.f32 %v1052_v4 }
 0x2c6   :  { %4614 = vtanh.f32 %v1053_v12 }
 0x2cf   :  { %v4613_v40 = vpop.eup %4612 }
 0x2d0   :  { %v4615_v33 = vpop.eup %4614  ;;  %v1058_v10 = vrot.slane %v4613_v40, 1 }
 0x2d1   :  { %v1059_v8 = vrot.slane %v4615_v33, 1 }
 0x2d2   :  { %v1062_v22 = vsub.f32 %v5210_v60, %v1058_v10  ;;  %v6319_v10 = vld [vmem:[#allocation75_spill] sm:$0xff]  ;;  %v6332_v60 = vld [vmem:[#allocation40_spill] sm:$0xff] }
 0x2d3   :  { %v1063_v49 = vsub.f32 %v5212_v37, %v1059_v8  ;;  %v6321_v8 = vld [vmem:[#allocation30_spill] sm:$0xff]  ;;  %v6331_v37 = vld [vmem:[#allocation81_spill] sm:$0xff] }
 0x2d4   :  { %v1066_v47 = vrot.slane %v1062_v22, 7  ;;  %v6322_v22 = vld [vmem:[#allocation76_spill] sm:$0xff] }
 0x2d5   :  { %v1067_v23 = vrot.slane %v1063_v49, 7  ;;  %v6323_v49 = vld [vmem:[#allocation77_spill] sm:$0xff] }
 0x2d6   :  { %v1070_v44 = vmul.f32 %v1066_v47, %v1040_v46  ;;  %v6324_v46 = vld [vmem:[#allocation32_spill] sm:$0xff]  ;;  %v6325_v47 = vld [vmem:[#allocation34_spill] sm:$0xff] }
 0x2d7   :  { %v1071_v57 = vmul.f32 %v1067_v23, %v1041_v58  ;;  %v6326_v58 = vld [vmem:[#allocation78_spill] sm:$0xff]  ;;  %v6327_v23 = vld [vmem:[#allocation79_spill] sm:$0xff] }
 0x2d8   :  { %v5326_v52 = vadd.f32 %v4613_v40, %v1070_v44  ;;  %v6316_v40 = vld [vmem:[#allocation24_spill] sm:$0xff] }
 0x2d9   :  { %v5328_v6 = vadd.f32 %v4615_v33, %v1071_v57  ;;  %v6317_v33 = vld [vmem:[#allocation26_spill] sm:$0xff]  ;;  %v6328_v44 = vld [vmem:[#allocation36_spill] sm:$0xff] }
 0x2da   :  { %6312 = vst [vmem:[#allocation52_spill] sm:$0xff] %v5326_v52  ;;  %v5332_v12 = vrot.slane %v5326_v52, 1  ;;  %v6329_v57 = vld [vmem:[#allocation38_spill] sm:$0xff] }
 0x2db   :  { %6313 = vst [vmem:[#allocation54_spill] sm:$0xff] %v5328_v6  ;;  %v1077_v4 = vrot.slane %v5328_v6, 1 }
 0x2dd   :  { %1144 = vmatprep.mubr.f32.mxu1 %v1077_v4  ;;  %1215 = vmatprep.mubr.f32.mxu0 %v1077_v4 }
 0x2de   :  { %1145 = vmatmul.mubr.f32.vlgmr.msra.gmra.mrb[8].mxu1 %v5332_v12  ;;  %1216 = vmatmul.mubr.f32.vlgmr.msra.gmra.mrb[10].mxu0 %v5332_v12 }
 0x2df   :  { %3531 = vmatpush1.bf16.msra.mxu1 %v6250_v16  ;;  %1286 = vmatprep.mubr.f32.mxu1 %v1077_v4  ;;  %v6330_v4 = vld [vmem:[#allocation80_spill] sm:$0xff] }
 0x2e0   :  { %3533 = vmatprep.subr.bf16.mxu1 %v6251_v28  ;;  %3595 = vmatpush1.bf16.msra.mxu0 %v4821_v2 }
 0x2e1   :  { %3597 = vmatprep.subr.bf16.mxu0 %v4824_v7 }
 0x2e3   :  { %3535 = vmatpush1.bf16.msra.mxu1 %v5016_v24 }
 0x2e4   :  { %3537 = vmatprep.subr.bf16.mxu1 %v5021_v56  ;;  %3599 = vmatpush1.bf16.msra.mxu0 %v4831_v14 }
 0x2e5   :  { %3601 = vmatprep.subr.bf16.mxu0 %v4834_v19 }
 0x2e7   :  { %3539 = vmatpush1.bf16.msra.mxu1 %v5029_v5 }
 0x2e8   :  { %3541 = vmatprep.subr.bf16.mxu1 %v5034_v9  ;;  %3603 = vmatpush1.bf16.msra.mxu0 %v4839_v26 }
 0x2e9   :  { %3605 = vmatprep.subr.bf16.mxu0 %v4842_v31 }
 0x2eb   :  { %3543 = vmatpush1.bf16.msra.mxu1 %v6252_v59 }
 0x2ec   :  { %3545 = vmatprep.subr.bf16.mxu1 %v6253_v11  ;;  %3607 = vmatpush1.bf16.msra.mxu0 %v4845_v38 }
 0x2ed   :  { %3609 = vmatprep.subr.bf16.mxu0 %v4850_v43 }
 0x2ef   :  { %3547 = vmatpush1.bf16.msra.mxu1 %v6254_v51 }
 0x2f0   :  { %3549 = vmatprep.subr.bf16.mxu1 %v6255_v42  ;;  %3611 = vmatpush1.bf16.msra.mxu0 %v4856_v50 }
 0x2f1   :  { %3613 = vmatprep.subr.bf16.mxu0 %v4861_v55 }
 0x2f3   :  { %3551 = vmatpush1.bf16.msra.mxu1 %v6256_v20 }
 0x2f4   :  { %3553 = vmatprep.subr.bf16.mxu1 %v6257_v62  ;;  %3615 = vmatpush1.bf16.msra.mxu0 %v4871_v1 }
 0x2f5   :  { %3617 = vmatprep.subr.bf16.mxu0 %v4876_v63 }
 0x2f7   :  { %3555 = vmatpush1.bf16.msra.mxu1 %v6258_v30 }
 0x2f8   :  { %3557 = vmatprep.subr.bf16.mxu1 %v6259_v36  ;;  %3619 = vmatpush1.bf16.msra.mxu0 %v4883_v15 }
 0x2f9   :  { %3621 = vmatprep.subr.bf16.mxu0 %v4888_v21 }
 0x2fb   :  { %3559 = vmatpush1.bf16.msra.mxu1 %v6260_v48 }
 0x2fc   :  { %3561 = vmatprep.subr.bf16.mxu1 %v6261_v25  ;;  %3623 = vmatpush1.bf16.msra.mxu0 %v4895_v29 }
 0x2fd   :  { %3625 = vmatprep.subr.bf16.mxu0 %v4900_v35 }
 0x2ff   :  { %3563 = vmatpush1.bf16.msra.mxu1 %v6262_v41 }
 0x300   :  { %3565 = vmatprep.subr.bf16.mxu1 %v6263_v39  ;;  %3627 = vmatpush1.bf16.msra.mxu0 %v4907_v45 }
 0x301   :  { %3629 = vmatprep.subr.bf16.mxu0 %v4912_v53 }
 0x303   :  { %3567 = vmatpush1.bf16.msra.mxu1 %v6314_v27 }
 0x304   :  { %3569 = vmatprep.subr.bf16.mxu1 %v6315_v18  ;;  %3631 = vmatpush1.bf16.msra.mxu0 %v6316_v40 }
 0x305   :  { %3633 = vmatprep.subr.bf16.mxu0 %v6317_v33 }
 0x307   :  { %3571 = vmatpush1.bf16.msra.mxu1 %v6318_v34 }
 0x308   :  { %3573 = vmatprep.subr.bf16.mxu1 %v6319_v10  ;;  %3635 = vmatpush1.bf16.msra.mxu0 %v6320_v54  ;;  %v6374_v54 = vld [vmem:[#allocation85_spill] sm:$0xff]  ;;  %v6375_v10 = vld [vmem:[#allocation86_spill] sm:$0xff] }
 0x309   :  { %3637 = vmatprep.subr.bf16.mxu0 %v6321_v8 }
 0x30b   :  { %3575 = vmatpush1.bf16.msra.mxu1 %v6322_v22  ;;  %v6333_v22 = vld [vmem:[#allocation42_spill] sm:$0xff] }
 0x30c   :  { %3577 = vmatprep.subr.bf16.mxu1 %v6323_v49  ;;  %3639 = vmatpush1.bf16.msra.mxu0 %v6324_v46  ;;  %v6334_v49 = vld [vmem:[#allocation82_spill] sm:$0xff]  ;;  %v6335_v46 = vld [vmem:[#allocation83_spill] sm:$0xff] }
 0x30d   :  { %3641 = vmatprep.subr.bf16.mxu0 %v6325_v47  ;;  %v6336_v47 = vld [vmem:[#allocation44_spill] sm:$0xff] }
 0x30f   :  { %3579 = vmatpush1.bf16.msra.mxu1 %v6326_v58  ;;  %v6337_v58 = vld [vmem:[#allocation46_spill] sm:$0xff] }
 0x310   :  { %3581 = vmatprep.subr.bf16.mxu1 %v6327_v23  ;;  %3643 = vmatpush1.bf16.msra.mxu0 %v6328_v44  ;;  %v6338_v23 = vld [vmem:[#allocation84_spill] sm:$0xff] }
 0x311   :  { %3645 = vmatprep.subr.bf16.mxu0 %v6329_v57  ;;  %v6339_v44 = vld [vmem:[#allocation12_spill] sm:$0xff] }
 0x312   :  { %v6340_v57 = vld [vmem:[#allocation48_spill] sm:$0xff] }
 0x313   :  { %3583 = vmatpush1.bf16.msra.mxu1 %v6330_v4  ;;  %v6341_v4 = vld [vmem:[#allocation50_spill] sm:$0xff] }
 0x314   :  { %3585 = vmatprep.subr.bf16.mxu1 %v6331_v37  ;;  %3647 = vmatpush1.bf16.msra.mxu0 %v6332_v60  ;;  %v6342_v60 = vld [vmem:[#allocation13_spill] sm:$0xff] }
 0x315   :  { %3649 = vmatprep.subr.bf16.mxu0 %v6333_v22  ;;  %v6343_v22 = vld [vmem:[#allocation14_spill] sm:$0xff] }
 0x317   :  { %3587 = vmatpush1.bf16.msra.mxu1 %v6334_v49  ;;  %v6344_v49 = vld [vmem:[#allocation15_spill] sm:$0xff] }
 0x318   :  { %3589 = vmatprep.subr.bf16.mxu1 %v6335_v46  ;;  %3651 = vmatpush1.bf16.msra.mxu0 %v6336_v47  ;;  %v6345_v46 = vld [vmem:[#allocation16_spill] sm:$0xff]  ;;  %v6346_v47 = vld [vmem:[#allocation17_spill] sm:$0xff] }
 0x319   :  { %3653 = vmatprep.subr.bf16.mxu0 %v6337_v58  ;;  %v6347_v58 = vld [vmem:[#allocation18_spill] sm:$0xff] }
 0x31b   :  { %3591 = vmatpush1.bf16.msra.mxu1 %v6338_v23  ;;  %v6348_v23 = vld [vmem:[#allocation19_spill] sm:$0xff] }
 0x31c   :  { %3657 = vmatprep.subr.bf16.mxu1 %v6339_v44  ;;  %3655 = vmatpush1.bf16.msra.mxu0 %v6340_v57  ;;  %v6349_v44 = vld [vmem:[#allocation20_spill] sm:$0xff]  ;;  %v6350_v57 = vld [vmem:[#allocation21_spill] sm:$0xff] }
 0x31d   :  { %3721 = vmatprep.subr.bf16.mxu0 %v6341_v4  ;;  %v6351_v4 = vld [vmem:[#allocation22_spill] sm:$0xff] }
 0x31e   :  { %1287 = vmatmul.mubr.f32.vlgmr.msra.gmra.mrb[10].mxu1 %v5332_v12  ;;  %v6352_v12 = vld [vmem:[#allocation23_spill] sm:$0xff] }
 0x31f   :  { %3659 = vmatpush1.bf16.msra.mxu1 %v6342_v60  ;;  %v6353_v60 = vld [vmem:[#allocation25_spill] sm:$0xff] }
 0x320   :  { %3661 = vmatprep.subr.bf16.mxu1 %v6343_v22  ;;  %v6354_v22 = vld [vmem:[#allocation27_spill] sm:$0xff] }
 0x323   :  { %3663 = vmatpush1.bf16.msra.mxu1 %v6344_v49  ;;  %v6355_v49 = vld [vmem:[#allocation29_spill] sm:$0xff] }
 0x324   :  { %3665 = vmatprep.subr.bf16.mxu1 %v6345_v46  ;;  %v6356_v46 = vld [vmem:[#allocation31_spill] sm:$0xff] }
 0x327   :  { %3667 = vmatpush1.bf16.msra.mxu1 %v6346_v47  ;;  %v6357_v47 = vld [vmem:[#allocation33_spill] sm:$0xff] }
 0x328   :  { %3669 = vmatprep.subr.bf16.mxu1 %v6347_v58  ;;  %v6358_v58 = vld [vmem:[#allocation35_spill] sm:$0xff] }
 0x32b   :  { %3671 = vmatpush1.bf16.msra.mxu1 %v6348_v23  ;;  %v6359_v23 = vld [vmem:[#allocation37_spill] sm:$0xff] }
 0x32c   :  { %3673 = vmatprep.subr.bf16.mxu1 %v6349_v44  ;;  %v6360_v44 = vld [vmem:[#allocation39_spill] sm:$0xff] }
 0x32f   :  { %3675 = vmatpush1.bf16.msra.mxu1 %v6350_v57  ;;  %v6361_v57 = vld [vmem:[#allocation41_spill] sm:$0xff] }
 0x330   :  { %3677 = vmatprep.subr.bf16.mxu1 %v6351_v4  ;;  %v6362_v4 = vld [vmem:[#allocation43_spill] sm:$0xff] }
 0x333   :  { %3679 = vmatpush1.bf16.msra.mxu1 %v6352_v12  ;;  %v6363_v12 = vld [vmem:[#allocation45_spill] sm:$0xff] }
 0x334   :  { %3681 = vmatprep.subr.bf16.mxu1 %v6353_v60  ;;  %v6364_v60 = vld [vmem:[#allocation47_spill] sm:$0xff] }
 0x337   :  { %3683 = vmatpush1.bf16.msra.mxu1 %v6354_v22  ;;  %v6365_v22 = vld [vmem:[#allocation49_spill] sm:$0xff] }
 0x338   :  { %3685 = vmatprep.subr.bf16.mxu1 %v6355_v49  ;;  %v6366_v49 = vld [vmem:[#allocation51_spill] sm:$0xff] }
 0x33b   :  { %3687 = vmatpush1.bf16.msra.mxu1 %v6356_v46  ;;  %v6367_v46 = vld [vmem:[#allocation53_spill] sm:$0xff] }
 0x33c   :  { %3689 = vmatprep.subr.bf16.mxu1 %v6357_v47  ;;  %v6368_v47 = vld [vmem:[#allocation55_spill] sm:$0xff] }
 0x33f   :  { %3691 = vmatpush1.bf16.msra.mxu1 %v6358_v58  ;;  %v6369_v58 = vld [vmem:[#allocation56_spill] sm:$0xff] }
 0x340   :  { %3693 = vmatprep.subr.bf16.mxu1 %v6359_v23  ;;  %v6370_v23 = vld [vmem:[#allocation57_spill] sm:$0xff] }
 0x343   :  { %3695 = vmatpush1.bf16.msra.mxu1 %v6360_v44  ;;  %v6371_v44 = vld [vmem:[#allocation58_spill] sm:$0xff] }
 0x344   :  { %3697 = vmatprep.subr.bf16.mxu1 %v6361_v57  ;;  %v6372_v57 = vld [vmem:[#allocation59_spill] sm:$0xff] }
 0x347   :  { %3699 = vmatpush1.bf16.msra.mxu1 %v6362_v4  ;;  %v6373_v4 = vld [vmem:[#allocation11_spill] sm:$0xff] }
 0x348   :  { %3701 = vmatprep.subr.bf16.mxu1 %v6363_v12 }
 0x34b   :  { %3703 = vmatpush1.bf16.msra.mxu1 %v6364_v60 }
 0x34c   :  { %3705 = vmatprep.subr.bf16.mxu1 %v6365_v22 }
 0x34f   :  { %3707 = vmatpush1.bf16.msra.mxu1 %v6366_v49 }
 0x350   :  { %3709 = vmatprep.subr.bf16.mxu1 %v6367_v46 }
 0x353   :  { %3711 = vmatpush1.bf16.msra.mxu1 %v6368_v47 }
 0x354   :  { %3713 = vmatprep.subr.bf16.mxu1 %v6369_v58 }
 0x357   :  { %3715 = vmatpush1.bf16.msra.mxu1 %v6370_v23 }
 0x358   :  { %3717 = vmatprep.subr.bf16.mxu1 %v6371_v44 }
 0x35b   :  { %3719 = vmatpush1.bf16.msra.mxu1 %v6372_v57 }
 0x35c   :  { %3785 = vmatprep.subr.bf16.mxu1 %v6373_v4 }
 0x3b1   :  { %v1146_v12 = vpop.f32.mrb[8].mxu1  ;;  %v1217_v60 = vpop.f32.mrb[10].mxu0 }
 0x3b2   :  { %v1148_v37 = vpop.f32.mrb[9].mxu1  ;;  %v1219_v22 = vpop.f32.mrb[11].mxu0  ;;  %v1295_v8 = vrot.slane %v1146_v12, 6  ;;  %v1311_v23 = vrot.slane %v1217_v60, 6 }
 0x3b3   :  { %v1296_v49 = vrot.slane %v1148_v37, 6  ;;  %v1312_v33 = vrot.slane %v1219_v22, 6 }
 0x3b4   :  { %v1299_v46 = vadd.f32 %v1295_v8, %v6374_v54  ;;  %v1315_v4 = vadd.f32 %v1311_v23, %v6311_v61 }
 0x3b5   :  { %v1300_v47 = vadd.f32 %v1296_v49, %v6375_v10  ;;  %v1316_v18 = vadd.f32 %v1312_v33, %v5194_v13 }
 0x3b6   :  { %v1301_v34 = vmul.f32 0.5, %v1299_v46  ;;  %v1317_v46 = vmul.f32 0.5, %v1315_v4 }
 0x3b7   :  { %v1302_v58 = vmul.f32 0.5, %v1300_v47 }
 0x3b8   :  { %4616 = vtanh.f32 %v1301_v34 }
 0x3b9   :  { %4618 = vtanh.f32 %v1302_v58  ;;  %v1318_v58 = vmul.f32 0.5, %v1316_v18 }
 0x3ba   :  { %4620 = vtanh.f32 %v1317_v46 }
 0x3bb   :  { %4622 = vtanh.f32 %v1318_v58 }
 0x3c2   :  { %v4617_v44 = vpop.eup %4616 }
 0x3c3   :  { %v4619_v57 = vpop.eup %4618  ;;  %v1305_v40 = vmul.f32 0.5, %v4617_v44 }
 0x3c4   :  { %v1306_v12 = vmul.f32 0.5, %v4619_v57 }
 0x3c5   :  { %v1307_v47 = vadd.f32 0.5, %v1305_v40 }
 0x3c6   :  { %v1308_v60 = vadd.f32 0.5, %v1306_v12 }
 0x3f1   :  { %v1288_v27 = vpop.f32.mrb[10].mxu1 }
 0x3f2   :  { %v1325_v37 = vadd.f32 %v1288_v27, %v5198_v0  ;;  %v1290_v8 = vpop.f32.mrb[11].mxu1  ;;  %v4621_v27 = vpop.eup %4620 }
 0x3f3   :  { %v1326_v49 = vadd.f32 %v1290_v8, %v5200_v17  ;;  %v4623_v44 = vpop.eup %4622  ;;  %v1321_v4 = vmul.f32 0.5, %v4621_v27  ;;  %v6378_v27 = vld [vmem:[#allocation72_spill] sm:$0xff] }
 0x3f4   :  { %v1329_v34 = vrot.slane %v1325_v37, 6  ;;  %v1322_v37 = vmul.f32 0.5, %v4623_v44  ;;  %v6379_v44 = vld [vmem:[#allocation73_spill] sm:$0xff] }
 0x3f5   :  { %v1330_v10 = vrot.slane %v1326_v49, 6  ;;  %v1323_v49 = vadd.f32 0.5, %v1321_v4  ;;  %v6382_v4 = vld [vmem:[#allocation74_spill] sm:$0xff] }
 0x3f6   :  { %v1333_v22 = vmul.f32 %v1329_v34, %v1307_v47  ;;  %v1324_v47 = vadd.f32 0.5, %v1322_v37  ;;  %v6384_v37 = vld [vmem:[#allocation28_spill] sm:$0xff] }
 0x3f7   :  { %v1334_v54 = vmul.f32 %v1330_v10, %v1308_v60 }
 0x3f8   :  { %v1335_v23 = vadd.f32 %v1333_v22, %v5204_v3 }
 0x3f9   :  { %v1336_v33 = vadd.f32 %v1334_v54, %v5206_v32 }
 0x3fa   :  { %4624 = vtanh.f32 %v1335_v23 }
 0x3fb   :  { %4626 = vtanh.f32 %v1336_v33 }
 0x404   :  { %v4625_v57 = vpop.eup %4624 }
 0x405   :  { %v4627_v8 = vpop.eup %4626  ;;  %v1341_v40 = vrot.slane %v4625_v57, 1 }
 0x406   :  { %v1342_v18 = vrot.slane %v4627_v8, 1 }
 0x407   :  { %v1345_v12 = vsub.f32 %v5326_v52, %v1341_v40  ;;  %v6383_v40 = vld [vmem:[#allocation75_spill] sm:$0xff]  ;;  %v6396_v52 = vld [vmem:[#allocation40_spill] sm:$0xff] }
 0x408   :  { %v1346_v10 = vsub.f32 %v5328_v6, %v1342_v18  ;;  %v6385_v18 = vld [vmem:[#allocation30_spill] sm:$0xff]  ;;  %v6395_v6 = vld [vmem:[#allocation81_spill] sm:$0xff] }
 0x409   :  { %v1349_v46 = vrot.slane %v1345_v12, 7  ;;  %v6386_v12 = vld [vmem:[#allocation76_spill] sm:$0xff] }
 0x40a   :  { %v1350_v34 = vrot.slane %v1346_v10, 7  ;;  %v6387_v10 = vld [vmem:[#allocation77_spill] sm:$0xff] }
 0x40b   :  { %v1353_v58 = vmul.f32 %v1349_v46, %v1323_v49  ;;  %v6388_v49 = vld [vmem:[#allocation32_spill] sm:$0xff]  ;;  %v6389_v46 = vld [vmem:[#allocation34_spill] sm:$0xff] }
 0x40c   :  { %v1354_v54 = vmul.f32 %v1350_v34, %v1324_v47  ;;  %v6390_v47 = vld [vmem:[#allocation78_spill] sm:$0xff]  ;;  %v6391_v34 = vld [vmem:[#allocation79_spill] sm:$0xff] }
 0x40d   :  { %v5443_v60 = vadd.f32 %v4625_v57, %v1353_v58  ;;  %v6380_v57 = vld [vmem:[#allocation24_spill] sm:$0xff] }
 0x40e   :  { %v5445_v22 = vadd.f32 %v4627_v8, %v1354_v54  ;;  %v6381_v8 = vld [vmem:[#allocation26_spill] sm:$0xff]  ;;  %v6392_v58 = vld [vmem:[#allocation36_spill] sm:$0xff] }
 0x40f   :  { %6376 = vst [vmem:[#allocation60_spill] sm:$0xff] %v5443_v60  ;;  %v5449_v33 = vrot.slane %v5443_v60, 2  ;;  %v6393_v54 = vld [vmem:[#allocation38_spill] sm:$0xff] }
 0x410   :  { %6377 = vst [vmem:[#allocation61_spill] sm:$0xff] %v5445_v22  ;;  %v1360_v23 = vrot.slane %v5445_v22, 2 }
 0x412   :  { %1427 = vmatprep.mubr.f32.mxu0 %v1360_v23  ;;  %1498 = vmatprep.mubr.f32.mxu1 %v1360_v23 }
 0x413   :  { %1428 = vmatmul.mubr.f32.vlgmr.msra.gmra.mrb[12].mxu0 %v5449_v33  ;;  %1499 = vmatmul.mubr.f32.vlgmr.msra.gmra.mrb[12].mxu1 %v5449_v33 }
 0x414   :  { %3723 = vmatpush1.bf16.msra.mxu0 %v6250_v16  ;;  %1569 = vmatprep.mubr.f32.mxu0 %v1360_v23  ;;  %v6394_v23 = vld [vmem:[#allocation80_spill] sm:$0xff] }
 0x415   :  { %3725 = vmatprep.subr.bf16.mxu0 %v6251_v28  ;;  %3787 = vmatpush1.bf16.msra.mxu1 %v4821_v2 }
 0x416   :  { %3789 = vmatprep.subr.bf16.mxu1 %v4824_v7 }
 0x418   :  { %3727 = vmatpush1.bf16.msra.mxu0 %v5016_v24 }
 0x419   :  { %3729 = vmatprep.subr.bf16.mxu0 %v5021_v56  ;;  %3791 = vmatpush1.bf16.msra.mxu1 %v4831_v14 }
 0x41a   :  { %3793 = vmatprep.subr.bf16.mxu1 %v4834_v19 }
 0x41c   :  { %3731 = vmatpush1.bf16.msra.mxu0 %v5029_v5 }
 0x41d   :  { %3733 = vmatprep.subr.bf16.mxu0 %v5034_v9  ;;  %3795 = vmatpush1.bf16.msra.mxu1 %v4839_v26 }
 0x41e   :  { %3797 = vmatprep.subr.bf16.mxu1 %v4842_v31 }
 0x420   :  { %3735 = vmatpush1.bf16.msra.mxu0 %v6252_v59 }
 0x421   :  { %3737 = vmatprep.subr.bf16.mxu0 %v6253_v11  ;;  %3799 = vmatpush1.bf16.msra.mxu1 %v4845_v38 }
 0x422   :  { %3801 = vmatprep.subr.bf16.mxu1 %v4850_v43 }
 0x424   :  { %3739 = vmatpush1.bf16.msra.mxu0 %v6254_v51 }
 0x425   :  { %3741 = vmatprep.subr.bf16.mxu0 %v6255_v42  ;;  %3803 = vmatpush1.bf16.msra.mxu1 %v4856_v50 }
 0x426   :  { %3805 = vmatprep.subr.bf16.mxu1 %v4861_v55 }
 0x428   :  { %3743 = vmatpush1.bf16.msra.mxu0 %v6256_v20 }
 0x429   :  { %3745 = vmatprep.subr.bf16.mxu0 %v6257_v62  ;;  %3807 = vmatpush1.bf16.msra.mxu1 %v4871_v1 }
 0x42a   :  { %3809 = vmatprep.subr.bf16.mxu1 %v4876_v63 }
 0x42c   :  { %3747 = vmatpush1.bf16.msra.mxu0 %v6258_v30 }
 0x42d   :  { %3749 = vmatprep.subr.bf16.mxu0 %v6259_v36  ;;  %3811 = vmatpush1.bf16.msra.mxu1 %v4883_v15 }
 0x42e   :  { %3813 = vmatprep.subr.bf16.mxu1 %v4888_v21 }
 0x430   :  { %3751 = vmatpush1.bf16.msra.mxu0 %v6260_v48 }
 0x431   :  { %3753 = vmatprep.subr.bf16.mxu0 %v6261_v25  ;;  %3815 = vmatpush1.bf16.msra.mxu1 %v4895_v29 }
 0x432   :  { %3817 = vmatprep.subr.bf16.mxu1 %v4900_v35 }
 0x434   :  { %3755 = vmatpush1.bf16.msra.mxu0 %v6262_v41 }
 0x435   :  { %3757 = vmatprep.subr.bf16.mxu0 %v6263_v39  ;;  %3819 = vmatpush1.bf16.msra.mxu1 %v4907_v45 }
 0x436   :  { %3821 = vmatprep.subr.bf16.mxu1 %v4912_v53 }
 0x438   :  { %3759 = vmatpush1.bf16.msra.mxu0 %v6378_v27 }
 0x439   :  { %3761 = vmatprep.subr.bf16.mxu0 %v6379_v44  ;;  %3823 = vmatpush1.bf16.msra.mxu1 %v6380_v57 }
 0x43a   :  { %3825 = vmatprep.subr.bf16.mxu1 %v6381_v8 }
 0x43c   :  { %3763 = vmatpush1.bf16.msra.mxu0 %v6382_v4 }
 0x43d   :  { %3765 = vmatprep.subr.bf16.mxu0 %v6383_v40  ;;  %3827 = vmatpush1.bf16.msra.mxu1 %v6384_v37  ;;  %v6438_v37 = vld [vmem:[#allocation85_spill] sm:$0xff]  ;;  %v6439_v40 = vld [vmem:[#allocation86_spill] sm:$0xff] }
 0x43e   :  { %3829 = vmatprep.subr.bf16.mxu1 %v6385_v18 }
 0x440   :  { %3767 = vmatpush1.bf16.msra.mxu0 %v6386_v12  ;;  %v6397_v12 = vld [vmem:[#allocation42_spill] sm:$0xff] }
 0x441   :  { %3769 = vmatprep.subr.bf16.mxu0 %v6387_v10  ;;  %3831 = vmatpush1.bf16.msra.mxu1 %v6388_v49  ;;  %v6398_v10 = vld [vmem:[#allocation82_spill] sm:$0xff]  ;;  %v6399_v49 = vld [vmem:[#allocation83_spill] sm:$0xff] }
 0x442   :  { %3833 = vmatprep.subr.bf16.mxu1 %v6389_v46  ;;  %v6400_v46 = vld [vmem:[#allocation44_spill] sm:$0xff] }
 0x444   :  { %3771 = vmatpush1.bf16.msra.mxu0 %v6390_v47  ;;  %v6401_v47 = vld [vmem:[#allocation46_spill] sm:$0xff] }
 0x445   :  { %3773 = vmatprep.subr.bf16.mxu0 %v6391_v34  ;;  %3835 = vmatpush1.bf16.msra.mxu1 %v6392_v58  ;;  %v6402_v34 = vld [vmem:[#allocation84_spill] sm:$0xff] }
 0x446   :  { %3837 = vmatprep.subr.bf16.mxu1 %v6393_v54  ;;  %v6403_v58 = vld [vmem:[#allocation12_spill] sm:$0xff] }
 0x447   :  { %v6404_v54 = vld [vmem:[#allocation48_spill] sm:$0xff] }
 0x448   :  { %3775 = vmatpush1.bf16.msra.mxu0 %v6394_v23  ;;  %v6405_v23 = vld [vmem:[#allocation50_spill] sm:$0xff] }
 0x449   :  { %3777 = vmatprep.subr.bf16.mxu0 %v6395_v6  ;;  %3839 = vmatpush1.bf16.msra.mxu1 %v6396_v52  ;;  %v6406_v52 = vld [vmem:[#allocation13_spill] sm:$0xff] }
 0x44a   :  { %3841 = vmatprep.subr.bf16.mxu1 %v6397_v12  ;;  %v6407_v12 = vld [vmem:[#allocation14_spill] sm:$0xff] }
 0x44c   :  { %3779 = vmatpush1.bf16.msra.mxu0 %v6398_v10  ;;  %v6408_v10 = vld [vmem:[#allocation15_spill] sm:$0xff] }
 0x44d   :  { %3781 = vmatprep.subr.bf16.mxu0 %v6399_v49  ;;  %3843 = vmatpush1.bf16.msra.mxu1 %v6400_v46  ;;  %v6409_v49 = vld [vmem:[#allocation16_spill] sm:$0xff]  ;;  %v6410_v46 = vld [vmem:[#allocation17_spill] sm:$0xff] }
 0x44e   :  { %3845 = vmatprep.subr.bf16.mxu1 %v6401_v47  ;;  %v6411_v47 = vld [vmem:[#allocation18_spill] sm:$0xff] }
 0x450   :  { %3783 = vmatpush1.bf16.msra.mxu0 %v6402_v34  ;;  %v6412_v34 = vld [vmem:[#allocation19_spill] sm:$0xff] }
 0x451   :  { %3849 = vmatprep.subr.bf16.mxu0 %v6403_v58  ;;  %3847 = vmatpush1.bf16.msra.mxu1 %v6404_v54  ;;  %v6413_v58 = vld [vmem:[#allocation20_spill] sm:$0xff]  ;;  %v6414_v54 = vld [vmem:[#allocation21_spill] sm:$0xff] }
 0x452   :  { %3913 = vmatprep.subr.bf16.mxu1 %v6405_v23  ;;  %v6415_v23 = vld [vmem:[#allocation22_spill] sm:$0xff] }
 0x453   :  { %1570 = vmatmul.mubr.f32.vlgmr.msra.gmra.mrb[14].mxu0 %v5449_v33  ;;  %v6416_v33 = vld [vmem:[#allocation23_spill] sm:$0xff] }
 0x454   :  { %3851 = vmatpush1.bf16.msra.mxu0 %v6406_v52  ;;  %v6417_v52 = vld [vmem:[#allocation25_spill] sm:$0xff] }
 0x455   :  { %3853 = vmatprep.subr.bf16.mxu0 %v6407_v12  ;;  %v6418_v12 = vld [vmem:[#allocation27_spill] sm:$0xff] }
 0x458   :  { %3855 = vmatpush1.bf16.msra.mxu0 %v6408_v10  ;;  %v6419_v10 = vld [vmem:[#allocation29_spill] sm:$0xff] }
 0x459   :  { %3857 = vmatprep.subr.bf16.mxu0 %v6409_v49  ;;  %v6420_v49 = vld [vmem:[#allocation31_spill] sm:$0xff] }
 0x45c   :  { %3859 = vmatpush1.bf16.msra.mxu0 %v6410_v46  ;;  %v6421_v46 = vld [vmem:[#allocation33_spill] sm:$0xff] }
 0x45d   :  { %3861 = vmatprep.subr.bf16.mxu0 %v6411_v47  ;;  %v6422_v47 = vld [vmem:[#allocation35_spill] sm:$0xff] }
 0x460   :  { %3863 = vmatpush1.bf16.msra.mxu0 %v6412_v34  ;;  %v6423_v34 = vld [vmem:[#allocation37_spill] sm:$0xff] }
 0x461   :  { %3865 = vmatprep.subr.bf16.mxu0 %v6413_v58  ;;  %v6424_v58 = vld [vmem:[#allocation39_spill] sm:$0xff] }
 0x464   :  { %3867 = vmatpush1.bf16.msra.mxu0 %v6414_v54  ;;  %v6425_v54 = vld [vmem:[#allocation41_spill] sm:$0xff] }
 0x465   :  { %3869 = vmatprep.subr.bf16.mxu0 %v6415_v23  ;;  %v6426_v23 = vld [vmem:[#allocation43_spill] sm:$0xff] }
 0x468   :  { %3871 = vmatpush1.bf16.msra.mxu0 %v6416_v33  ;;  %v6427_v33 = vld [vmem:[#allocation45_spill] sm:$0xff] }
 0x469   :  { %3873 = vmatprep.subr.bf16.mxu0 %v6417_v52  ;;  %v6428_v52 = vld [vmem:[#allocation47_spill] sm:$0xff] }
 0x46c   :  { %3875 = vmatpush1.bf16.msra.mxu0 %v6418_v12  ;;  %v6429_v12 = vld [vmem:[#allocation49_spill] sm:$0xff] }
 0x46d   :  { %3877 = vmatprep.subr.bf16.mxu0 %v6419_v10  ;;  %v6430_v10 = vld [vmem:[#allocation51_spill] sm:$0xff] }
 0x470   :  { %3879 = vmatpush1.bf16.msra.mxu0 %v6420_v49  ;;  %v6431_v49 = vld [vmem:[#allocation53_spill] sm:$0xff] }
 0x471   :  { %3881 = vmatprep.subr.bf16.mxu0 %v6421_v46  ;;  %v6432_v46 = vld [vmem:[#allocation55_spill] sm:$0xff] }
 0x474   :  { %3883 = vmatpush1.bf16.msra.mxu0 %v6422_v47  ;;  %v6433_v47 = vld [vmem:[#allocation56_spill] sm:$0xff] }
 0x475   :  { %3885 = vmatprep.subr.bf16.mxu0 %v6423_v34  ;;  %v6434_v34 = vld [vmem:[#allocation57_spill] sm:$0xff] }
 0x478   :  { %3887 = vmatpush1.bf16.msra.mxu0 %v6424_v58  ;;  %v6435_v58 = vld [vmem:[#allocation58_spill] sm:$0xff] }
 0x479   :  { %3889 = vmatprep.subr.bf16.mxu0 %v6425_v54  ;;  %v6436_v54 = vld [vmem:[#allocation59_spill] sm:$0xff] }
 0x47c   :  { %3891 = vmatpush1.bf16.msra.mxu0 %v6426_v23  ;;  %v6437_v23 = vld [vmem:[#allocation11_spill] sm:$0xff] }
 0x47d   :  { %3893 = vmatprep.subr.bf16.mxu0 %v6427_v33 }
 0x480   :  { %3895 = vmatpush1.bf16.msra.mxu0 %v6428_v52 }
 0x481   :  { %3897 = vmatprep.subr.bf16.mxu0 %v6429_v12 }
 0x484   :  { %3899 = vmatpush1.bf16.msra.mxu0 %v6430_v10 }
 0x485   :  { %3901 = vmatprep.subr.bf16.mxu0 %v6431_v49 }
 0x488   :  { %3903 = vmatpush1.bf16.msra.mxu0 %v6432_v46 }
 0x489   :  { %3905 = vmatprep.subr.bf16.mxu0 %v6433_v47 }
 0x48c   :  { %3907 = vmatpush1.bf16.msra.mxu0 %v6434_v34 }
 0x48d   :  { %3909 = vmatprep.subr.bf16.mxu0 %v6435_v58 }
 0x490   :  { %3911 = vmatpush1.bf16.msra.mxu0 %v6436_v54 }
 0x491   :  { %3977 = vmatprep.subr.bf16.mxu0 %v6437_v23 }
 0x4e6   :  { %v1429_v33 = vpop.f32.mrb[12].mxu0  ;;  %v1500_v52 = vpop.f32.mrb[12].mxu1 }
 0x4e7   :  { %v1431_v6 = vpop.f32.mrb[13].mxu0  ;;  %v1502_v12 = vpop.f32.mrb[13].mxu1  ;;  %v1578_v18 = vrot.slane %v1429_v33, 5  ;;  %v1594_v34 = vrot.slane %v1500_v52, 5 }
 0x4e8   :  { %v1579_v10 = vrot.slane %v1431_v6, 5  ;;  %v1595_v8 = vrot.slane %v1502_v12, 5 }
 0x4e9   :  { %v1582_v49 = vadd.f32 %v1578_v18, %v6438_v37  ;;  %v1598_v23 = vadd.f32 %v1594_v34, %v6311_v61 }
 0x4ea   :  { %v1583_v46 = vadd.f32 %v1579_v10, %v6439_v40  ;;  %v1599_v44 = vadd.f32 %v1595_v8, %v5194_v13 }
 0x4eb   :  { %v1584_v4 = vmul.f32 0.5, %v1582_v49  ;;  %v1600_v49 = vmul.f32 0.5, %v1598_v23 }
 0x4ec   :  { %v1585_v47 = vmul.f32 0.5, %v1583_v46 }
 0x4ed   :  { %4628 = vtanh.f32 %v1584_v4 }
 0x4ee   :  { %4630 = vtanh.f32 %v1585_v47  ;;  %v1601_v47 = vmul.f32 0.5, %v1599_v44 }
 0x4ef   :  { %4632 = vtanh.f32 %v1600_v49 }
 0x4f0   :  { %4634 = vtanh.f32 %v1601_v47 }
 0x4f7   :  { %v4629_v58 = vpop.eup %4628 }
 0x4f8   :  { %v4631_v54 = vpop.eup %4630  ;;  %v1588_v57 = vmul.f32 0.5, %v4629_v58 }
 0x4f9   :  { %v1589_v33 = vmul.f32 0.5, %v4631_v54 }
 0x4fa   :  { %v1590_v46 = vadd.f32 0.5, %v1588_v57 }
 0x4fb   :  { %v1591_v52 = vadd.f32 0.5, %v1589_v33 }
 0x526   :  { %v1571_v27 = vpop.f32.mrb[14].mxu0 }
 0x527   :  { %v1608_v6 = vadd.f32 %v1571_v27, %v5198_v0  ;;  %v1573_v18 = vpop.f32.mrb[15].mxu0  ;;  %v4633_v27 = vpop.eup %4632 }
 0x528   :  { %v1609_v10 = vadd.f32 %v1573_v18, %v5200_v17  ;;  %v4635_v58 = vpop.eup %4634  ;;  %v1604_v23 = vmul.f32 0.5, %v4633_v27  ;;  %v6442_v27 = vld [vmem:[#allocation72_spill] sm:$0xff] }
 0x529   :  { %v1612_v4 = vrot.slane %v1608_v6, 5  ;;  %v1605_v6 = vmul.f32 0.5, %v4635_v58  ;;  %v6443_v58 = vld [vmem:[#allocation73_spill] sm:$0xff] }
 0x52a   :  { %v1613_v40 = vrot.slane %v1609_v10, 5  ;;  %v1606_v10 = vadd.f32 0.5, %v1604_v23  ;;  %v6446_v23 = vld [vmem:[#allocation74_spill] sm:$0xff] }
 0x52b   :  { %v1616_v12 = vmul.f32 %v1612_v4, %v1590_v46  ;;  %v1607_v46 = vadd.f32 0.5, %v1605_v6  ;;  %v6448_v6 = vld [vmem:[#allocation28_spill] sm:$0xff] }
 0x52c   :  { %v1617_v37 = vmul.f32 %v1613_v40, %v1591_v52 }
 0x52d   :  { %v1618_v34 = vadd.f32 %v1616_v12, %v5204_v3 }
 0x52e   :  { %v1619_v8 = vadd.f32 %v1617_v37, %v5206_v32 }
 0x52f   :  { %4636 = vtanh.f32 %v1618_v34 }
 0x530   :  { %4638 = vtanh.f32 %v1619_v8 }
 0x539   :  { %v4637_v54 = vpop.eup %4636 }
 0x53a   :  { %v4639_v18 = vpop.eup %4638  ;;  %v1624_v57 = vrot.slane %v4637_v54, 1 }
 0x53b   :  { %v1625_v44 = vrot.slane %v4639_v18, 1 }
 0x53c   :  { %v1628_v33 = vsub.f32 %v5443_v60, %v1624_v57  ;;  %v6447_v57 = vld [vmem:[#allocation75_spill] sm:$0xff]  ;;  %v6459_v60 = vld [vmem:[#allocation81_spill] sm:$0xff] }
 0x53d   :  { %v1629_v40 = vsub.f32 %v5445_v22, %v1625_v44  ;;  %v6449_v44 = vld [vmem:[#allocation30_spill] sm:$0xff]  ;;  %v6460_v22 = vld [vmem:[#allocation40_spill] sm:$0xff] }
 0x53e   :  { %v1632_v49 = vrot.slane %v1628_v33, 7  ;;  %v6450_v33 = vld [vmem:[#allocation76_spill] sm:$0xff] }
 0x53f   :  { %v1633_v4 = vrot.slane %v1629_v40, 7  ;;  %v6451_v40 = vld [vmem:[#allocation77_spill] sm:$0xff] }
 0x540   :  { %v1636_v47 = vmul.f32 %v1632_v49, %v1606_v10  ;;  %v6452_v10 = vld [vmem:[#allocation32_spill] sm:$0xff]  ;;  %v6453_v49 = vld [vmem:[#allocation34_spill] sm:$0xff] }
 0x541   :  { %v1637_v37 = vmul.f32 %v1633_v4, %v1607_v46  ;;  %v6454_v46 = vld [vmem:[#allocation78_spill] sm:$0xff]  ;;  %v6455_v4 = vld [vmem:[#allocation79_spill] sm:$0xff] }
 0x542   :  { %v5560_v52 = vadd.f32 %v4637_v54, %v1636_v47  ;;  %v6444_v54 = vld [vmem:[#allocation24_spill] sm:$0xff] }
 0x543   :  { %v5562_v12 = vadd.f32 %v4639_v18, %v1637_v37  ;;  %v6445_v18 = vld [vmem:[#allocation26_spill] sm:$0xff]  ;;  %v6456_v47 = vld [vmem:[#allocation36_spill] sm:$0xff] }
 0x544   :  { %6440 = vst [vmem:[#allocation62_spill] sm:$0xff] %v5560_v52  ;;  %v5566_v8 = vrot.slane %v5560_v52, 3  ;;  %v6457_v37 = vld [vmem:[#allocation38_spill] sm:$0xff] }
 0x545   :  { %6441 = vst [vmem:[#allocation63_spill] sm:$0xff] %v5562_v12  ;;  %v1643_v34 = vrot.slane %v5562_v12, 3 }
 0x547   :  { %1710 = vmatprep.mubr.f32.mxu1 %v1643_v34  ;;  %1781 = vmatprep.mubr.f32.mxu0 %v1643_v34 }
 0x548   :  { %1711 = vmatmul.mubr.f32.vlgmr.msra.gmra.mrb[14].mxu1 %v5566_v8  ;;  %1782 = vmatmul.mubr.f32.vlgmr.msra.gmra.mrb[16].mxu0 %v5566_v8 }
 0x549   :  { %3915 = vmatpush1.bf16.msra.mxu1 %v6250_v16  ;;  %1852 = vmatprep.mubr.f32.mxu1 %v1643_v34  ;;  %v6458_v34 = vld [vmem:[#allocation80_spill] sm:$0xff] }
 0x54a   :  { %3917 = vmatprep.subr.bf16.mxu1 %v6251_v28  ;;  %3979 = vmatpush1.bf16.msra.mxu0 %v4821_v2 }
 0x54b   :  { %3981 = vmatprep.subr.bf16.mxu0 %v4824_v7 }
 0x54d   :  { %3919 = vmatpush1.bf16.msra.mxu1 %v5016_v24 }
 0x54e   :  { %3921 = vmatprep.subr.bf16.mxu1 %v5021_v56  ;;  %3983 = vmatpush1.bf16.msra.mxu0 %v4831_v14 }
 0x54f   :  { %3985 = vmatprep.subr.bf16.mxu0 %v4834_v19 }
 0x551   :  { %3923 = vmatpush1.bf16.msra.mxu1 %v5029_v5 }
 0x552   :  { %3925 = vmatprep.subr.bf16.mxu1 %v5034_v9  ;;  %3987 = vmatpush1.bf16.msra.mxu0 %v4839_v26 }
 0x553   :  { %3989 = vmatprep.subr.bf16.mxu0 %v4842_v31 }
 0x555   :  { %3927 = vmatpush1.bf16.msra.mxu1 %v6252_v59 }
 0x556   :  { %3929 = vmatprep.subr.bf16.mxu1 %v6253_v11  ;;  %3991 = vmatpush1.bf16.msra.mxu0 %v4845_v38 }
 0x557   :  { %3993 = vmatprep.subr.bf16.mxu0 %v4850_v43 }
 0x559   :  { %3931 = vmatpush1.bf16.msra.mxu1 %v6254_v51 }
 0x55a   :  { %3933 = vmatprep.subr.bf16.mxu1 %v6255_v42  ;;  %3995 = vmatpush1.bf16.msra.mxu0 %v4856_v50 }
 0x55b   :  { %3997 = vmatprep.subr.bf16.mxu0 %v4861_v55 }
 0x55d   :  { %3935 = vmatpush1.bf16.msra.mxu1 %v6256_v20 }
 0x55e   :  { %3937 = vmatprep.subr.bf16.mxu1 %v6257_v62  ;;  %3999 = vmatpush1.bf16.msra.mxu0 %v4871_v1 }
 0x55f   :  { %4001 = vmatprep.subr.bf16.mxu0 %v4876_v63 }
 0x561   :  { %3939 = vmatpush1.bf16.msra.mxu1 %v6258_v30 }
 0x562   :  { %3941 = vmatprep.subr.bf16.mxu1 %v6259_v36  ;;  %4003 = vmatpush1.bf16.msra.mxu0 %v4883_v15 }
 0x563   :  { %4005 = vmatprep.subr.bf16.mxu0 %v4888_v21 }
 0x565   :  { %3943 = vmatpush1.bf16.msra.mxu1 %v6260_v48 }
 0x566   :  { %3945 = vmatprep.subr.bf16.mxu1 %v6261_v25  ;;  %4007 = vmatpush1.bf16.msra.mxu0 %v4895_v29 }
 0x567   :  { %4009 = vmatprep.subr.bf16.mxu0 %v4900_v35 }
 0x569   :  { %3947 = vmatpush1.bf16.msra.mxu1 %v6262_v41 }
 0x56a   :  { %3949 = vmatprep.subr.bf16.mxu1 %v6263_v39  ;;  %4011 = vmatpush1.bf16.msra.mxu0 %v4907_v45 }
 0x56b   :  { %4013 = vmatprep.subr.bf16.mxu0 %v4912_v53 }
 0x56d   :  { %3951 = vmatpush1.bf16.msra.mxu1 %v6442_v27 }
 0x56e   :  { %3953 = vmatprep.subr.bf16.mxu1 %v6443_v58  ;;  %4015 = vmatpush1.bf16.msra.mxu0 %v6444_v54 }
 0x56f   :  { %4017 = vmatprep.subr.bf16.mxu0 %v6445_v18 }
 0x571   :  { %3955 = vmatpush1.bf16.msra.mxu1 %v6446_v23 }
 0x572   :  { %3957 = vmatprep.subr.bf16.mxu1 %v6447_v57  ;;  %4019 = vmatpush1.bf16.msra.mxu0 %v6448_v6  ;;  %v6502_v6 = vld [vmem:[#allocation85_spill] sm:$0xff]  ;;  %v6503_v57 = vld [vmem:[#allocation86_spill] sm:$0xff] }
 0x573   :  { %4021 = vmatprep.subr.bf16.mxu0 %v6449_v44 }
 0x575   :  { %3959 = vmatpush1.bf16.msra.mxu1 %v6450_v33  ;;  %v6461_v33 = vld [vmem:[#allocation42_spill] sm:$0xff] }
 0x576   :  { %3961 = vmatprep.subr.bf16.mxu1 %v6451_v40  ;;  %4023 = vmatpush1.bf16.msra.mxu0 %v6452_v10  ;;  %v6462_v40 = vld [vmem:[#allocation82_spill] sm:$0xff]  ;;  %v6463_v10 = vld [vmem:[#allocation83_spill] sm:$0xff] }
 0x577   :  { %4025 = vmatprep.subr.bf16.mxu0 %v6453_v49  ;;  %v6464_v49 = vld [vmem:[#allocation44_spill] sm:$0xff] }
 0x579   :  { %3963 = vmatpush1.bf16.msra.mxu1 %v6454_v46  ;;  %v6465_v46 = vld [vmem:[#allocation46_spill] sm:$0xff] }
 0x57a   :  { %3965 = vmatprep.subr.bf16.mxu1 %v6455_v4  ;;  %4027 = vmatpush1.bf16.msra.mxu0 %v6456_v47  ;;  %v6466_v4 = vld [vmem:[#allocation84_spill] sm:$0xff] }
 0x57b   :  { %4029 = vmatprep.subr.bf16.mxu0 %v6457_v37  ;;  %v6467_v47 = vld [vmem:[#allocation12_spill] sm:$0xff] }
 0x57c   :  { %v6468_v37 = vld [vmem:[#allocation48_spill] sm:$0xff] }
 0x57d   :  { %3967 = vmatpush1.bf16.msra.mxu1 %v6458_v34  ;;  %v6469_v34 = vld [vmem:[#allocation50_spill] sm:$0xff] }
 0x57e   :  { %3969 = vmatprep.subr.bf16.mxu1 %v6459_v60  ;;  %4031 = vmatpush1.bf16.msra.mxu0 %v6460_v22  ;;  %v6470_v22 = vld [vmem:[#allocation13_spill] sm:$0xff] }
 0x57f   :  { %4033 = vmatprep.subr.bf16.mxu0 %v6461_v33  ;;  %v6471_v33 = vld [vmem:[#allocation14_spill] sm:$0xff] }
 0x581   :  { %3971 = vmatpush1.bf16.msra.mxu1 %v6462_v40  ;;  %v6472_v40 = vld [vmem:[#allocation15_spill] sm:$0xff] }
 0x582   :  { %3973 = vmatprep.subr.bf16.mxu1 %v6463_v10  ;;  %4035 = vmatpush1.bf16.msra.mxu0 %v6464_v49  ;;  %v6473_v10 = vld [vmem:[#allocation16_spill] sm:$0xff]  ;;  %v6474_v49 = vld [vmem:[#allocation17_spill] sm:$0xff] }
 0x583   :  { %4037 = vmatprep.subr.bf16.mxu0 %v6465_v46  ;;  %v6475_v46 = vld [vmem:[#allocation18_spill] sm:$0xff] }
 0x585   :  { %3975 = vmatpush1.bf16.msra.mxu1 %v6466_v4  ;;  %v6476_v4 = vld [vmem:[#allocation19_spill] sm:$0xff] }
 0x586   :  { %4041 = vmatprep.subr.bf16.mxu1 %v6467_v47  ;;  %4039 = vmatpush1.bf16.msra.mxu0 %v6468_v37  ;;  %v6477_v47 = vld [vmem:[#allocation20_spill] sm:$0xff]  ;;  %v6478_v37 = vld [vmem:[#allocation21_spill] sm:$0xff] }
 0x587   :  { %4105 = vmatprep.subr.bf16.mxu0 %v6469_v34  ;;  %v6479_v34 = vld [vmem:[#allocation22_spill] sm:$0xff] }
 0x588   :  { %1853 = vmatmul.mubr.f32.vlgmr.msra.gmra.mrb[16].mxu1 %v5566_v8  ;;  %v6480_v8 = vld [vmem:[#allocation23_spill] sm:$0xff] }
 0x589   :  { %4043 = vmatpush1.bf16.msra.mxu1 %v6470_v22  ;;  %v6481_v22 = vld [vmem:[#allocation25_spill] sm:$0xff] }
 0x58a   :  { %4045 = vmatprep.subr.bf16.mxu1 %v6471_v33  ;;  %v6482_v33 = vld [vmem:[#allocation27_spill] sm:$0xff] }
 0x58d   :  { %4047 = vmatpush1.bf16.msra.mxu1 %v6472_v40  ;;  %v6483_v40 = vld [vmem:[#allocation29_spill] sm:$0xff] }
 0x58e   :  { %4049 = vmatprep.subr.bf16.mxu1 %v6473_v10  ;;  %v6484_v10 = vld [vmem:[#allocation31_spill] sm:$0xff] }
 0x591   :  { %4051 = vmatpush1.bf16.msra.mxu1 %v6474_v49  ;;  %v6485_v49 = vld [vmem:[#allocation33_spill] sm:$0xff] }
 0x592   :  { %4053 = vmatprep.subr.bf16.mxu1 %v6475_v46  ;;  %v6486_v46 = vld [vmem:[#allocation35_spill] sm:$0xff] }
 0x595   :  { %4055 = vmatpush1.bf16.msra.mxu1 %v6476_v4  ;;  %v6487_v4 = vld [vmem:[#allocation37_spill] sm:$0xff] }
 0x596   :  { %4057 = vmatprep.subr.bf16.mxu1 %v6477_v47  ;;  %v6488_v47 = vld [vmem:[#allocation39_spill] sm:$0xff] }
 0x599   :  { %4059 = vmatpush1.bf16.msra.mxu1 %v6478_v37  ;;  %v6489_v37 = vld [vmem:[#allocation41_spill] sm:$0xff] }
 0x59a   :  { %4061 = vmatprep.subr.bf16.mxu1 %v6479_v34  ;;  %v6490_v34 = vld [vmem:[#allocation43_spill] sm:$0xff] }
 0x59d   :  { %4063 = vmatpush1.bf16.msra.mxu1 %v6480_v8  ;;  %v6491_v8 = vld [vmem:[#allocation45_spill] sm:$0xff] }
 0x59e   :  { %4065 = vmatprep.subr.bf16.mxu1 %v6481_v22  ;;  %v6492_v22 = vld [vmem:[#allocation47_spill] sm:$0xff] }
 0x5a1   :  { %4067 = vmatpush1.bf16.msra.mxu1 %v6482_v33  ;;  %v6493_v33 = vld [vmem:[#allocation49_spill] sm:$0xff] }
 0x5a2   :  { %4069 = vmatprep.subr.bf16.mxu1 %v6483_v40  ;;  %v6494_v40 = vld [vmem:[#allocation51_spill] sm:$0xff] }
 0x5a5   :  { %4071 = vmatpush1.bf16.msra.mxu1 %v6484_v10  ;;  %v6495_v10 = vld [vmem:[#allocation53_spill] sm:$0xff] }
 0x5a6   :  { %4073 = vmatprep.subr.bf16.mxu1 %v6485_v49  ;;  %v6496_v49 = vld [vmem:[#allocation55_spill] sm:$0xff] }
 0x5a9   :  { %4075 = vmatpush1.bf16.msra.mxu1 %v6486_v46  ;;  %v6497_v46 = vld [vmem:[#allocation56_spill] sm:$0xff] }
 0x5aa   :  { %4077 = vmatprep.subr.bf16.mxu1 %v6487_v4  ;;  %v6498_v4 = vld [vmem:[#allocation57_spill] sm:$0xff] }
 0x5ad   :  { %4079 = vmatpush1.bf16.msra.mxu1 %v6488_v47  ;;  %v6499_v47 = vld [vmem:[#allocation58_spill] sm:$0xff] }
 0x5ae   :  { %4081 = vmatprep.subr.bf16.mxu1 %v6489_v37  ;;  %v6500_v37 = vld [vmem:[#allocation59_spill] sm:$0xff] }
 0x5b1   :  { %4083 = vmatpush1.bf16.msra.mxu1 %v6490_v34  ;;  %v6501_v34 = vld [vmem:[#allocation11_spill] sm:$0xff] }
 0x5b2   :  { %4085 = vmatprep.subr.bf16.mxu1 %v6491_v8 }
 0x5b5   :  { %4087 = vmatpush1.bf16.msra.mxu1 %v6492_v22 }
 0x5b6   :  { %4089 = vmatprep.subr.bf16.mxu1 %v6493_v33 }
 0x5b9   :  { %4091 = vmatpush1.bf16.msra.mxu1 %v6494_v40 }
 0x5ba   :  { %4093 = vmatprep.subr.bf16.mxu1 %v6495_v10 }
 0x5bd   :  { %4095 = vmatpush1.bf16.msra.mxu1 %v6496_v49 }
 0x5be   :  { %4097 = vmatprep.subr.bf16.mxu1 %v6497_v46 }
 0x5c1   :  { %4099 = vmatpush1.bf16.msra.mxu1 %v6498_v4 }
 0x5c2   :  { %4101 = vmatprep.subr.bf16.mxu1 %v6499_v47 }
 0x5c5   :  { %4103 = vmatpush1.bf16.msra.mxu1 %v6500_v37 }
 0x5c6   :  { %4169 = vmatprep.subr.bf16.mxu1 %v6501_v34 }
 0x61b   :  { %v1712_v8 = vpop.f32.mrb[14].mxu1  ;;  %v1783_v22 = vpop.f32.mrb[16].mxu0 }
 0x61c   :  { %v1714_v60 = vpop.f32.mrb[15].mxu1  ;;  %v1785_v33 = vpop.f32.mrb[17].mxu0  ;;  %v1861_v44 = vrot.slane %v1712_v8, 4  ;;  %v1877_v4 = vrot.slane %v1783_v22, 4 }
 0x61d   :  { %v1862_v40 = vrot.slane %v1714_v60, 4  ;;  %v1878_v18 = vrot.slane %v1785_v33, 4 }
 0x61e   :  { %v1865_v10 = vadd.f32 %v1861_v44, %v6502_v6  ;;  %v1881_v34 = vadd.f32 %v1877_v4, %v6311_v61 }
 0x61f   :  { %v1866_v49 = vadd.f32 %v1862_v40, %v6503_v57  ;;  %v1882_v58 = vadd.f32 %v1878_v18, %v5194_v13 }
 0x620   :  { %v1867_v23 = vmul.f32 0.5, %v1865_v10  ;;  %v1883_v10 = vmul.f32 0.5, %v1881_v34 }
 0x621   :  { %v1868_v46 = vmul.f32 0.5, %v1866_v49 }
 0x622   :  { %4640 = vtanh.f32 %v1867_v23 }
 0x623   :  { %4642 = vtanh.f32 %v1868_v46  ;;  %v1884_v46 = vmul.f32 0.5, %v1882_v58 }
 0x624   :  { %4644 = vtanh.f32 %v1883_v10 }
 0x625   :  { %4646 = vtanh.f32 %v1884_v46 }
 0x62c   :  { %v4641_v47 = vpop.eup %4640 }
 0x62d   :  { %v4643_v37 = vpop.eup %4642  ;;  %v1871_v54 = vmul.f32 0.5, %v4641_v47 }
 0x62e   :  { %v1872_v8 = vmul.f32 0.5, %v4643_v37 }
 0x62f   :  { %v1873_v49 = vadd.f32 0.5, %v1871_v54 }
 0x630   :  { %v1874_v22 = vadd.f32 0.5, %v1872_v8 }
 0x65b   :  { %v1854_v27 = vpop.f32.mrb[16].mxu1 }
 0x65c   :  { %v1891_v60 = vadd.f32 %v1854_v27, %v5198_v0  ;;  %v1856_v44 = vpop.f32.mrb[17].mxu1  ;;  %v4645_v27 = vpop.eup %4644 }
 0x65d   :  { %v1892_v40 = vadd.f32 %v1856_v44, %v5200_v17  ;;  %v4647_v47 = vpop.eup %4646  ;;  %v1887_v34 = vmul.f32 0.5, %v4645_v27  ;;  %v6504_v27 = vld [vmem:[#allocation72_spill] sm:$0xff] }
 0x65e   :  { %v1895_v23 = vrot.slane %v1891_v60, 4  ;;  %v1888_v60 = vmul.f32 0.5, %v4647_v47  ;;  %v6505_v47 = vld [vmem:[#allocation73_spill] sm:$0xff] }
 0x65f   :  { %v1896_v57 = vrot.slane %v1892_v40, 4  ;;  %v1889_v40 = vadd.f32 0.5, %v1887_v34  ;;  %v6508_v34 = vld [vmem:[#allocation74_spill] sm:$0xff] }
 0x660   :  { %v1899_v33 = vmul.f32 %v1895_v23, %v1873_v49  ;;  %v1890_v49 = vadd.f32 0.5, %v1888_v60  ;;  %v6510_v60 = vld [vmem:[#allocation28_spill] sm:$0xff] }
 0x661   :  { %v1900_v6 = vmul.f32 %v1896_v57, %v1874_v22 }
 0x662   :  { %v1901_v4 = vadd.f32 %v1899_v33, %v5204_v3 }
 0x663   :  { %v1902_v18 = vadd.f32 %v1900_v6, %v5206_v32 }
 0x664   :  { %4648 = vtanh.f32 %v1901_v4 }
 0x665   :  { %4650 = vtanh.f32 %v1902_v18 }
 0x66e   :  { %v4649_v37 = vpop.eup %4648 }
 0x66f   :  { %v4651_v44 = vpop.eup %4650  ;;  %v1907_v54 = vrot.slane %v4649_v37, 1 }
 0x670   :  { %v1908_v58 = vrot.slane %v4651_v44, 1 }
 0x671   :  { %v1911_v8 = vsub.f32 %v5560_v52, %v1907_v54  ;;  %v6509_v54 = vld [vmem:[#allocation75_spill] sm:$0xff]  ;;  %v6521_v52 = vld [vmem:[#allocation81_spill] sm:$0xff] }
 0x672   :  { %v1912_v57 = vsub.f32 %v5562_v12, %v1908_v58  ;;  %v6511_v58 = vld [vmem:[#allocation30_spill] sm:$0xff]  ;;  %v6522_v12 = vld [vmem:[#allocation40_spill] sm:$0xff] }
 0x673   :  { %v1915_v10 = vrot.slane %v1911_v8, 7  ;;  %v6512_v8 = vld [vmem:[#allocation76_spill] sm:$0xff] }
 0x674   :  { %v1916_v23 = vrot.slane %v1912_v57, 7  ;;  %v6513_v57 = vld [vmem:[#allocation77_spill] sm:$0xff] }
 0x675   :  { %v1919_v46 = vmul.f32 %v1915_v10, %v1889_v40  ;;  %v6514_v40 = vld [vmem:[#allocation32_spill] sm:$0xff]  ;;  %v6515_v10 = vld [vmem:[#allocation34_spill] sm:$0xff] }
 0x676   :  { %v1920_v6 = vmul.f32 %v1916_v23, %v1890_v49  ;;  %v6516_v49 = vld [vmem:[#allocation78_spill] sm:$0xff]  ;;  %v6517_v23 = vld [vmem:[#allocation79_spill] sm:$0xff] }
 0x677   :  { %v5677_v22 = vadd.f32 %v4649_v37, %v1919_v46  ;;  %v6506_v37 = vld [vmem:[#allocation24_spill] sm:$0xff] }
 0x678   :  { %v5679_v33 = vadd.f32 %v4651_v44, %v1920_v6  ;;  %v6507_v44 = vld [vmem:[#allocation26_spill] sm:$0xff]  ;;  %v6518_v46 = vld [vmem:[#allocation36_spill] sm:$0xff] }
 0x679   :  { %v5683_v18 = vrot.slane %v5677_v22, 4  ;;  %v6519_v6 = vld [vmem:[#allocation38_spill] sm:$0xff] }
 0x67a   :  { %v1926_v4 = vrot.slane %v5679_v33, 4 }
 0x67c   :  { %1993 = vmatprep.mubr.f32.mxu0 %v1926_v4  ;;  %2064 = vmatprep.mubr.f32.mxu1 %v1926_v4 }
 0x67d   :  { %1994 = vmatmul.mubr.f32.vlgmr.msra.gmra.mrb[18].mxu0 %v5683_v18  ;;  %2065 = vmatmul.mubr.f32.vlgmr.msra.gmra.mrb[18].mxu1 %v5683_v18 }
 0x67e   :  { %4107 = vmatpush1.bf16.msra.mxu0 %v6250_v16  ;;  %2135 = vmatprep.mubr.f32.mxu0 %v1926_v4  ;;  %v6520_v4 = vld [vmem:[#allocation80_spill] sm:$0xff] }
 0x67f   :  { %4109 = vmatprep.subr.bf16.mxu0 %v6251_v28  ;;  %4171 = vmatpush1.bf16.msra.mxu1 %v4821_v2 }
 0x680   :  { %4173 = vmatprep.subr.bf16.mxu1 %v4824_v7 }
 0x682   :  { %4111 = vmatpush1.bf16.msra.mxu0 %v5016_v24 }
 0x683   :  { %4113 = vmatprep.subr.bf16.mxu0 %v5021_v56  ;;  %4175 = vmatpush1.bf16.msra.mxu1 %v4831_v14 }
 0x684   :  { %4177 = vmatprep.subr.bf16.mxu1 %v4834_v19 }
 0x686   :  { %4115 = vmatpush1.bf16.msra.mxu0 %v5029_v5 }
 0x687   :  { %4117 = vmatprep.subr.bf16.mxu0 %v5034_v9  ;;  %4179 = vmatpush1.bf16.msra.mxu1 %v4839_v26 }
 0x688   :  { %4181 = vmatprep.subr.bf16.mxu1 %v4842_v31 }
 0x68a   :  { %4119 = vmatpush1.bf16.msra.mxu0 %v6252_v59 }
 0x68b   :  { %4121 = vmatprep.subr.bf16.mxu0 %v6253_v11  ;;  %4183 = vmatpush1.bf16.msra.mxu1 %v4845_v38 }
 0x68c   :  { %4185 = vmatprep.subr.bf16.mxu1 %v4850_v43 }
 0x68e   :  { %4123 = vmatpush1.bf16.msra.mxu0 %v6254_v51 }
 0x68f   :  { %4125 = vmatprep.subr.bf16.mxu0 %v6255_v42  ;;  %4187 = vmatpush1.bf16.msra.mxu1 %v4856_v50 }
 0x690   :  { %4189 = vmatprep.subr.bf16.mxu1 %v4861_v55 }
 0x692   :  { %4127 = vmatpush1.bf16.msra.mxu0 %v6256_v20 }
 0x693   :  { %4129 = vmatprep.subr.bf16.mxu0 %v6257_v62  ;;  %4191 = vmatpush1.bf16.msra.mxu1 %v4871_v1 }
 0x694   :  { %4193 = vmatprep.subr.bf16.mxu1 %v4876_v63 }
 0x696   :  { %4131 = vmatpush1.bf16.msra.mxu0 %v6258_v30 }
 0x697   :  { %4133 = vmatprep.subr.bf16.mxu0 %v6259_v36  ;;  %4195 = vmatpush1.bf16.msra.mxu1 %v4883_v15 }
 0x698   :  { %4197 = vmatprep.subr.bf16.mxu1 %v4888_v21 }
 0x69a   :  { %4135 = vmatpush1.bf16.msra.mxu0 %v6260_v48 }
 0x69b   :  { %4137 = vmatprep.subr.bf16.mxu0 %v6261_v25  ;;  %4199 = vmatpush1.bf16.msra.mxu1 %v4895_v29 }
 0x69c   :  { %4201 = vmatprep.subr.bf16.mxu1 %v4900_v35 }
 0x69e   :  { %4139 = vmatpush1.bf16.msra.mxu0 %v6262_v41 }
 0x69f   :  { %4141 = vmatprep.subr.bf16.mxu0 %v6263_v39  ;;  %4203 = vmatpush1.bf16.msra.mxu1 %v4907_v45 }
 0x6a0   :  { %4205 = vmatprep.subr.bf16.mxu1 %v4912_v53 }
 0x6a2   :  { %4143 = vmatpush1.bf16.msra.mxu0 %v6504_v27 }
 0x6a3   :  { %4145 = vmatprep.subr.bf16.mxu0 %v6505_v47  ;;  %4207 = vmatpush1.bf16.msra.mxu1 %v6506_v37 }
 0x6a4   :  { %4209 = vmatprep.subr.bf16.mxu1 %v6507_v44 }
 0x6a6   :  { %4147 = vmatpush1.bf16.msra.mxu0 %v6508_v34 }
 0x6a7   :  { %4149 = vmatprep.subr.bf16.mxu0 %v6509_v54  ;;  %4211 = vmatpush1.bf16.msra.mxu1 %v6510_v60  ;;  %v6564_v60 = vld [vmem:[#allocation85_spill] sm:$0xff]  ;;  %v6565_v54 = vld [vmem:[#allocation86_spill] sm:$0xff] }
 0x6a8   :  { %4213 = vmatprep.subr.bf16.mxu1 %v6511_v58 }
 0x6aa   :  { %4151 = vmatpush1.bf16.msra.mxu0 %v6512_v8  ;;  %v6523_v8 = vld [vmem:[#allocation42_spill] sm:$0xff] }
 0x6ab   :  { %4153 = vmatprep.subr.bf16.mxu0 %v6513_v57  ;;  %4215 = vmatpush1.bf16.msra.mxu1 %v6514_v40  ;;  %v6524_v57 = vld [vmem:[#allocation82_spill] sm:$0xff]  ;;  %v6525_v40 = vld [vmem:[#allocation83_spill] sm:$0xff] }
 0x6ac   :  { %4217 = vmatprep.subr.bf16.mxu1 %v6515_v10  ;;  %v6526_v10 = vld [vmem:[#allocation44_spill] sm:$0xff] }
 0x6ae   :  { %4155 = vmatpush1.bf16.msra.mxu0 %v6516_v49  ;;  %v6527_v49 = vld [vmem:[#allocation46_spill] sm:$0xff] }
 0x6af   :  { %4157 = vmatprep.subr.bf16.mxu0 %v6517_v23  ;;  %4219 = vmatpush1.bf16.msra.mxu1 %v6518_v46  ;;  %v6528_v23 = vld [vmem:[#allocation84_spill] sm:$0xff] }
 0x6b0   :  { %4221 = vmatprep.subr.bf16.mxu1 %v6519_v6  ;;  %v6529_v46 = vld [vmem:[#allocation12_spill] sm:$0xff] }
 0x6b1   :  { %v6530_v6 = vld [vmem:[#allocation48_spill] sm:$0xff] }
 0x6b2   :  { %4159 = vmatpush1.bf16.msra.mxu0 %v6520_v4  ;;  %v6531_v4 = vld [vmem:[#allocation50_spill] sm:$0xff] }
 0x6b3   :  { %4161 = vmatprep.subr.bf16.mxu0 %v6521_v52  ;;  %4223 = vmatpush1.bf16.msra.mxu1 %v6522_v12  ;;  %v6532_v12 = vld [vmem:[#allocation13_spill] sm:$0xff] }
 0x6b4   :  { %4225 = vmatprep.subr.bf16.mxu1 %v6523_v8  ;;  %v6533_v8 = vld [vmem:[#allocation14_spill] sm:$0xff] }
 0x6b6   :  { %4163 = vmatpush1.bf16.msra.mxu0 %v6524_v57  ;;  %v6534_v57 = vld [vmem:[#allocation15_spill] sm:$0xff] }
 0x6b7   :  { %4165 = vmatprep.subr.bf16.mxu0 %v6525_v40  ;;  %4227 = vmatpush1.bf16.msra.mxu1 %v6526_v10  ;;  %v6535_v40 = vld [vmem:[#allocation16_spill] sm:$0xff]  ;;  %v6536_v10 = vld [vmem:[#allocation17_spill] sm:$0xff] }
 0x6b8   :  { %4229 = vmatprep.subr.bf16.mxu1 %v6527_v49  ;;  %v6537_v49 = vld [vmem:[#allocation18_spill] sm:$0xff] }
 0x6ba   :  { %4167 = vmatpush1.bf16.msra.mxu0 %v6528_v23  ;;  %v6538_v23 = vld [vmem:[#allocation19_spill] sm:$0xff] }
 0x6bb   :  { %4233 = vmatprep.subr.bf16.mxu0 %v6529_v46  ;;  %4231 = vmatpush1.bf16.msra.mxu1 %v6530_v6  ;;  %v6539_v46 = vld [vmem:[#allocation20_spill] sm:$0xff]  ;;  %v6540_v6 = vld [vmem:[#allocation21_spill] sm:$0xff] }
 0x6bc   :  { %4297 = vmatprep.subr.bf16.mxu1 %v6531_v4  ;;  %v6541_v4 = vld [vmem:[#allocation22_spill] sm:$0xff] }
 0x6bd   :  { %2136 = vmatmul.mubr.f32.vlgmr.msra.gmra.mrb[20].mxu0 %v5683_v18  ;;  %v6542_v18 = vld [vmem:[#allocation23_spill] sm:$0xff] }
 0x6be   :  { %4235 = vmatpush1.bf16.msra.mxu0 %v6532_v12  ;;  %v6543_v12 = vld [vmem:[#allocation25_spill] sm:$0xff] }
 0x6bf   :  { %4237 = vmatprep.subr.bf16.mxu0 %v6533_v8  ;;  %v6544_v8 = vld [vmem:[#allocation27_spill] sm:$0xff] }
 0x6c2   :  { %4239 = vmatpush1.bf16.msra.mxu0 %v6534_v57  ;;  %v6545_v57 = vld [vmem:[#allocation29_spill] sm:$0xff] }
 0x6c3   :  { %4241 = vmatprep.subr.bf16.mxu0 %v6535_v40  ;;  %v6546_v40 = vld [vmem:[#allocation31_spill] sm:$0xff] }
 0x6c6   :  { %4243 = vmatpush1.bf16.msra.mxu0 %v6536_v10  ;;  %v6547_v10 = vld [vmem:[#allocation33_spill] sm:$0xff] }
 0x6c7   :  { %4245 = vmatprep.subr.bf16.mxu0 %v6537_v49  ;;  %v6548_v49 = vld [vmem:[#allocation35_spill] sm:$0xff] }
 0x6ca   :  { %4247 = vmatpush1.bf16.msra.mxu0 %v6538_v23  ;;  %v6549_v23 = vld [vmem:[#allocation37_spill] sm:$0xff] }
 0x6cb   :  { %4249 = vmatprep.subr.bf16.mxu0 %v6539_v46  ;;  %v6550_v46 = vld [vmem:[#allocation39_spill] sm:$0xff] }
 0x6ce   :  { %4251 = vmatpush1.bf16.msra.mxu0 %v6540_v6  ;;  %v6551_v6 = vld [vmem:[#allocation41_spill] sm:$0xff] }
 0x6cf   :  { %4253 = vmatprep.subr.bf16.mxu0 %v6541_v4  ;;  %v6552_v4 = vld [vmem:[#allocation43_spill] sm:$0xff] }
 0x6d2   :  { %4255 = vmatpush1.bf16.msra.mxu0 %v6542_v18  ;;  %v6553_v18 = vld [vmem:[#allocation45_spill] sm:$0xff] }
 0x6d3   :  { %4257 = vmatprep.subr.bf16.mxu0 %v6543_v12  ;;  %v6554_v12 = vld [vmem:[#allocation47_spill] sm:$0xff] }
 0x6d6   :  { %4259 = vmatpush1.bf16.msra.mxu0 %v6544_v8  ;;  %v6555_v8 = vld [vmem:[#allocation49_spill] sm:$0xff] }
 0x6d7   :  { %4261 = vmatprep.subr.bf16.mxu0 %v6545_v57  ;;  %v6556_v57 = vld [vmem:[#allocation51_spill] sm:$0xff] }
 0x6da   :  { %4263 = vmatpush1.bf16.msra.mxu0 %v6546_v40  ;;  %v6557_v40 = vld [vmem:[#allocation53_spill] sm:$0xff] }
 0x6db   :  { %4265 = vmatprep.subr.bf16.mxu0 %v6547_v10  ;;  %v6558_v10 = vld [vmem:[#allocation55_spill] sm:$0xff] }
 0x6de   :  { %4267 = vmatpush1.bf16.msra.mxu0 %v6548_v49  ;;  %v6559_v49 = vld [vmem:[#allocation56_spill] sm:$0xff] }
 0x6df   :  { %4269 = vmatprep.subr.bf16.mxu0 %v6549_v23  ;;  %v6560_v23 = vld [vmem:[#allocation57_spill] sm:$0xff] }
 0x6e2   :  { %4271 = vmatpush1.bf16.msra.mxu0 %v6550_v46  ;;  %v6561_v46 = vld [vmem:[#allocation58_spill] sm:$0xff] }
 0x6e3   :  { %4273 = vmatprep.subr.bf16.mxu0 %v6551_v6  ;;  %v6562_v6 = vld [vmem:[#allocation59_spill] sm:$0xff] }
 0x6e6   :  { %4275 = vmatpush1.bf16.msra.mxu0 %v6552_v4  ;;  %v6563_v4 = vld [vmem:[#allocation11_spill] sm:$0xff] }
 0x6e7   :  { %4277 = vmatprep.subr.bf16.mxu0 %v6553_v18 }
 0x6ea   :  { %4279 = vmatpush1.bf16.msra.mxu0 %v6554_v12 }
 0x6eb   :  { %4281 = vmatprep.subr.bf16.mxu0 %v6555_v8 }
 0x6ee   :  { %4283 = vmatpush1.bf16.msra.mxu0 %v6556_v57 }
 0x6ef   :  { %4285 = vmatprep.subr.bf16.mxu0 %v6557_v40 }
 0x6f2   :  { %4287 = vmatpush1.bf16.msra.mxu0 %v6558_v10 }
 0x6f3   :  { %4289 = vmatprep.subr.bf16.mxu0 %v6559_v49 }
 0x6f6   :  { %4291 = vmatpush1.bf16.msra.mxu0 %v6560_v23 }
 0x6f7   :  { %4293 = vmatprep.subr.bf16.mxu0 %v6561_v46 }
 0x6fa   :  { %4295 = vmatpush1.bf16.msra.mxu0 %v6562_v6 }
 0x6fb   :  { %4361 = vmatprep.subr.bf16.mxu0 %v6563_v4 }
 0x750   :  { %v1995_v18 = vpop.f32.mrb[18].mxu0  ;;  %v2066_v12 = vpop.f32.mrb[18].mxu1 }
 0x751   :  { %v1997_v52 = vpop.f32.mrb[19].mxu0  ;;  %v2068_v8 = vpop.f32.mrb[19].mxu1  ;;  %v2144_v58 = vrot.slane %v1995_v18, 3  ;;  %v2160_v23 = vrot.slane %v2066_v12, 3 }
 0x752   :  { %v2145_v57 = vrot.slane %v1997_v52, 3  ;;  %v2161_v44 = vrot.slane %v2068_v8, 3 }
 0x753   :  { %v2148_v40 = vadd.f32 %v2144_v58, %v6564_v60  ;;  %v2164_v4 = vadd.f32 %v2160_v23, %v6311_v61 }
 0x754   :  { %v2149_v10 = vadd.f32 %v2145_v57, %v6565_v54  ;;  %v2165_v47 = vadd.f32 %v2161_v44, %v5194_v13 }
 0x755   :  { %v2150_v34 = vmul.f32 0.5, %v2148_v40  ;;  %v2166_v40 = vmul.f32 0.5, %v2164_v4 }
 0x756   :  { %v2151_v49 = vmul.f32 0.5, %v2149_v10 }
 0x757   :  { %4652 = vtanh.f32 %v2150_v34 }
 0x758   :  { %4654 = vtanh.f32 %v2151_v49  ;;  %v2167_v49 = vmul.f32 0.5, %v2165_v47 }
 0x759   :  { %4656 = vtanh.f32 %v2166_v40 }
 0x75a   :  { %4658 = vtanh.f32 %v2167_v49 }
 0x761   :  { %v4653_v46 = vpop.eup %4652 }
 0x762   :  { %v4655_v6 = vpop.eup %4654  ;;  %v2154_v37 = vmul.f32 0.5, %v4653_v46 }
 0x763   :  { %v2155_v18 = vmul.f32 0.5, %v4655_v6 }
 0x764   :  { %v2156_v10 = vadd.f32 0.5, %v2154_v37 }
 0x765   :  { %v2157_v12 = vadd.f32 0.5, %v2155_v18 }
 0x790   :  { %v2137_v27 = vpop.f32.mrb[20].mxu0 }
 0x791   :  { %v2174_v52 = vadd.f32 %v2137_v27, %v5198_v0  ;;  %v2139_v58 = vpop.f32.mrb[21].mxu0  ;;  %v4657_v27 = vpop.eup %4656 }
 0x792   :  { %v2175_v57 = vadd.f32 %v2139_v58, %v5200_v17  ;;  %v4659_v46 = vpop.eup %4658  ;;  %v2170_v4 = vmul.f32 0.5, %v4657_v27  ;;  %v6584_v27 = vld [vmem:[#allocation40_spill] sm:$0xff] }
 0x793   :  { %v2178_v34 = vrot.slane %v2174_v52, 3  ;;  %v2171_v52 = vmul.f32 0.5, %v4659_v46  ;;  %v6585_v46 = vld [vmem:[#allocation42_spill] sm:$0xff] }
 0x794   :  { %v2179_v54 = vrot.slane %v2175_v57, 3  ;;  %v2172_v57 = vadd.f32 0.5, %v2170_v4  ;;  %v6588_v4 = vld [vmem:[#allocation44_spill] sm:$0xff] }
 0x795   :  { %v2182_v8 = vmul.f32 %v2178_v34, %v2156_v10  ;;  %v2173_v10 = vadd.f32 0.5, %v2171_v52  ;;  %v6590_v52 = vld [vmem:[#allocation84_spill] sm:$0xff] }
 0x796   :  { %v2183_v60 = vmul.f32 %v2179_v54, %v2157_v12 }
 0x797   :  { %v2184_v23 = vadd.f32 %v2182_v8, %v5204_v3 }
 0x798   :  { %v2185_v44 = vadd.f32 %v2183_v60, %v5206_v32 }
 0x799   :  { %4660 = vtanh.f32 %v2184_v23 }
 0x79a   :  { %4662 = vtanh.f32 %v2185_v44 }
 0x7a3   :  { %v4661_v6 = vpop.eup %4660 }
 0x7a4   :  { %v4663_v58 = vpop.eup %4662  ;;  %v2190_v37 = vrot.slane %v4661_v6, 1 }
 0x7a5   :  { %v2191_v47 = vrot.slane %v4663_v58, 1 }
 0x7a6   :  { %v2194_v18 = vsub.f32 %v5677_v22, %v2190_v37  ;;  %v6589_v37 = vld [vmem:[#allocation46_spill] sm:$0xff] }
 0x7a7   :  { %v2195_v54 = vsub.f32 %v5679_v33, %v2191_v47  ;;  %v6591_v47 = vld [vmem:[#allocation12_spill] sm:$0xff] }
 0x7a8   :  { %v2198_v40 = vrot.slane %v2194_v18, 7  ;;  %v6592_v18 = vld [vmem:[#allocation48_spill] sm:$0xff] }
 0x7a9   :  { %v2199_v34 = vrot.slane %v2195_v54, 7  ;;  %v6593_v54 = vld [vmem:[#allocation50_spill] sm:$0xff] }
 0x7aa   :  { %v2202_v49 = vmul.f32 %v2198_v40, %v2172_v57  ;;  %v6594_v57 = vld [vmem:[#allocation13_spill] sm:$0xff]  ;;  %v6595_v40 = vld [vmem:[#allocation14_spill] sm:$0xff] }
 0x7ab   :  { %v2203_v60 = vmul.f32 %v2199_v34, %v2173_v10  ;;  %v6596_v10 = vld [vmem:[#allocation15_spill] sm:$0xff]  ;;  %v6597_v34 = vld [vmem:[#allocation16_spill] sm:$0xff] }
 0x7ac   :  { %v5794_v12 = vadd.f32 %v4661_v6, %v2202_v49  ;;  %v6586_v6 = vld [vmem:[#allocation82_spill] sm:$0xff]  ;;  %v6598_v49 = vld [vmem:[#allocation17_spill] sm:$0xff] }
 0x7ad   :  { %v5796_v8 = vadd.f32 %v4663_v58, %v2203_v60  ;;  %v6587_v58 = vld [vmem:[#allocation83_spill] sm:$0xff]  ;;  %v6599_v60 = vld [vmem:[#allocation18_spill] sm:$0xff] }
 0x7ae   :  { %v5800_v44 = vrot.slane %v5794_v12, 5 }
 0x7af   :  { %v2209_v23 = vrot.slane %v5796_v8, 5 }
 0x7b1   :  { %2276 = vmatprep.mubr.f32.mxu1 %v2209_v23  ;;  %2347 = vmatprep.mubr.f32.mxu0 %v2209_v23 }
 0x7b2   :  { %2277 = vmatmul.mubr.f32.vlgmr.msra.gmra.mrb[20].mxu1 %v5800_v44  ;;  %2348 = vmatmul.mubr.f32.vlgmr.msra.gmra.mrb[22].mxu0 %v5800_v44 }
 0x7b3   :  { %4299 = vmatpush1.bf16.msra.mxu1 %v6250_v16  ;;  %2418 = vmatprep.mubr.f32.mxu1 %v2209_v23  ;;  %v6600_v23 = vld [vmem:[#allocation19_spill] sm:$0xff] }
 0x7b4   :  { %4301 = vmatprep.subr.bf16.mxu1 %v6251_v28  ;;  %4363 = vmatpush1.bf16.msra.mxu0 %v4821_v2  ;;  %v6566_v2 = vld [vmem:[#allocation72_spill] sm:$0xff] }
 0x7b5   :  { %4365 = vmatprep.subr.bf16.mxu0 %v4824_v7  ;;  %v6567_v7 = vld [vmem:[#allocation73_spill] sm:$0xff] }
 0x7b7   :  { %4303 = vmatpush1.bf16.msra.mxu1 %v5016_v24 }
 0x7b8   :  { %4305 = vmatprep.subr.bf16.mxu1 %v5021_v56  ;;  %4367 = vmatpush1.bf16.msra.mxu0 %v4831_v14  ;;  %v6568_v14 = vld [vmem:[#allocation24_spill] sm:$0xff] }
 0x7b9   :  { %4369 = vmatprep.subr.bf16.mxu0 %v4834_v19  ;;  %v6569_v19 = vld [vmem:[#allocation26_spill] sm:$0xff] }
 0x7bb   :  { %4307 = vmatpush1.bf16.msra.mxu1 %v5029_v5 }
 0x7bc   :  { %4309 = vmatprep.subr.bf16.mxu1 %v5034_v9  ;;  %4371 = vmatpush1.bf16.msra.mxu0 %v4839_v26  ;;  %v6570_v26 = vld [vmem:[#allocation74_spill] sm:$0xff] }
 0x7bd   :  { %4373 = vmatprep.subr.bf16.mxu0 %v4842_v31  ;;  %v6571_v31 = vld [vmem:[#allocation75_spill] sm:$0xff] }
 0x7bf   :  { %4311 = vmatpush1.bf16.msra.mxu1 %v6252_v59 }
 0x7c0   :  { %4313 = vmatprep.subr.bf16.mxu1 %v6253_v11  ;;  %4375 = vmatpush1.bf16.msra.mxu0 %v4845_v38  ;;  %v6572_v38 = vld [vmem:[#allocation28_spill] sm:$0xff] }
 0x7c1   :  { %4377 = vmatprep.subr.bf16.mxu0 %v4850_v43  ;;  %v6573_v43 = vld [vmem:[#allocation30_spill] sm:$0xff] }
 0x7c3   :  { %4315 = vmatpush1.bf16.msra.mxu1 %v6254_v51 }
 0x7c4   :  { %4317 = vmatprep.subr.bf16.mxu1 %v6255_v42  ;;  %4379 = vmatpush1.bf16.msra.mxu0 %v4856_v50  ;;  %v6574_v50 = vld [vmem:[#allocation76_spill] sm:$0xff] }
 0x7c5   :  { %4381 = vmatprep.subr.bf16.mxu0 %v4861_v55  ;;  %v6575_v55 = vld [vmem:[#allocation77_spill] sm:$0xff] }
 0x7c7   :  { %4319 = vmatpush1.bf16.msra.mxu1 %v6256_v20 }
 0x7c8   :  { %4321 = vmatprep.subr.bf16.mxu1 %v6257_v62  ;;  %4383 = vmatpush1.bf16.msra.mxu0 %v4871_v1  ;;  %v6576_v1 = vld [vmem:[#allocation32_spill] sm:$0xff] }
 0x7c9   :  { %4385 = vmatprep.subr.bf16.mxu0 %v4876_v63  ;;  %v6577_v63 = vld [vmem:[#allocation34_spill] sm:$0xff] }
 0x7cb   :  { %4323 = vmatpush1.bf16.msra.mxu1 %v6258_v30 }
 0x7cc   :  { %4325 = vmatprep.subr.bf16.mxu1 %v6259_v36  ;;  %4387 = vmatpush1.bf16.msra.mxu0 %v4883_v15  ;;  %v6578_v15 = vld [vmem:[#allocation78_spill] sm:$0xff] }
 0x7cd   :  { %4389 = vmatprep.subr.bf16.mxu0 %v4888_v21  ;;  %v6579_v21 = vld [vmem:[#allocation79_spill] sm:$0xff] }
 0x7cf   :  { %4327 = vmatpush1.bf16.msra.mxu1 %v6260_v48 }
 0x7d0   :  { %4329 = vmatprep.subr.bf16.mxu1 %v6261_v25  ;;  %4391 = vmatpush1.bf16.msra.mxu0 %v4895_v29  ;;  %v6580_v29 = vld [vmem:[#allocation36_spill] sm:$0xff] }
 0x7d1   :  { %4393 = vmatprep.subr.bf16.mxu0 %v4900_v35  ;;  %v6581_v35 = vld [vmem:[#allocation38_spill] sm:$0xff] }
 0x7d3   :  { %4331 = vmatpush1.bf16.msra.mxu1 %v6262_v41 }
 0x7d4   :  { %4333 = vmatprep.subr.bf16.mxu1 %v6263_v39  ;;  %4395 = vmatpush1.bf16.msra.mxu0 %v4907_v45  ;;  %v6582_v45 = vld [vmem:[#allocation80_spill] sm:$0xff] }
 0x7d5   :  { %4397 = vmatprep.subr.bf16.mxu0 %v4912_v53  ;;  %v6583_v53 = vld [vmem:[#allocation81_spill] sm:$0xff] }
 0x7d7   :  { %4335 = vmatpush1.bf16.msra.mxu1 %v6566_v2 }
 0x7d8   :  { %4337 = vmatprep.subr.bf16.mxu1 %v6567_v7  ;;  %4399 = vmatpush1.bf16.msra.mxu0 %v6568_v14  ;;  %v6601_v14 = vld [vmem:[#allocation20_spill] sm:$0xff] }
 0x7d9   :  { %4401 = vmatprep.subr.bf16.mxu0 %v6569_v19  ;;  %v6602_v19 = vld [vmem:[#allocation21_spill] sm:$0xff] }
 0x7db   :  { %4339 = vmatpush1.bf16.msra.mxu1 %v6570_v26 }
 0x7dc   :  { %4341 = vmatprep.subr.bf16.mxu1 %v6571_v31  ;;  %4403 = vmatpush1.bf16.msra.mxu0 %v6572_v38  ;;  %v6603_v38 = vld [vmem:[#allocation22_spill] sm:$0xff] }
 0x7dd   :  { %4405 = vmatprep.subr.bf16.mxu0 %v6573_v43  ;;  %v6605_v43 = vld [vmem:[#allocation25_spill] sm:$0xff] }
 0x7df   :  { %4343 = vmatpush1.bf16.msra.mxu1 %v6574_v50 }
 0x7e0   :  { %4345 = vmatprep.subr.bf16.mxu1 %v6575_v55  ;;  %4407 = vmatpush1.bf16.msra.mxu0 %v6576_v1  ;;  %v6606_v1 = vld [vmem:[#allocation27_spill] sm:$0xff] }
 0x7e1   :  { %4409 = vmatprep.subr.bf16.mxu0 %v6577_v63  ;;  %v6607_v63 = vld [vmem:[#allocation29_spill] sm:$0xff] }
 0x7e3   :  { %4347 = vmatpush1.bf16.msra.mxu1 %v6578_v15 }
 0x7e4   :  { %4349 = vmatprep.subr.bf16.mxu1 %v6579_v21  ;;  %4411 = vmatpush1.bf16.msra.mxu0 %v6580_v29  ;;  %v6608_v29 = vld [vmem:[#allocation31_spill] sm:$0xff] }
 0x7e5   :  { %4413 = vmatprep.subr.bf16.mxu0 %v6581_v35  ;;  %v6609_v35 = vld [vmem:[#allocation33_spill] sm:$0xff] }
 0x7e7   :  { %4351 = vmatpush1.bf16.msra.mxu1 %v6582_v45 }
 0x7e8   :  { %4353 = vmatprep.subr.bf16.mxu1 %v6583_v53  ;;  %4415 = vmatpush1.bf16.msra.mxu0 %v6584_v27  ;;  %v6610_v27 = vld [vmem:[#allocation35_spill] sm:$0xff] }
 0x7e9   :  { %4417 = vmatprep.subr.bf16.mxu0 %v6585_v46  ;;  %v6611_v46 = vld [vmem:[#allocation37_spill] sm:$0xff] }
 0x7eb   :  { %4355 = vmatpush1.bf16.msra.mxu1 %v6586_v6 }
 0x7ec   :  { %4357 = vmatprep.subr.bf16.mxu1 %v6587_v58  ;;  %4419 = vmatpush1.bf16.msra.mxu0 %v6588_v4  ;;  %v6612_v4 = vld [vmem:[#allocation39_spill] sm:$0xff] }
 0x7ed   :  { %4421 = vmatprep.subr.bf16.mxu0 %v6589_v37  ;;  %v6613_v37 = vld [vmem:[#allocation41_spill] sm:$0xff] }
 0x7ef   :  { %4359 = vmatpush1.bf16.msra.mxu1 %v6590_v52 }
 0x7f0   :  { %4425 = vmatprep.subr.bf16.mxu1 %v6591_v47  ;;  %4423 = vmatpush1.bf16.msra.mxu0 %v6592_v18  ;;  %v6614_v47 = vld [vmem:[#allocation43_spill] sm:$0xff]  ;;  %v6615_v18 = vld [vmem:[#allocation45_spill] sm:$0xff] }
 0x7f1   :  { %4489 = vmatprep.subr.bf16.mxu0 %v6593_v54  ;;  %v6616_v54 = vld [vmem:[#allocation47_spill] sm:$0xff] }
 0x7f2   :  { %2419 = vmatmul.mubr.f32.vlgmr.msra.gmra.mrb[22].mxu1 %v5800_v44  ;;  %v6604_v44 = vld [vmem:[#allocation23_spill] sm:$0xff] }
 0x7f3   :  { %4427 = vmatpush1.bf16.msra.mxu1 %v6594_v57  ;;  %v6617_v57 = vld [vmem:[#allocation49_spill] sm:$0xff] }
 0x7f4   :  { %4429 = vmatprep.subr.bf16.mxu1 %v6595_v40  ;;  %v6618_v40 = vld [vmem:[#allocation51_spill] sm:$0xff] }
 0x7f7   :  { %4431 = vmatpush1.bf16.msra.mxu1 %v6596_v10  ;;  %v6619_v10 = vld [vmem:[#allocation53_spill] sm:$0xff] }
 0x7f8   :  { %4433 = vmatprep.subr.bf16.mxu1 %v6597_v34  ;;  %v6620_v34 = vld [vmem:[#allocation55_spill] sm:$0xff] }
 0x7fb   :  { %4435 = vmatpush1.bf16.msra.mxu1 %v6598_v49  ;;  %v6621_v49 = vld [vmem:[#allocation56_spill] sm:$0xff] }
 0x7fc   :  { %4437 = vmatprep.subr.bf16.mxu1 %v6599_v60  ;;  %v6622_v60 = vld [vmem:[#allocation57_spill] sm:$0xff] }
 0x7ff   :  { %4439 = vmatpush1.bf16.msra.mxu1 %v6600_v23  ;;  %v6623_v23 = vld [vmem:[#allocation58_spill] sm:$0xff] }
 0x800   :  { %4441 = vmatprep.subr.bf16.mxu1 %v6601_v14  ;;  %v6624_v14 = vld [vmem:[#allocation59_spill] sm:$0xff] }
 0x803   :  { %4443 = vmatpush1.bf16.msra.mxu1 %v6602_v19 }
 0x804   :  { %4445 = vmatprep.subr.bf16.mxu1 %v6603_v38 }
 0x807   :  { %4447 = vmatpush1.bf16.msra.mxu1 %v6604_v44 }
 0x808   :  { %4449 = vmatprep.subr.bf16.mxu1 %v6605_v43 }
 0x80b   :  { %4451 = vmatpush1.bf16.msra.mxu1 %v6606_v1 }
 0x80c   :  { %4453 = vmatprep.subr.bf16.mxu1 %v6607_v63 }
 0x80f   :  { %4455 = vmatpush1.bf16.msra.mxu1 %v6608_v29  ;;  %v6625_v29 = vld [vmem:[#allocation85_spill] sm:$0xff] }
 0x810   :  { %4457 = vmatprep.subr.bf16.mxu1 %v6609_v35 }
 0x813   :  { %4459 = vmatpush1.bf16.msra.mxu1 %v6610_v27  ;;  %v6626_v27 = vld [vmem:[#allocation86_spill] sm:$0xff] }
 0x814   :  { %4461 = vmatprep.subr.bf16.mxu1 %v6611_v46 }
 0x817   :  { %4463 = vmatpush1.bf16.msra.mxu1 %v6612_v4 }
 0x818   :  { %4465 = vmatprep.subr.bf16.mxu1 %v6613_v37 }
 0x81b   :  { %4467 = vmatpush1.bf16.msra.mxu1 %v6614_v47 }
 0x81c   :  { %4469 = vmatprep.subr.bf16.mxu1 %v6615_v18 }
 0x81f   :  { %4471 = vmatpush1.bf16.msra.mxu1 %v6616_v54 }
 0x820   :  { %4473 = vmatprep.subr.bf16.mxu1 %v6617_v57 }
 0x823   :  { %4475 = vmatpush1.bf16.msra.mxu1 %v6618_v40 }
 0x824   :  { %4477 = vmatprep.subr.bf16.mxu1 %v6619_v10 }
 0x827   :  { %4479 = vmatpush1.bf16.msra.mxu1 %v6620_v34 }
 0x828   :  { %4481 = vmatprep.subr.bf16.mxu1 %v6621_v49 }
 0x82b   :  { %4483 = vmatpush1.bf16.msra.mxu1 %v6622_v60 }
 0x82c   :  { %4485 = vmatprep.subr.bf16.mxu1 %v6623_v23 }
 0x82f   :  { %4487 = vmatpush1.bf16.msra.mxu1 %v6624_v14 }
 0x885   :  { %v2278_v19 = vpop.f32.mrb[20].mxu1  ;;  %v2349_v38 = vpop.f32.mrb[22].mxu0 }
 0x886   :  { %v2280_v44 = vpop.f32.mrb[21].mxu1  ;;  %v2351_v43 = vpop.f32.mrb[23].mxu0  ;;  %v2427_v1 = vrot.slane %v2278_v19, 2  ;;  %v2443_v47 = vrot.slane %v2349_v38, 2 }
 0x887   :  { %v2428_v63 = vrot.slane %v2280_v44, 2  ;;  %v2444_v54 = vrot.slane %v2351_v43, 2 }
 0x888   :  { %v2431_v35 = vadd.f32 %v2427_v1, %v6625_v29  ;;  %v2447_v40 = vadd.f32 %v2443_v47, %v6311_v61 }
 0x889   :  { %v2432_v46 = vadd.f32 %v2428_v63, %v6626_v27  ;;  %v2448_v34 = vadd.f32 %v2444_v54, %v5194_v13 }
 0x88a   :  { %v2433_v4 = vmul.f32 0.5, %v2431_v35  ;;  %v2449_v44 = vmul.f32 0.5, %v2447_v40 }
 0x88b   :  { %v2434_v37 = vmul.f32 0.5, %v2432_v46  ;;  %v2450_v35 = vmul.f32 0.5, %v2448_v34 }
 0x88c   :  { %4664 = vtanh.f32 %v2433_v4 }
 0x88d   :  { %4666 = vtanh.f32 %v2434_v37 }
 0x88e   :  { %4668 = vtanh.f32 %v2449_v44 }
 0x88f   :  { %4670 = vtanh.f32 %v2450_v35 }
 0x896   :  { %v4665_v18 = vpop.eup %4664 }
 0x897   :  { %v4667_v57 = vpop.eup %4666  ;;  %v2437_v10 = vmul.f32 0.5, %v4665_v18 }
 0x898   :  { %v2438_v60 = vmul.f32 0.5, %v4667_v57  ;;  %v4669_v18 = vpop.eup %4668 }
 0x899   :  { %v2439_v1 = vadd.f32 0.5, %v2437_v10  ;;  %v4671_v54 = vpop.eup %4670  ;;  %v2453_v40 = vmul.f32 0.5, %v4669_v18 }
 0x89a   :  { %v2440_v38 = vadd.f32 0.5, %v2438_v60 }
 0x8c5   :  { %v2420_v49 = vpop.f32.mrb[22].mxu1 }
 0x8c6   :  { %v2457_v23 = vadd.f32 %v2420_v49, %v5198_v0  ;;  %v2422_v14 = vpop.f32.mrb[23].mxu1 }
 0x8c7   :  { %v2458_v19 = vadd.f32 %v2422_v14, %v5200_v17 }
 0x8c8   :  { %v2461_v63 = vrot.slane %v2457_v23, 2  ;;  %v2454_v23 = vmul.f32 0.5, %v4671_v54  ;;  %v2821_v54 = vld [vmem:[#allocation5 + $0x50] sm:$0xff] }
 0x8c9   :  { %v2462_v46 = vrot.slane %v2458_v19, 2  ;;  %v2455_v19 = vadd.f32 0.5, %v2453_v40  ;;  %v2839_v40 = vld [vmem:[#allocation5 + $0xe0] sm:$0xff] }
 0x8ca   :  { %v2465_v43 = vmul.f32 %v2461_v63, %v2439_v1  ;;  %v2456_v1 = vadd.f32 0.5, %v2454_v23  ;;  %v2823_v23 = vld [vmem:[#allocation5 + $0x60] sm:$0xff] }
 0x8cb   :  { %v2466_v4 = vmul.f32 %v2462_v46, %v2440_v38 }
 0x8cc   :  { %v2467_v37 = vadd.f32 %v2465_v43, %v5204_v3 }
 0x8cd   :  { %v2468_v47 = vadd.f32 %v2466_v4, %v5206_v32 }
 0x8ce   :  { %4672 = vtanh.f32 %v2467_v37 }
 0x8cf   :  { %4674 = vtanh.f32 %v2468_v47  ;;  %v2838_v47 = vld [vmem:[#allocation5 + $0xd8] sm:$0xff] }
 0x8d8   :  { %v4673_v57 = vpop.eup %4672 }
 0x8d9   :  { %v4675_v49 = vpop.eup %4674  ;;  %v2473_v10 = vrot.slane %v4673_v57, 1 }
 0x8da   :  { %v2474_v34 = vrot.slane %v4675_v49, 1 }
 0x8db   :  { %v2477_v60 = vsub.f32 %v5794_v12, %v2473_v10  ;;  %v2840_v10 = vld [vmem:[#allocation5 + $0xe8] sm:$0xff] }
 0x8dc   :  { %v2478_v14 = vsub.f32 %v5796_v8, %v2474_v34  ;;  %v4576_v34 = vpack.c.bf16 %v2840_v10, %v2839_v40 }
 0x8dd   :  { %v2481_v44 = vrot.slane %v2477_v60, 7  ;;  %v2824_v60 = vld [vmem:[#allocation5 + $0x68] sm:$0xff] }
 0x8de   :  { %v2482_v63 = vrot.slane %v2478_v14, 7  ;;  %v2841_v14 = vld [vmem:[#allocation5 + $0xf0] sm:$0xff] }
 0x8df   :  { %v2485_v35 = vmul.f32 %v2481_v44, %v2455_v19  ;;  %v2842_v19 = vld [vmem:[#allocation5 + $0xf8] sm:$0xff]  ;;  %v4578_v44 = vpack.c.bf16 %v2824_v60, %v2823_v23 }
 0x8e0   :  { %v2486_v38 = vmul.f32 %v2482_v63, %v2456_v1  ;;  %v4580_v1 = vpack.c.bf16 %v2842_v19, %v2841_v14  ;;  %v2825_v63 = vld [vmem:[#allocation5 + $0x70] sm:$0xff]  ;;  %v2791_v19 = vrot.slane %v5796_v8, 3  ;;  %v6632_v8 = vld [vmem:[#allocation54_spill] sm:$0xff] }
 0x8e1   :  { %v5910_v46 = vadd.f32 %v4673_v57, %v2485_v35  ;;  %v2822_v57 = vld [vmem:[#allocation5 + $0x58] sm:$0xff] }
 0x8e2   :  { %v5912_v43 = vadd.f32 %v4675_v49, %v2486_v38  ;;  %v4574_v49 = vpack.c.bf16 %v2822_v57, %v2821_v54  ;;  %v2826_v35 = vld [vmem:[#allocation5 + $0x78] sm:$0xff] }
 0x8e3   :  { %v2491_v37 = vrot.slane %v5910_v46, 6  ;;  %v4582_v38 = vpack.c.bf16 %v2826_v35, %v2825_v63  ;;  %v6627_v63 = vld [vmem:[#allocation52_spill] sm:$0xff] }
 0x8e4   :  { %v2492_v4 = vrot.slane %v5912_v43, 6  ;;  %v2789_v60 = vrot.slane %v5912_v43, 5  ;;  %v6628_v35 = vld [vmem:[#allocation88_spill] sm:$0xff] }
 0x8e6   :  { %2559 = vmatprep.mubr.f32.mxu0 %v2492_v4  ;;  %2630 = vmatprep.mubr.f32.mxu1 %v2492_v4 }
 0x8e7   :  { %2560 = vmatmul.mubr.f32.vlgmr.msra.gmra.mrb[24].mxu0 %v2491_v37  ;;  %2631 = vmatmul.mubr.f32.vlgmr.msra.gmra.mrb[24].mxu1 %v2491_v37 }
 0x8e8   :  { %4491 = vmatpush1.bf16.msra.mxu0 %v6250_v16  ;;  %2701 = vmatprep.mubr.f32.mxu0 %v2492_v4  ;;  %v2812_v16 = vld [vmem:[#allocation5 + $0x8] sm:$0xff] }
 0x8e9   :  { %4493 = vmatprep.subr.bf16.mxu0 %v6251_v28 }
 0x8ec   :  { %4495 = vmatpush1.bf16.msra.mxu0 %v5016_v24  ;;  %v2828_v24 = vld [vmem:[#allocation5 + $0x88] sm:$0xff] }
 0x8ed   :  { %4497 = vmatprep.subr.bf16.mxu0 %v5021_v56  ;;  %v2827_v56 = vld [vmem:[#allocation5 + $0x80] sm:$0xff] }
 0x8f0   :  { %4499 = vmatpush1.bf16.msra.mxu0 %v5029_v5  ;;  %v4552_v5 = vpack.c.bf16 %v2828_v24, %v2827_v56 }
 0x8f1   :  { %4501 = vmatprep.subr.bf16.mxu0 %v5034_v9  ;;  %v2811_v9 = vld [vmem:[#allocation5] sm:$0xff] }
 0x8f2   :  { %v4554_v28 = vpack.c.bf16 %v2812_v16, %v2811_v9  ;;  %4553 = vmatprep.subr.bf16.mxu1 %v4552_v5 }
 0x8f4   :  { %4503 = vmatpush1.bf16.msra.mxu0 %v6252_v59  ;;  %4555 = vmatpush3.bf16.msra.mxu1 %v4554_v28  ;;  %v2829_v59 = vld [vmem:[#allocation5 + $0x90] sm:$0xff] }
 0x8f5   :  { %4505 = vmatprep.subr.bf16.mxu0 %v6253_v11  ;;  %v2830_v11 = vld [vmem:[#allocation5 + $0x98] sm:$0xff] }
 0x8f8   :  { %4507 = vmatpush1.bf16.msra.mxu0 %v6254_v51  ;;  %v4556_v51 = vpack.c.bf16 %v2830_v11, %v2829_v59 }
 0x8f9   :  { %4509 = vmatprep.subr.bf16.mxu0 %v6255_v42  ;;  %v2813_v42 = vld [vmem:[#allocation5 + $0x10] sm:$0xff] }
 0x8fa   :  { %4557 = vmatprep.subr.bf16.mxu1 %v4556_v51 }
 0x8fc   :  { %4511 = vmatpush1.bf16.msra.mxu0 %v6256_v20  ;;  %v2814_v20 = vld [vmem:[#allocation5 + $0x18] sm:$0xff] }
 0x8fd   :  { %4513 = vmatprep.subr.bf16.mxu0 %v6257_v62  ;;  %v4558_v62 = vpack.c.bf16 %v2814_v20, %v2813_v42 }
 0x8ff   :  { %4559 = vmatpush3.bf16.msra.mxu1 %v4558_v62 }
 0x900   :  { %4515 = vmatpush1.bf16.msra.mxu0 %v6258_v30  ;;  %v2831_v30 = vld [vmem:[#allocation5 + $0xa0] sm:$0xff] }
 0x901   :  { %4517 = vmatprep.subr.bf16.mxu0 %v6259_v36  ;;  %v2832_v36 = vld [vmem:[#allocation5 + $0xa8] sm:$0xff] }
 0x904   :  { %4519 = vmatpush1.bf16.msra.mxu0 %v6260_v48  ;;  %v4560_v48 = vpack.c.bf16 %v2832_v36, %v2831_v30 }
 0x905   :  { %4521 = vmatprep.subr.bf16.mxu0 %v6261_v25  ;;  %v2815_v25 = vld [vmem:[#allocation5 + $0x20] sm:$0xff] }
 0x906   :  { %4561 = vmatprep.subr.bf16.mxu1 %v4560_v48 }
 0x908   :  { %4523 = vmatpush1.bf16.msra.mxu0 %v6262_v41  ;;  %v2816_v41 = vld [vmem:[#allocation5 + $0x28] sm:$0xff] }
 0x909   :  { %4525 = vmatprep.subr.bf16.mxu0 %v6263_v39  ;;  %v4562_v39 = vpack.c.bf16 %v2816_v41, %v2815_v25 }
 0x90b   :  { %4563 = vmatpush3.bf16.msra.mxu1 %v4562_v39 }
 0x90c   :  { %4527 = vmatpush1.bf16.msra.mxu0 %v6566_v2  ;;  %v2833_v2 = vld [vmem:[#allocation5 + $0xb0] sm:$0xff] }
 0x90d   :  { %4529 = vmatprep.subr.bf16.mxu0 %v6567_v7  ;;  %v2834_v7 = vld [vmem:[#allocation5 + $0xb8] sm:$0xff] }
 0x910   :  { %4531 = vmatpush1.bf16.msra.mxu0 %v6570_v26  ;;  %v4564_v26 = vpack.c.bf16 %v2834_v7, %v2833_v2 }
 0x911   :  { %4533 = vmatprep.subr.bf16.mxu0 %v6571_v31  ;;  %v2817_v31 = vld [vmem:[#allocation5 + $0x30] sm:$0xff] }
 0x912   :  { %4565 = vmatprep.subr.bf16.mxu1 %v4564_v26 }
 0x914   :  { %4535 = vmatpush1.bf16.msra.mxu0 %v6574_v50  ;;  %v2818_v50 = vld [vmem:[#allocation5 + $0x38] sm:$0xff] }
 0x915   :  { %4537 = vmatprep.subr.bf16.mxu0 %v6575_v55  ;;  %v4566_v55 = vpack.c.bf16 %v2818_v50, %v2817_v31 }
 0x917   :  { %4567 = vmatpush3.bf16.msra.mxu1 %v4566_v55 }
 0x918   :  { %4539 = vmatpush1.bf16.msra.mxu0 %v6578_v15  ;;  %v2835_v15 = vld [vmem:[#allocation5 + $0xc0] sm:$0xff] }
 0x919   :  { %4541 = vmatprep.subr.bf16.mxu0 %v6579_v21  ;;  %v2836_v21 = vld [vmem:[#allocation5 + $0xc8] sm:$0xff] }
 0x91c   :  { %4543 = vmatpush1.bf16.msra.mxu0 %v6582_v45  ;;  %v4568_v45 = vpack.c.bf16 %v2836_v21, %v2835_v15 }
 0x91d   :  { %4545 = vmatprep.subr.bf16.mxu0 %v6583_v53  ;;  %v2819_v53 = vld [vmem:[#allocation5 + $0x40] sm:$0xff] }
 0x91e   :  { %4569 = vmatprep.subr.bf16.mxu1 %v4568_v45 }
 0x920   :  { %4547 = vmatpush1.bf16.msra.mxu0 %v6586_v6  ;;  %v2820_v6 = vld [vmem:[#allocation5 + $0x48] sm:$0xff] }
 0x921   :  { %4549 = vmatprep.subr.bf16.mxu0 %v6587_v58  ;;  %v4570_v58 = vpack.c.bf16 %v2820_v6, %v2819_v53 }
 0x923   :  { %4571 = vmatpush3.bf16.msra.mxu1 %v4570_v58 }
 0x924   :  { %4551 = vmatpush1.bf16.msra.mxu0 %v6590_v52  ;;  %v2837_v52 = vld [vmem:[#allocation5 + $0xd0] sm:$0xff] }
 0x925   :  { %v4572_v18 = vpack.c.bf16 %v2838_v47, %v2837_v52 }
 0x927   :  { %2702 = vmatmul.mubr.f32.vlgmr.msra.gmra.mrb[26].mxu0 %v2491_v37  ;;  %4573 = vmatprep.subr.bf16.mxu1 %v4572_v18 }
 0x928   :  { %4575 = vmatpush3.bf16.msra.mxu1 %v4574_v49 }
 0x929   :  { %4577 = vmatprep.subr.bf16.mxu1 %v4576_v34 }
 0x92c   :  { %4579 = vmatpush3.bf16.msra.mxu1 %v4578_v44  ;;  %v2793_v44 = vrot.slane %v5679_v33, 1  ;;  %v6633_v33 = vld [vmem:[#allocation62_spill] sm:$0xff] }
 0x92d   :  { %4581 = vmatprep.subr.bf16.mxu1 %v4580_v1 }
 0x930   :  { %4583 = vmatpush3.bf16.msra.mxu1 %v4582_v38  ;;  %v2773_v38 = vsel %vm2772_vm1, %v6628_v35, %v6627_v63 }
 0x9ba   :  { %v2561_v4 = vpop.f32.mrb[24].mxu0  ;;  %v2632_v37 = vpop.f32.mrb[24].mxu1 }
 0x9bb   :  { %v2563_v56 = vpop.f32.mrb[25].mxu0  ;;  %v2634_v24 = vpop.f32.mrb[25].mxu1  ;;  %v2710_v5 = vrot.slane %v2561_v4, 1  ;;  %v2726_v51 = vrot.slane %v2632_v37, 1  ;;  %v6629_v4 = vld [vmem:[#allocation63_spill] sm:$0xff] }
 0x9bc   :  { %v2711_v9 = vrot.slane %v2563_v56, 1  ;;  %v2727_v20 = vrot.slane %v2634_v24, 1  ;;  %v2795_v37 = vrot.slane %v6629_v4, 7  ;;  %v6630_v24 = vld [vmem:[#allocation61_spill] sm:$0xff] }
 0x9bd   :  { %v2714_v16 = vadd.f32 %v2710_v5, %v6625_v29  ;;  %v2730_v30 = vadd.f32 %v2726_v51, %v6311_v61  ;;  %v2797_v5 = vrot.slane %v6630_v24, 5  ;;  %v6634_v51 = vld [vmem:[#allocation89_spill] sm:$0xff] }
 0x9be   :  { %v2715_v28 = vadd.f32 %v2711_v9, %v6626_v27  ;;  %v2731_v48 = vadd.f32 %v2727_v20, %v5194_v13 }
 0x9bf   :  { %v2716_v59 = vmul.f32 0.5, %v2714_v16  ;;  %v2732_v2 = vmul.f32 0.5, %v2730_v30 }
 0x9c0   :  { %v2717_v11 = vmul.f32 0.5, %v2715_v28  ;;  %v2733_v31 = vmul.f32 0.5, %v2731_v48  ;;  %v2799_v28 = vrot.slane %v6632_v8, 3 }
 0x9c1   :  { %4676 = vtanh.f32 %v2716_v59 }
 0x9c2   :  { %4678 = vtanh.f32 %v2717_v11 }
 0x9c3   :  { %4680 = vtanh.f32 %v2732_v2 }
 0x9c4   :  { %4682 = vtanh.f32 %v2733_v31 }
 0x9cb   :  { %v4677_v42 = vpop.eup %4676 }
 0x9cc   :  { %v4679_v62 = vpop.eup %4678  ;;  %v2720_v36 = vmul.f32 0.5, %v4677_v42  ;;  %v2802_v42 = vrot.slane %v6634_v51, 1 }
 0x9cd   :  { %v2721_v41 = vmul.f32 0.5, %v4679_v62 }
 0x9ce   :  { %v2722_v7 = vadd.f32 0.5, %v2720_v36 }
 0x9cf   :  { %v2723_v50 = vadd.f32 0.5, %v2721_v41 }
 0x9fa   :  { %v2703_v25 = vpop.f32.mrb[26].mxu0 }
 0x9fb   :  { %v2740_v39 = vadd.f32 %v2703_v25, %v5198_v0  ;;  %v2705_v29 = vpop.f32.mrb[27].mxu0  ;;  %v4681_v0 = vpop.eup %4680 }
 0x9fc   :  { %v2741_v27 = vadd.f32 %v2705_v29, %v5200_v17  ;;  %v4683_v45 = vpop.eup %4682  ;;  %v2736_v6 = vmul.f32 0.5, %v4681_v0  ;;  %v289_v29 = vld [vmem:[#allocation2 + $0x782] ss:$0 sm:$0xff] }
 0x9fd   :  { %v2744_v26 = vrot.slane %v2740_v39, 1  ;;  %v2737_v52 = vmul.f32 0.5, %v4683_v45 }
 0x9fe   :  { %v2745_v55 = vrot.slane %v2741_v27, 1  ;;  %v2738_v57 = vadd.f32 0.5, %v2736_v6 }
 0x9ff   :  { %v2748_v15 = vmul.f32 %v2744_v26, %v2722_v7 }
 0xa00   :  { %v2749_v21 = vmul.f32 %v2745_v55, %v2723_v50 }
 0xa01   :  { %v2750_v61 = vadd.f32 %v2748_v15, %v5204_v3  ;;  %v2739_v3 = vadd.f32 0.5, %v2737_v52 }
 0xa02   :  { %v2751_v13 = vadd.f32 %v2749_v21, %v5206_v32 }
 0xa03   :  { %4684 = vtanh.f32 %v2750_v61 }
 0xa04   :  { %4686 = vtanh.f32 %v2751_v13 }
 0xa0d   :  { %v4685_v53 = vpop.eup %4684 }
 0xa0e   :  { %v4687_v17 = vpop.eup %4686  ;;  %v2756_v58 = vrot.slane %v4685_v53, 1 }
 0xa0f   :  { %v2757_v47 = vrot.slane %v4687_v17, 1 }
 0xa10   :  { %v2760_v18 = vsub.f32 %v5910_v46, %v2756_v58 }
 0xa11   :  { %v2761_v54 = vsub.f32 %v5912_v43, %v2757_v47  ;;  %v6631_v43 = vld [vmem:[#allocation60_spill] sm:$0xff] }
 0xa12   :  { %v2764_v49 = vrot.slane %v2760_v18, 7  ;;  %v2775_v16 = vsel %vm2774_vm2, %v2773_v38, %v6631_v43 }
 0xa13   :  { %v2765_v40 = vrot.slane %v2761_v54, 7  ;;  %v2777_v11 = vsel %vm2776_vm3, %v2775_v16, %v6633_v33 }
 0xa14   :  { %v2768_v10 = vmul.f32 %v2764_v49, %v2738_v57  ;;  %v2779_v62 = vsel %vm2778_vm4, %v2777_v11, %v5677_v22 }
 0xa15   :  { %v2769_v32 = vmul.f32 %v2765_v40, %v2739_v3  ;;  %v2781_v36 = vsel %vm2780_vm5, %v2779_v62, %v5794_v12 }
 0xa16   :  { %v2770_v23 = vadd.f32 %v4685_v53, %v2768_v10  ;;  %v2783_v25 = vsel %vm2782_vm6, %v2781_v36, %v5910_v46 }
 0xa17   :  { %v2771_v34 = vadd.f32 %v4687_v17, %v2769_v32 }
 0xa18   :  { %v2785_v41 = vsel %vm2784_vm7, %v2783_v25, %v2770_v23 }
 0xa19   :  { %v2787_v14 = vrot.slane %v2771_v34, 7 }
 0xa1b   :  { %v2804_v1 = vsel %vm2772_vm1, %v2787_v14, %v2789_v60 }
 0xa1c   :  { %v2805_v56 = vsel %vm2774_vm2, %v2804_v1, %v2791_v19 }
 0xa1d   :  { %v2806_v9 = vsel %vm2776_vm3, %v2805_v56, %v2793_v44 }
 0xa1e   :  { %v2807_v59 = vsel %vm2778_vm4, %v2806_v9, %v2795_v37 }
 0xa1f   :  { %v2808_v20 = vsel %vm2780_vm5, %v2807_v59, %v2797_v5 }
 0xa20   :  { %v2809_v30 = vsel %vm2782_vm6, %v2808_v20, %v2799_v28 }
 0xa21   :  { %v2810_v48 = vsel %vm2784_vm7, %v2809_v30, %v2802_v42 }
 0xa22   :  { %2907 = vmatprep.mubr.f32.mxu1 %v2810_v48 }
 0xa23   :  { %2908 = vmatmul.mubr.f32.vlgmr.msra.gmra.mrb[26].mxu1 %v2785_v41 }
 0xaf6   :  { %v2965_v39 = vpop.f32.mrb[26].mxu1 }
 0xaf7   :  { %v2966_v27 = vpop.f32.mrb[27].mxu1 }
 0xaf8   :  { %v2967_v2 = vadd.f32 %v2966_v27, %v2965_v39 }
 0xafa   :  { %v2910_v7 = vadd.f32 %v2967_v2, %v289_v29 }
 0xafc   :  { %2913 = vst [vmem:[#allocation7] sm:$0xff] %v2910_v7 }
 0xafd   :  { %4743 = shalt.err (!%p4740_p6)
}
 0xafe   :  { %s4744_s17 = scalar_lea.hbm %s5986_s3, 128 }
 0xaff   :  { %p4745_p7 = scmp.ne.s32.totalorder %s5986_s3, %s4744_s17  ;;  %p4748_p8 = scmp.lt.u32.totalorder %s4744_s17, %s5986_s3 }
 0xb01   :  { %p4750_p9 = pnand %p4748_p8, %p4745_p7 }
 0xb03   :  { %4753 = shalt.err (!%p4750_p9)
}
 0xb04   :  { %2923 = dma.vmem_to_hbm [thread:$0]  %s2921_s13, 128, %s5986_s3, [#allocation4]  }
 0xb05   :  { %4758 = dma.done.wait [#allocation4], 128  }
 0xb06   :  { %4759 = vsyncadd [#allocation4], 4294967168 }
 0xb07   :  { %2927 = vsyncpa [#allocation3], 1 }
 0xb08   :  { %2928 = vsyncpa [#allocation6], 1 }
 0xb09   :  { %2929 = vsyncpa [#allocation4], 1 }

</bundles_post_ra>
